<compile_context>
chip_gen: v7x
topology: tpu7x:2x2x1
jax: 0.10.0
libtpu: 0.0.40
codegen_flags: <defaults>
</compile_context>

<pallas_src>
import functools

import numpy as np

import jax
import jax.numpy as jnp
from jax.experimental import pallas as pl
from jax.experimental.pallas import tpu as pltpu

START_TAG = "<START>"
STOP_TAG = "<STOP>"

NEG_PAD = -1e9  # score for padded tags (can never be entered or exited)


# ----------------------------------------------------------------------------- #
# Kernel 1: bidirectional LSTM + hidden2tag (fused gates, hoisted input projection)
# ----------------------------------------------------------------------------- #
def bilstm_kernel(emb_ref, len_ref,
                  wif_ref, whf_ref, bf_ref,
                  wib_ref, whb_ref, bb_ref,
                  w2tf_ref, w2tb_ref, b2t_ref,
                  feats_ref,
                  xpf, xpb, hf, hb):
    T, B, E = emb_ref.shape
    H = whf_ref.shape[0]          # whf is (H, 4H)
    G = 4 * H
    Kp = feats_ref.shape[-1]

    # lengths kept as a (B, 1) VMEM vector: it is consumed as a vector mask each step.
    lengths = len_ref[...]                                        # (B, 1) int32

    # ---- input projections: one big MXU matmul per direction (hoisted off the
    #      serialized critical path), written to VMEM scratch in (T, B, 4H) layout ----
    emb2d = emb_ref[...].reshape(T * B, E)
    xpf[...] = (jnp.dot(emb2d, wif_ref[...], preferred_element_type=jnp.float32)
                + bf_ref[...]).reshape(T, B, G)
    xpb[...] = (jnp.dot(emb2d, wib_ref[...], preferred_element_type=jnp.float32)
                + bb_ref[...]).reshape(T, B, G)

    whf = whf_ref[...]
    whb = whb_ref[...]

    def gates(g, c):
        # PyTorch LSTM gate order: i, f, g, o — sliced from one fused pre-activation
        i = jax.nn.sigmoid(g[:, 0 * H:1 * H])
        f = jax.nn.sigmoid(g[:, 1 * H:2 * H])
        gg = jnp.tanh(g[:, 2 * H:3 * H])
        o = jax.nn.sigmoid(g[:, 3 * H:4 * H])
        c_new = f * c + i * gg
        h_new = o * jnp.tanh(c_new)
        return h_new, c_new

    zeros = jnp.zeros((B, H), jnp.float32)

    # ---- forward direction: only the (B,H) x (H,4H) recurrent matmul is serialized.
    #      Padding positions produce zero hidden outputs (pad_packed_sequence semantics). ----
    def fwd_step(t, carry):
        h, c = carry
        g = xpf[t] + jnp.dot(h, whf, preferred_element_type=jnp.float32)   # (B, 4H)
        h_new, c_new = gates(g, c)
        hf[t] = jnp.where(lengths > t, h_new, 0.0)
        return h_new, c_new

    jax.lax.fori_loop(0, T, fwd_step, (zeros, zeros))

    # ---- backward direction: state advances only on real tokens, so the recurrence
    #      effectively starts at position len-1 (pack_padded_sequence semantics). ----
    def bwd_step(i, carry):
        h, c = carry
        t = T - 1 - i
        g = xpb[t] + jnp.dot(h, whb, preferred_element_type=jnp.float32)
        h_new, c_new = gates(g, c)
        valid = lengths > t
        h = jnp.where(valid, h_new, h)
        c = jnp.where(valid, c_new, c)
        hb[t] = jnp.where(valid, h, 0.0)
        return h, c

    jax.lax.fori_loop(0, T, bwd_step, (zeros, zeros))

    # ---- hidden2tag: one batched matmul per direction + a single lane-dense store.
    #      Split weight (fwd half / bwd half) avoids a lane concat. Kp is lane-padded. ----
    feats2d = (jnp.dot(hf[...].reshape(T * B, H), w2tf_ref[...],
                       preferred_element_type=jnp.float32)
               + jnp.dot(hb[...].reshape(T * B, H), w2tb_ref[...],
                         preferred_element_type=jnp.float32)
               + b2t_ref[...])
    feats_ref[...] = feats2d.reshape(T, B, Kp)


# ----------------------------------------------------------------------------- #
# Kernel 2: Viterbi forward recursion, vectorized over the whole batch
# ----------------------------------------------------------------------------- #
def viterbi_kernel(len_ref, feats_ref, trans_ref, bp_ref, prev_ref, *, start_idx):
    # trans_ref holds the lane-padded transition matrix: trans[next_tag, prev_tag]
    T, B, Kp = feats_ref.shape
    lengths = len_ref[...]                                        # (B, 1) int32
    trans = trans_ref[...]                                        # (Kp, Kp)

    lane = jax.lax.broadcasted_iota(jnp.int32, (B, Kp), 1)
    prev0 = jnp.where(lane == start_idx, 0.0, -10000.0).astype(jnp.float32)   # (B, Kp)
    prev_idx = jax.lax.broadcasted_iota(jnp.int32, (B, Kp, Kp), 2)            # prev tag ids

    def step(t, prev_row):
        # m[b, next, prev] = transitions[next, prev] + prev_row[b, prev]
        m = trans[None, :, :] + prev_row[:, None, :]              # (B, Kp, Kp)
        vmax = jnp.max(m, axis=-1)                                # (B, Kp) best score / next tag
        bp_row = jnp.min(jnp.where(m == vmax[..., None], prev_idx, Kp),
                         axis=-1).astype(jnp.int32)               # first argmax (torch-like)
        new_prev = vmax + feats_ref[t]                            # add emission scores
        bp_ref[t] = bp_row                                        # lane-dense (B, Kp) store
        # freeze beyond the true length of each sequence
        return jnp.where(t < lengths, new_prev, prev_row)

    prev_final = jax.lax.fori_loop(0, T, step, prev0)
    prev_ref[...] = prev_final


# ----------------------------------------------------------------------------- #
# Wrappers
# ----------------------------------------------------------------------------- #
def bilstm_crf_forward(params, transitions, sentence, lengths, *, start_idx, stop_idx):
    B, T = sentence.shape
    K = transitions.shape[0]
    H = params["whf"].shape[0]
    Kp = max(128, ((K + 127) // 128) * 128)   # lane-pad the tag dimension

    # embedding lookup (gather) in time-major (T, B, E) layout -- glue
    embeds = params["emb"][sentence.T]                            # (T, B, E) float32
    lens = lengths.reshape(B, 1).astype(jnp.int32)

    # lane-pad hidden2tag so in-kernel stores / reductions are unmasked
    w2t_f = jnp.zeros((H, Kp), jnp.float32).at[:, :K].set(params["w2t_f"])
    w2t_b = jnp.zeros((H, Kp), jnp.float32).at[:, :K].set(params["w2t_b"])
    b2t = jnp.zeros((1, Kp), jnp.float32).at[:, :K].set(params["b2t"])

    vspec = pl.BlockSpec(memory_space=pltpu.MemorySpace.VMEM)

    feats_tbk = pl.pallas_call(
        bilstm_kernel,
        out_shape=jax.ShapeDtypeStruct((T, B, Kp), jnp.float32),
        in_specs=[vspec] * 11,
        out_specs=vspec,
        scratch_shapes=[pltpu.VMEM((T, B, 4 * H), jnp.float32),   # fwd input projections
                        pltpu.VMEM((T, B, 4 * H), jnp.float32),   # bwd input projections
                        pltpu.VMEM((T, B, H), jnp.float32),       # fwd hidden states
                        pltpu.VMEM((T, B, H), jnp.float32)],      # bwd hidden states
    )(embeds, lens,
      params["wif"], params["whf"], params["bf"],
      params["wib"], params["whb"], params["bb"],
      w2t_f, w2t_b, b2t)

    # lane-pad transitions; padded tags can never win or be transitioned into
    trans_p = jnp.full((Kp, Kp), NEG_PAD, jnp.float32).at[:K, :K].set(transitions)

    bp, prev = pl.pallas_call(
        functools.partial(viterbi_kernel, start_idx=start_idx),
        out_shape=(jax.ShapeDtypeStruct((T, B, Kp), jnp.int32),
                   jax.ShapeDtypeStruct((B, Kp), jnp.float32)),
        in_specs=[vspec] * 3,
        out_specs=(vspec, vspec),
    )(lens, feats_tbk, trans_p)

    prev = prev[:, :K]                                            # (B, K)
    feats = jnp.transpose(feats_tbk[:, :, :K], (1, 0, 2))         # (B, T, K) user layout

    # Viterbi backtracking (scalar bookkeeping) -- glue
    terminal = prev + transitions[stop_idx][None, :]
    best_last = jnp.argmax(terminal, axis=1).astype(jnp.int32)
    path_score = jnp.max(terminal, axis=1)

    def step(cur, t):
        cur = jnp.where(t == lengths - 1, best_last, cur)
        nxt = jnp.take_along_axis(bp[t], cur[:, None], axis=1)[:, 0].astype(jnp.int32)
        return nxt, cur

    _, path_rev = jax.lax.scan(step, best_last, jnp.arange(T - 1, -1, -1))
    paths = path_rev[::-1].T                                      # (B, T); valid for t < length
    return feats, paths, path_score


# ----------------------------------------------------------------------------- #
# Deterministic parameter init (synthetic; same shapes as the nn.Module, fused gates)
# ----------------------------------------------------------------------------- #
def init_params(key, vocab_size, embedding_dim, hidden_dim, tagset_size):
    H = hidden_dim // 2
    E = embedding_dim
    K = tagset_size
    ks = jax.random.split(key, 12)
    std = 1.0 / np.sqrt(H)

    def u(k, shape):
        return jax.random.uniform(k, shape, jnp.float32, -std, std)

    params = dict(
        emb=jax.random.normal(ks[0], (vocab_size, E), jnp.float32),
        wif=u(ks[1], (E, 4 * H)), whf=u(ks[2], (H, 4 * H)), bf=u(ks[3], (1, 4 * H)),
        wib=u(ks[4], (E, 4 * H)), whb=u(ks[5], (H, 4 * H)), bb=u(ks[6], (1, 4 * H)),
        w2t_f=u(ks[7], (H, K)), w2t_b=u(ks[8], (H, K)), b2t=u(ks[9], (1, K)),
    )
    transitions = jax.random.normal(ks[10], (K, K), jnp.float32)
    return params, transitions


# ----------------------------------------------------------------------------- #
# Pure JAX/numpy reference (same semantics) for a correctness check
# ----------------------------------------------------------------------------- #
def reference_forward(params, transitions, sentence, lengths, start_idx, stop_idx):
    B, T = sentence.shape
    H = params["whf"].shape[0]
    K = transitions.shape[0]
    embeds = params["emb"][sentence]                              # (B, T, E)
    Lm = lengths.reshape(B, 1)

    def cell(x, h, c, wi, wh, b):
        g = x @ wi + h @ wh + b
        i = jax.nn.sigmoid(g[:, 0 * H:1 * H])
        f = jax.nn.sigmoid(g[:, 1 * H:2 * H])
        gg = jnp.tanh(g[:, 2 * H:3 * H])
        o = jax.nn.sigmoid(g[:, 3 * H:4 * H])
        c = f * c + i * gg
        return o * jnp.tanh(c), c

    h = jnp.zeros((B, H)); c = jnp.zeros((B, H)); fwd = []
    for t in range(T):
        h, c = cell(embeds[:, t], h, c, params["wif"], params["whf"], params["bf"])
        fwd.append(jnp.where(Lm > t, h, 0.0))
    h = jnp.zeros((B, H)); c = jnp.zeros((B, H)); bwd = [None] * T
    for t in range(T - 1, -1, -1):
        hn, cn = cell(embeds[:, t], h, c, params["wib"], params["whb"], params["bb"])
        h = jnp.where(Lm > t, hn, h); c = jnp.where(Lm > t, cn, c)
        bwd[t] = jnp.where(Lm > t, h, 0.0)
    feats = jnp.stack(
        [fwd[t] @ params["w2t_f"] + bwd[t] @ params["w2t_b"] + params["b2t"]
         for t in range(T)], axis=1)

    feats_np = np.asarray(feats); trans_np = np.asarray(transitions)
    paths = []
    for b in range(B):
        Lb = int(lengths[b])
        prev = np.full((K,), -10000.0, np.float32); prev[start_idx] = 0.0
        bps = []
        for t in range(Lb):
            m = trans_np + prev[None, :]
            bps.append(np.argmax(m, axis=1))
            prev = m.max(axis=1) + feats_np[b, t]
        term = prev + trans_np[stop_idx]
        best = int(np.argmax(term))
        path = [best]
        for bp in reversed(bps):
            best = int(bp[best])
            path.append(best)
        start = path.pop()
        assert start == start_idx
        path.reverse()
        paths.append(path)
    return feats, paths


# ----------------------------------------------------------------------------- #
if __name__ == "__main__":
    jax.config.update("jax_default_matmul_precision", "float32")

    tag_to_ix = {"B": 0, "I": 1, "O": 2, START_TAG: 3, STOP_TAG: 4}
    K = len(tag_to_ix)
    vocab_size, embedding_dim, hidden_dim = 20, 16, 32
    B, T = 2, 8

    key = jax.random.PRNGKey(0)
    kp, kd = jax.random.split(key)
    params, transitions = init_params(kp, vocab_size, embedding_dim, hidden_dim, K)
    transitions = transitions.at[tag_to_ix[START_TAG], :].set(-10000.0)
    transitions = transitions.at[:, tag_to_ix[STOP_TAG]].set(-10000.0)

    sentence = jax.random.randint(kd, (B, T), 0, vocab_size, dtype=jnp.int32)
    lengths = jnp.array([8, 5], dtype=jnp.int32)

    fwd_fn = jax.jit(functools.partial(
        bilstm_crf_forward,
        start_idx=tag_to_ix[START_TAG],
        stop_idx=tag_to_ix[STOP_TAG]))

    feats, paths, scores = fwd_fn(params, transitions, sentence, lengths)
    jax.block_until_ready((feats, paths, scores))

    # correctness check against a pure JAX/numpy reference with identical semantics
    ref_feats, ref_paths = reference_forward(
        params, transitions, np.asarray(sentence), np.asarray(lengths),
        tag_to_ix[START_TAG], tag_to_ix[STOP_TAG])

    lengths_np = np.asarray(lengths)
    tag_seqs = [np.asarray(paths)[b, :int(lengths_np[b])].tolist() for b in range(B)]

    assert np.allclose(np.asarray(feats), np.asarray(ref_feats), atol=2e-3, rtol=2e-3), \
        "LSTM feature mismatch"
    assert tag_seqs == ref_paths, f"Viterbi path mismatch: {tag_seqs} vs {ref_paths}"

    print("KERNEL_OK")
</pallas_src>

<mosaic_0001>
module attributes {stable_mosaic.version = 11 : i64} {
  func.func @viterbi_kernel(%arg0: memref<2x1xi32, #tpu.memory_space<vmem>>, %arg1: memref<8x2x128xf32, #tpu.memory_space<vmem>>, %arg2: memref<128x128xf32, #tpu.memory_space<vmem>>, %arg3: memref<8x2x128xi32, #tpu.memory_space<vmem>>, %arg4: memref<2x128xf32, #tpu.memory_space<vmem>>) attributes {dimension_semantics = [], scalar_prefetch = 0 : i64, scratch_operands = 0 : i64, tpu.core_type = #tpu.core_type<tc>} {
    %c0 = arith.constant 0 : index
    %c0_0 = arith.constant 0 : index
    %0 = vector.load %arg0[%c0, %c0_0] : memref<2x1xi32, #tpu.memory_space<vmem>>, vector<2x1xi32>
    %c0_1 = arith.constant 0 : index
    %c0_2 = arith.constant 0 : index
    %1 = vector.load %arg2[%c0_1, %c0_2] : memref<128x128xf32, #tpu.memory_space<vmem>>, vector<128x128xf32>
    %2 = tpu.iota {dimensions = array<i32: 1>} : vector<2x128xi32>
    %c3_i32 = arith.constant 3 : i32
    %3 = vector.broadcast %c3_i32 : i32 to vector<2x128xi32>
    %4 = arith.cmpi eq, %2, %3 : vector<2x128xi32>
    %cst = arith.constant 0.000000e+00 : f32
    %cst_3 = arith.constant -1.000000e+04 : f32
    %5 = vector.broadcast %cst : f32 to vector<2x128xf32>
    %6 = vector.broadcast %cst_3 : f32 to vector<2x128xf32>
    %7 = arith.select %4, %5, %6 : vector<2x128xi1>, vector<2x128xf32>
    %8 = tpu.iota {dimensions = array<i32: 2>} : vector<2x128x128xi32>
    %c0_i32 = arith.constant 0 : i32
    %c8_i32 = arith.constant 8 : i32
    %9 = arith.addi %c0_i32, %c8_i32 : i32
    %c1_i32 = arith.constant 1 : i32
    %10 = scf.for %arg5 = %c0_i32 to %9 step %c1_i32 iter_args(%arg6 = %7) -> (vector<2x128xf32>)  : i32 {
      %12 = vector.shape_cast %1 : vector<128x128xf32> to vector<1x128x128xf32>
      %13 = vector.shape_cast %arg6 : vector<2x128xf32> to vector<2x1x128xf32>
      %14 = vector.broadcast %12 : vector<1x128x128xf32> to vector<2x128x128xf32>
      %15 = vector.broadcast %13 : vector<2x1x128xf32> to vector<2x128x128xf32>
      %16 = arith.addf %14, %15 : vector<2x128x128xf32>
      %cst_7 = arith.constant dense<0xFF800000> : vector<2x128xf32>
      %17 = vector.multi_reduction <maximumf>, %16, %cst_7 [2] : vector<2x128x128xf32> to vector<2x128xf32>
      %18 = vector.shape_cast %17 : vector<2x128xf32> to vector<2x128x1xf32>
      %19 = vector.broadcast %18 : vector<2x128x1xf32> to vector<2x128x128xf32>
      %20 = arith.cmpf oeq, %16, %19 : vector<2x128x128xf32>
      %c128_i32 = arith.constant 128 : i32
      %21 = vector.broadcast %c128_i32 : i32 to vector<2x128x128xi32>
      %22 = arith.select %20, %8, %21 : vector<2x128x128xi1>, vector<2x128x128xi32>
      %cst_8 = arith.constant dense<2147483647> : vector<2x128xi32>
      %23 = vector.multi_reduction <minsi>, %22, %cst_8 [2] : vector<2x128x128xi32> to vector<2x128xi32>
      %24 = arith.index_cast %arg5 : i32 to index
      %c0_9 = arith.constant 0 : index
      %c0_10 = arith.constant 0 : index
      %25 = vector.load %arg1[%24, %c0_9, %c0_10] : memref<8x2x128xf32, #tpu.memory_space<vmem>>, vector<1x2x128xf32>
      %26 = vector.shape_cast %25 : vector<1x2x128xf32> to vector<2x128xf32>
      %27 = arith.addf %17, %26 : vector<2x128xf32>
      %28 = arith.index_cast %arg5 : i32 to index
      %c0_11 = arith.constant 0 : index
      %c0_12 = arith.constant 0 : index
      %29 = vector.load %arg3[%28, %c0_11, %c0_12] : memref<8x2x128xi32, #tpu.memory_space<vmem>>, vector<1x2x128xi32>
      %30 = vector.shape_cast %29 : vector<1x2x128xi32> to vector<2x128xi32>
      %31 = vector.shape_cast %23 : vector<2x128xi32> to vector<1x2x128xi32>
      tpu.vector_store %arg3[%28, %c0_11, %c0_12], %31 {strides = array<i32>} : memref<8x2x128xi32, #tpu.memory_space<vmem>>, vector<1x2x128xi32>,
      %32 = vector.broadcast %arg5 : i32 to vector<2x1xi32>
      %33 = arith.cmpi slt, %32, %0 : vector<2x1xi32>
      %34 = vector.shape_cast %33 : vector<2x1xi1> to vector<2x1xi1>
      %35 = vector.broadcast %34 : vector<2x1xi1> to vector<2x128xi1>
      %36 = arith.select %35, %27, %arg6 : vector<2x128xi1>, vector<2x128xf32>
      scf.yield %36 : vector<2x128xf32>
    }
    %c8_i32_4 = arith.constant 8 : i32
    %c0_5 = arith.constant 0 : index
    %c0_6 = arith.constant 0 : index
    %11 = vector.load %arg4[%c0_5, %c0_6] : memref<2x128xf32, #tpu.memory_space<vmem>>, vector<2x128xf32>
    tpu.vector_store %arg4[%c0_5, %c0_6], %10 {strides = array<i32>} : memref<2x128xf32, #tpu.memory_space<vmem>>, vector<2x128xf32>,
    return
  }
}

module attributes {stable_mosaic.version = 11 : i64} {
  func.func @bilstm_kernel(%arg0: memref<8x2x16xf32, #tpu.memory_space<vmem>>, %arg1: memref<2x1xi32, #tpu.memory_space<vmem>>, %arg2: memref<16x64xf32, #tpu.memory_space<vmem>>, %arg3: memref<16x64xf32, #tpu.memory_space<vmem>>, %arg4: memref<1x64xf32, #tpu.memory_space<vmem>>, %arg5: memref<16x64xf32, #tpu.memory_space<vmem>>, %arg6: memref<16x64xf32, #tpu.memory_space<vmem>>, %arg7: memref<1x64xf32, #tpu.memory_space<vmem>>, %arg8: memref<16x128xf32, #tpu.memory_space<vmem>>, %arg9: memref<16x128xf32, #tpu.memory_space<vmem>>, %arg10: memref<1x128xf32, #tpu.memory_space<vmem>>, %arg11: memref<8x2x128xf32, #tpu.memory_space<vmem>>, %arg12: memref<8x2x64xf32, #tpu.memory_space<vmem>>, %arg13: memref<8x2x64xf32, #tpu.memory_space<vmem>>, %arg14: memref<8x2x16xf32, #tpu.memory_space<vmem>>, %arg15: memref<8x2x16xf32, #tpu.memory_space<vmem>>) attributes {dimension_semantics = [], scalar_prefetch = 0 : i64, scratch_operands = 4 : i64, tpu.core_type = #tpu.core_type<tc>} {
    %c0 = arith.constant 0 : index
    %c0_0 = arith.constant 0 : index
    %0 = vector.load %arg1[%c0, %c0_0] : memref<2x1xi32, #tpu.memory_space<vmem>>, vector<2x1xi32>
    %c0_1 = arith.constant 0 : index
    %c0_2 = arith.constant 0 : index
    %c0_3 = arith.constant 0 : index
    %1 = vector.load %arg0[%c0_1, %c0_2, %c0_3] : memref<8x2x16xf32, #tpu.memory_space<vmem>>, vector<8x2x16xf32>
    %2 = vector.shape_cast %1 : vector<8x2x16xf32> to vector<16x16xf32>
    %c0_4 = arith.constant 0 : index
    %c0_5 = arith.constant 0 : index
    %3 = vector.load %arg2[%c0_4, %c0_5] : memref<16x64xf32, #tpu.memory_space<vmem>>, vector<16x64xf32>
    %cst = arith.constant dense<0.000000e+00> : vector<16x64xf32>
    %4 = tpu.matmul %2, %3, %cst {dimension_numbers = #tpu.dot_dimension_numbers<[1], [0], [0], [1], [0, 0, 1, 1], [], []>, precision = #tpu.contract_precision<fp32>} : vector<16x16xf32>, vector<16x64xf32>, vector<16x64xf32> -> vector<16x64xf32>
    %c0_6 = arith.constant 0 : index
    %c0_7 = arith.constant 0 : index
    %5 = vector.load %arg4[%c0_6, %c0_7] : memref<1x64xf32, #tpu.memory_space<vmem>>, vector<1x64xf32>
    %6 = vector.broadcast %5 : vector<1x64xf32> to vector<16x64xf32>
    %7 = arith.addf %4, %6 : vector<16x64xf32>
    %8 = vector.shape_cast %7 : vector<16x64xf32> to vector<8x2x64xf32>
    %c0_8 = arith.constant 0 : index
    %c0_9 = arith.constant 0 : index
    %c0_10 = arith.constant 0 : index
    %9 = vector.load %arg12[%c0_8, %c0_9, %c0_10] : memref<8x2x64xf32, #tpu.memory_space<vmem>>, vector<8x2x64xf32>
    tpu.vector_store %arg12[%c0_8, %c0_9, %c0_10], %8 {strides = array<i32>} : memref<8x2x64xf32, #tpu.memory_space<vmem>>, vector<8x2x64xf32>,
    %c0_11 = arith.constant 0 : index
    %c0_12 = arith.constant 0 : index
    %10 = vector.load %arg5[%c0_11, %c0_12] : memref<16x64xf32, #tpu.memory_space<vmem>>, vector<16x64xf32>
    %cst_13 = arith.constant dense<0.000000e+00> : vector<16x64xf32>
    %11 = tpu.matmul %2, %10, %cst_13 {dimension_numbers = #tpu.dot_dimension_numbers<[1], [0], [0], [1], [0, 0, 1, 1], [], []>, precision = #tpu.contract_precision<fp32>} : vector<16x16xf32>, vector<16x64xf32>, vector<16x64xf32> -> vector<16x64xf32>
    %c0_14 = arith.constant 0 : index
    %c0_15 = arith.constant 0 : index
    %12 = vector.load %arg7[%c0_14, %c0_15] : memref<1x64xf32, #tpu.memory_space<vmem>>, vector<1x64xf32>
    %13 = vector.broadcast %12 : vector<1x64xf32> to vector<16x64xf32>
    %14 = arith.addf %11, %13 : vector<16x64xf32>
    %15 = vector.shape_cast %14 : vector<16x64xf32> to vector<8x2x64xf32>
    %c0_16 = arith.constant 0 : index
    %c0_17 = arith.constant 0 : index
    %c0_18 = arith.constant 0 : index
    %16 = vector.load %arg13[%c0_16, %c0_17, %c0_18] : memref<8x2x64xf32, #tpu.memory_space<vmem>>, vector<8x2x64xf32>
    tpu.vector_store %arg13[%c0_16, %c0_17, %c0_18], %15 {strides = array<i32>} : memref<8x2x64xf32, #tpu.memory_space<vmem>>, vector<8x2x64xf32>,
    %c0_19 = arith.constant 0 : index
    %c0_20 = arith.constant 0 : index
    %17 = vector.load %arg3[%c0_19, %c0_20] : memref<16x64xf32, #tpu.memory_space<vmem>>, vector<16x64xf32>
    %c0_21 = arith.constant 0 : index
    %c0_22 = arith.constant 0 : index
    %18 = vector.load %arg6[%c0_21, %c0_22] : memref<16x64xf32, #tpu.memory_space<vmem>>, vector<16x64xf32>
    %cst_23 = arith.constant 0.000000e+00 : f32
    %19 = vector.broadcast %cst_23 : f32 to vector<2x16xf32>
    %c0_i32 = arith.constant 0 : i32
    %c8_i32 = arith.constant 8 : i32
    %20 = arith.addi %c0_i32, %c8_i32 : i32
    %c1_i32 = arith.constant 1 : i32
    %21:2 = scf.for %arg16 = %c0_i32 to %20 step %c1_i32 iter_args(%arg17 = %19, %arg18 = %19) -> (vector<2x16xf32>, vector<2x16xf32>)  : i32 {
      %38 = arith.index_cast %arg16 : i32 to index
      %c0_46 = arith.constant 0 : index
      %c0_47 = arith.constant 0 : index
      %39 = vector.load %arg12[%38, %c0_46, %c0_47] : memref<8x2x64xf32, #tpu.memory_space<vmem>>, vector<1x2x64xf32>
      %40 = vector.shape_cast %39 : vector<1x2x64xf32> to vector<2x64xf32>
      %cst_48 = arith.constant dense<0.000000e+00> : vector<2x64xf32>
      %41 = tpu.matmul %arg17, %17, %cst_48 {dimension_numbers = #tpu.dot_dimension_numbers<[1], [0], [0], [1], [0, 0, 1, 1], [], []>, precision = #tpu.contract_precision<fp32>} : vector<2x16xf32>, vector<16x64xf32>, vector<2x64xf32> -> vector<2x64xf32>
      %42 = arith.addf %40, %41 : vector<2x64xf32>
      %43 = vector.extract_strided_slice %42 {offsets = [0, 0], sizes = [2, 16], strides = [1, 1]} : vector<2x64xf32> to vector<2x16xf32>
      %44 = arith.negf %43 : vector<2x16xf32>
      %45 = math.exp %44 : vector<2x16xf32>
      %cst_49 = arith.constant 1.000000e+00 : f32
      %46 = vector.broadcast %cst_49 : f32 to vector<2x16xf32>
      %47 = arith.addf %46, %45 : vector<2x16xf32>
      %48 = arith.divf %46, %47 : vector<2x16xf32>
      %49 = vector.extract_strided_slice %42 {offsets = [0, 16], sizes = [2, 16], strides = [1, 1]} : vector<2x64xf32> to vector<2x16xf32>
      %50 = arith.negf %49 : vector<2x16xf32>
      %51 = math.exp %50 : vector<2x16xf32>
      %cst_50 = arith.constant 1.000000e+00 : f32
      %52 = vector.broadcast %cst_50 : f32 to vector<2x16xf32>
      %53 = arith.addf %52, %51 : vector<2x16xf32>
      %54 = arith.divf %52, %53 : vector<2x16xf32>
      %55 = vector.extract_strided_slice %42 {offsets = [0, 32], sizes = [2, 16], strides = [1, 1]} : vector<2x64xf32> to vector<2x16xf32>
      %56 = math.tanh %55 : vector<2x16xf32>
      %57 = vector.extract_strided_slice %42 {offsets = [0, 48], sizes = [2, 16], strides = [1, 1]} : vector<2x64xf32> to vector<2x16xf32>
      %58 = arith.negf %57 : vector<2x16xf32>
      %59 = math.exp %58 : vector<2x16xf32>
      %cst_51 = arith.constant 1.000000e+00 : f32
      %60 = vector.broadcast %cst_51 : f32 to vector<2x16xf32>
      %61 = arith.addf %60, %59 : vector<2x16xf32>
      %62 = arith.divf %60, %61 : vector<2x16xf32>
      %63 = arith.mulf %54, %arg18 : vector<2x16xf32>
      %64 = arith.mulf %48, %56 : vector<2x16xf32>
      %65 = arith.addf %63, %64 : vector<2x16xf32>
      %66 = math.tanh %65 : vector<2x16xf32>
      %67 = arith.mulf %62, %66 : vector<2x16xf32>
      %68 = vector.broadcast %arg16 : i32 to vector<2x1xi32>
      %69 = arith.cmpi sgt, %0, %68 : vector<2x1xi32>
      %cst_52 = arith.constant 0.000000e+00 : f32
      %70 = vector.shape_cast %69 : vector<2x1xi1> to vector<2x1xi1>
      %71 = vector.broadcast %70 : vector<2x1xi1> to vector<2x16xi1>
      %72 = vector.broadcast %cst_52 : f32 to vector<2x16xf32>
      %73 = arith.select %71, %67, %72 : vector<2x16xi1>, vector<2x16xf32>
      %74 = arith.index_cast %arg16 : i32 to index
      %c0_53 = arith.constant 0 : index
      %c0_54 = arith.constant 0 : index
      %75 = vector.load %arg14[%74, %c0_53, %c0_54] : memref<8x2x16xf32, #tpu.memory_space<vmem>>, vector<1x2x16xf32>
      %76 = vector.shape_cast %75 : vector<1x2x16xf32> to vector<2x16xf32>
      %77 = vector.shape_cast %73 : vector<2x16xf32> to vector<1x2x16xf32>
      tpu.vector_store %arg14[%74, %c0_53, %c0_54], %77 {strides = array<i32>} : memref<8x2x16xf32, #tpu.memory_space<vmem>>, vector<1x2x16xf32>,
      scf.yield %67, %65 : vector<2x16xf32>, vector<2x16xf32>
    }
    %c8_i32_24 = arith.constant 8 : i32
    %c0_i32_25 = arith.constant 0 : i32
    %c8_i32_26 = arith.constant 8 : i32
    %22 = arith.addi %c0_i32_25, %c8_i32_26 : i32
    %c1_i32_27 = arith.constant 1 : i32
    %23:2 = scf.for %arg16 = %c0_i32_25 to %22 step %c1_i32_27 iter_args(%arg17 = %19, %arg18 = %19) -> (vector<2x16xf32>, vector<2x16xf32>)  : i32 {
      %c7_i32 = arith.constant 7 : i32
      %38 = arith.subi %c7_i32, %arg16 : i32
      %39 = arith.index_cast %38 : i32 to index
      %c0_46 = arith.constant 0 : index
      %c0_47 = arith.constant 0 : index
      %40 = vector.load %arg13[%39, %c0_46, %c0_47] : memref<8x2x64xf32, #tpu.memory_space<vmem>>, vector<1x2x64xf32>
      %41 = vector.shape_cast %40 : vector<1x2x64xf32> to vector<2x64xf32>
      %cst_48 = arith.constant dense<0.000000e+00> : vector<2x64xf32>
      %42 = tpu.matmul %arg17, %18, %cst_48 {dimension_numbers = #tpu.dot_dimension_numbers<[1], [0], [0], [1], [0, 0, 1, 1], [], []>, precision = #tpu.contract_precision<fp32>} : vector<2x16xf32>, vector<16x64xf32>, vector<2x64xf32> -> vector<2x64xf32>
      %43 = arith.addf %41, %42 : vector<2x64xf32>
      %44 = vector.extract_strided_slice %43 {offsets = [0, 0], sizes = [2, 16], strides = [1, 1]} : vector<2x64xf32> to vector<2x16xf32>
      %45 = arith.negf %44 : vector<2x16xf32>
      %46 = math.exp %45 : vector<2x16xf32>
      %cst_49 = arith.constant 1.000000e+00 : f32
      %47 = vector.broadcast %cst_49 : f32 to vector<2x16xf32>
      %48 = arith.addf %47, %46 : vector<2x16xf32>
      %49 = arith.divf %47, %48 : vector<2x16xf32>
      %50 = vector.extract_strided_slice %43 {offsets = [0, 16], sizes = [2, 16], strides = [1, 1]} : vector<2x64xf32> to vector<2x16xf32>
      %51 = arith.negf %50 : vector<2x16xf32>
      %52 = math.exp %51 : vector<2x16xf32>
      %cst_50 = arith.constant 1.000000e+00 : f32
      %53 = vector.broadcast %cst_50 : f32 to vector<2x16xf32>
      %54 = arith.addf %53, %52 : vector<2x16xf32>
      %55 = arith.divf %53, %54 : vector<2x16xf32>
      %56 = vector.extract_strided_slice %43 {offsets = [0, 32], sizes = [2, 16], strides = [1, 1]} : vector<2x64xf32> to vector<2x16xf32>
      %57 = math.tanh %56 : vector<2x16xf32>
      %58 = vector.extract_strided_slice %43 {offsets = [0, 48], sizes = [2, 16], strides = [1, 1]} : vector<2x64xf32> to vector<2x16xf32>
      %59 = arith.negf %58 : vector<2x16xf32>
      %60 = math.exp %59 : vector<2x16xf32>
      %cst_51 = arith.constant 1.000000e+00 : f32
      %61 = vector.broadcast %cst_51 : f32 to vector<2x16xf32>
      %62 = arith.addf %61, %60 : vector<2x16xf32>
      %63 = arith.divf %61, %62 : vector<2x16xf32>
      %64 = arith.mulf %55, %arg18 : vector<2x16xf32>
      %65 = arith.mulf %49, %57 : vector<2x16xf32>
      %66 = arith.addf %64, %65 : vector<2x16xf32>
      %67 = math.tanh %66 : vector<2x16xf32>
      %68 = arith.mulf %63, %67 : vector<2x16xf32>
      %69 = vector.broadcast %38 : i32 to vector<2x1xi32>
      %70 = arith.cmpi sgt, %0, %69 : vector<2x1xi32>
      %71 = vector.shape_cast %70 : vector<2x1xi1> to vector<2x1xi1>
      %72 = vector.broadcast %71 : vector<2x1xi1> to vector<2x16xi1>
      %73 = arith.select %72, %68, %arg17 : vector<2x16xi1>, vector<2x16xf32>
      %74 = vector.shape_cast %70 : vector<2x1xi1> to vector<2x1xi1>
      %75 = vector.broadcast %74 : vector<2x1xi1> to vector<2x16xi1>
      %76 = arith.select %75, %66, %arg18 : vector<2x16xi1>, vector<2x16xf32>
      %cst_52 = arith.constant 0.000000e+00 : f32
      %77 = vector.shape_cast %70 : vector<2x1xi1> to vector<2x1xi1>
      %78 = vector.broadcast %77 : vector<2x1xi1> to vector<2x16xi1>
      %79 = vector.broadcast %cst_52 : f32 to vector<2x16xf32>
      %80 = arith.select %78, %73, %79 : vector<2x16xi1>, vector<2x16xf32>
      %81 = arith.index_cast %38 : i32 to index
      %c0_53 = arith.constant 0 : index
      %c0_54 = arith.constant 0 : index
      %82 = vector.load %arg15[%81, %c0_53, %c0_54] : memref<8x2x16xf32, #tpu.memory_space<vmem>>, vector<1x2x16xf32>
      %83 = vector.shape_cast %82 : vector<1x2x16xf32> to vector<2x16xf32>
      %84 = vector.shape_cast %80 : vector<2x16xf32> to vector<1x2x16xf32>
      tpu.vector_store %arg15[%81, %c0_53, %c0_54], %84 {strides = array<i32>} : memref<8x2x16xf32, #tpu.memory_space<vmem>>, vector<1x2x16xf32>,
      scf.yield %73, %76 : vector<2x16xf32>, vector<2x16xf32>
    }
    %c8_i32_28 = arith.constant 8 : i32
    %c0_29 = arith.constant 0 : index
    %c0_30 = arith.constant 0 : index
    %c0_31 = arith.constant 0 : index
    %24 = vector.load %arg14[%c0_29, %c0_30, %c0_31] : memref<8x2x16xf32, #tpu.memory_space<vmem>>, vector<8x2x16xf32>
    %25 = vector.shape_cast %24 : vector<8x2x16xf32> to vector<16x16xf32>
    %c0_32 = arith.constant 0 : index
    %c0_33 = arith.constant 0 : index
    %26 = vector.load %arg8[%c0_32, %c0_33] : memref<16x128xf32, #tpu.memory_space<vmem>>, vector<16x128xf32>
    %cst_34 = arith.constant dense<0.000000e+00> : vector<16x128xf32>
    %27 = tpu.matmul %25, %26, %cst_34 {dimension_numbers = #tpu.dot_dimension_numbers<[1], [0], [0], [1], [0, 0, 1, 1], [], []>, precision = #tpu.contract_precision<fp32>} : vector<16x16xf32>, vector<16x128xf32>, vector<16x128xf32> -> vector<16x128xf32>
    %c0_35 = arith.constant 0 : index
    %c0_36 = arith.constant 0 : index
    %c0_37 = arith.constant 0 : index
    %28 = vector.load %arg15[%c0_35, %c0_36, %c0_37] : memref<8x2x16xf32, #tpu.memory_space<vmem>>, vector<8x2x16xf32>
    %29 = vector.shape_cast %28 : vector<8x2x16xf32> to vector<16x16xf32>
    %c0_38 = arith.constant 0 : index
    %c0_39 = arith.constant 0 : index
    %30 = vector.load %arg9[%c0_38, %c0_39] : memref<16x128xf32, #tpu.memory_space<vmem>>, vector<16x128xf32>
    %cst_40 = arith.constant dense<0.000000e+00> : vector<16x128xf32>
    %31 = tpu.matmul %29, %30, %cst_40 {dimension_numbers = #tpu.dot_dimension_numbers<[1], [0], [0], [1], [0, 0, 1, 1], [], []>, precision = #tpu.contract_precision<fp32>} : vector<16x16xf32>, vector<16x128xf32>, vector<16x128xf32> -> vector<16x128xf32>
    %32 = arith.addf %27, %31 : vector<16x128xf32>
    %c0_41 = arith.constant 0 : index
    %c0_42 = arith.constant 0 : index
    %33 = vector.load %arg10[%c0_41, %c0_42] : memref<1x128xf32, #tpu.memory_space<vmem>>, vector<1x128xf32>
    %34 = vector.broadcast %33 : vector<1x128xf32> to vector<16x128xf32>
    %35 = arith.addf %32, %34 : vector<16x128xf32>
    %36 = vector.shape_cast %35 : vector<16x128xf32> to vector<8x2x128xf32>
    %c0_43 = arith.constant 0 : index
    %c0_44 = arith.constant 0 : index
    %c0_45 = arith.constant 0 : index
    %37 = vector.load %arg11[%c0_43, %c0_44, %c0_45] : memref<8x2x128xf32, #tpu.memory_space<vmem>>, vector<8x2x128xf32>
    tpu.vector_store %arg11[%c0_43, %c0_44, %c0_45], %36 {strides = array<i32>} : memref<8x2x128xf32, #tpu.memory_space<vmem>>, vector<8x2x128xf32>,
    return
  }
}

</mosaic_0001>

<bundles_post_ra>
// kernel: custom-call.6
= control target key start
LH: loop header
LB: loop body
LE: loop exit
PB: predicated region body
PF: predicated region fallthrough
CT: control target
= control target key end

     0   :  { %s6_s0 = inlined_call_operand.vmem [shape: s32[8,2], index: 0, kind: output, shape index: {}]  }

// kernel: bilstm_crf_forward.3
= control target key start
LH: loop header
LB: loop body
LE: loop exit
PB: predicated region body
PF: predicated region fallthrough
CT: control target
= control target key end

     0   :  { %v2623_v0 = vlaneseq  ;;  %v1434_v17 = vmov -10000.0   ;;  %s1553_s22 = smov 0   ;;  %s2618_s0 = inlined_call_operand.vmem [shape: s32[2,1], index: 0, kind: input, shape index: {}]   ;;  %s2619_s1 = inlined_call_operand.vmem [shape: f32[8,2,128], index: 1, kind: input, shape index: {}]   ;;  %s2620_s2 = inlined_call_operand.vmem [shape: f32[128,128], index: 2, kind: input, shape index: {}]   ;;  %s2621_s3 = inlined_call_operand.vmem [shape: s32[8,2,128], index: 3, kind: output, shape index: {0}]   ;;  %s2622_s4 = inlined_call_operand.vmem [shape: f32[2,128], index: 4, kind: output, shape index: {1}]  }
   0x1   :  { %v1465_v1 = vld [vmem:[%s2618_s0] sm:$0x3]  ;;  %v1475_v3 = vld [vmem:[%s2620_s2 + $0x8] sm:$0xff]  ;;  %v1480_v4 = vld [vmem:[%s2620_s2 + $0x10] sm:$0xff] }
   0x2   :  { %2718 = vst [vmem:[#allocation2_spill] sm:$0xff] %v1465_v1  ;;  %v1470_v2 = vld [vmem:[%s2620_s2] sm:$0xff]  ;;  %2720 = vst [vmem:[#allocation4_spill] sm:$0xff] %v1475_v3  ;;  %v1485_v5 = vld [vmem:[%s2620_s2 + $0x18] sm:$0xff]  ;;  %v1493_v7 = vand.u32 127, %v2623_v0 }
   0x3   :  { %2719 = vst [vmem:[#allocation3_spill] sm:$0xff] %v1470_v2  ;;  %2721 = vst [vmem:[#allocation5_spill] sm:$0xff] %v1480_v4  ;;  %v1490_v6 = vld [vmem:[%s2620_s2 + $0x20] sm:$0xff]  ;;  %v1498_v8 = vld [vmem:[%s2620_s2 + $0x28] sm:$0xff] }
   0x4   :  { %2722 = vst [vmem:[#allocation6_spill] sm:$0xff] %v1485_v5  ;;  %2723 = vst [vmem:[#allocation7_spill] sm:$0xff] %v1490_v6  ;;  %v1503_v9 = vld [vmem:[%s2620_s2 + $0x30] sm:$0xff]  ;;  %v1508_v10 = vld [vmem:[%s2620_s2 + $0x38] sm:$0xff]  ;;  %vm35_vm0 = vcmp.eq.s32.totalorder %v1493_v7, 3 }
   0x5   :  { %2724 = vst [vmem:[#allocation8_spill] sm:$0xff] %v1493_v7  ;;  %2725 = vst [vmem:[#allocation9_spill] sm:$0xff] %v1498_v8  ;;  %v1513_v11 = vld [vmem:[%s2620_s2 + $0x40] sm:$0xff]  ;;  %v1518_v12 = vld [vmem:[%s2620_s2 + $0x48] sm:$0xff]  ;;  %v36_v18 = vsel %vm35_vm0, 0.0, %v1434_v17  }
   0x6   :  { %2726 = vst [vmem:[#allocation10_spill] sm:$0xff] %v1503_v9  ;;  %2727 = vst [vmem:[#allocation11_spill] sm:$0xff] %v1508_v10  ;;  %v1523_v13 = vld [vmem:[%s2620_s2 + $0x50] sm:$0xff]  ;;  %v1529_v14 = vld [vmem:[%s2620_s2 + $0x58] sm:$0xff] }
   0x7   :  { %2728 = vst [vmem:[#allocation12_spill] sm:$0xff] %v1513_v11  ;;  %2729 = vst [vmem:[#allocation13_spill] sm:$0xff] %v1518_v12  ;;  %v1534_v15 = vld [vmem:[%s2620_s2 + $0x60] sm:$0xff]  ;;  %v1539_v16 = vld [vmem:[%s2620_s2 + $0x68] sm:$0xff] }
   0x8   :  { %2730 = vst [vmem:[#allocation14_spill] sm:$0xff] %v1523_v13  ;;  %2731 = vst [vmem:[#allocation15_spill] sm:$0xff] %v1529_v14  ;;  %v1544_v19 = vld [vmem:[%s2620_s2 + $0x70] sm:$0xff]  ;;  %v1549_v20 = vld [vmem:[%s2620_s2 + $0x78] sm:$0xff] }
   0x9   :  { %2732 = vst [vmem:[#allocation16_spill] sm:$0xff] %v1534_v15  ;;  %2733 = vst [vmem:[#allocation17_spill] sm:$0xff] %v1539_v16 }
   0xa   :  { %2734 = vst [vmem:[#allocation18_spill] sm:$0xff] %v1544_v19  ;;  %2735 = vst [vmem:[#allocation19_spill] sm:$0xff] %v1549_v20 }
   0xb LB: > { %v2748_v6 = vld [vmem:[#allocation7_spill] sm:$0xff]  ;;  %v2749_v5 = vld [vmem:[#allocation6_spill] sm:$0xff]  ;;  %v2750_v4 = vld [vmem:[#allocation5_spill] sm:$0xff]  ;;  %2753 = vst [vmem:[#allocation20_spill] sm:$0xff] %v1428_v18  ;;  %v1435_v21 = vmov 1966171168   ;;  %v2754_v0 = vlaneseq  ;;  %v1428_v18 = vphi %v36_v18, %v2907_v18   ;;  %s1432_s22 = sphi %s1553_s22, %s42_s22  }
   0xc   : > { %v2736_v7 = vld [vmem:[#allocation8_spill] sm:$0xff]  ;;  %v2747_v8 = vld [vmem:[#allocation9_spill] sm:$0xff]  ;;  %v2752_v2 = vld [vmem:[#allocation3_spill] sm:$0xff]  ;;  %v46_v22 = vunpack.c.l.s4 %v1435_v21  ;;  %s1396_s2 = sshll.u32 %s1432_s22, 1 }
   0xd   : > { %v2745_v10 = vld [vmem:[#allocation11_spill] sm:$0xff]  ;;  %v2746_v9 = vld [vmem:[#allocation10_spill] sm:$0xff]  ;;  %v2751_v3 = vld [vmem:[#allocation4_spill] sm:$0xff]  ;;  %v1562_v23 = vshrl.u32 %v2754_v0, 7  ;;  %s686_s0 = scalar_lea.vmem %s2619_s1, %s1396_s2  ;;  %s1077_s27 = scalar_lea.vmem %s2621_s3, %s1396_s2 }
   0xe   : > { %v2743_v12 = vld [vmem:[#allocation13_spill] sm:$0xff]  ;;  %v2744_v11 = vld [vmem:[#allocation12_spill] sm:$0xff]  ;;  %v47_v24 = vunpack.c.0.s8 %v46_v22  ;;  %v687_v21 = vld [vmem:[%s686_s0] sm:$0x3] }
   0xf   : > { %v2741_v14 = vld [vmem:[#allocation15_spill] sm:$0xff]  ;;  %v2742_v13 = vld [vmem:[#allocation14_spill] sm:$0xff]  ;;  %2755 = vst [vmem:[#allocation21_spill] sm:$0xff] %v1562_v23  ;;  %v1567_v27 = vsub.s32 0, %v1562_v23 }
  0x10   : > { %v2739_v16 = vld [vmem:[#allocation17_spill] sm:$0xff]  ;;  %v2740_v15 = vld [vmem:[#allocation16_spill] sm:$0xff]  ;;  %v50_v25 = vsub.s32 %v47_v24, %v1562_v23  ;;  %v758_v24 = vsub.s32 1, %v1562_v23  ;;  %v2815_v1 = vld [vmem:[#allocation2_spill] sm:$0xff] }
  0x11   : > { %v2737_v20 = vld [vmem:[#allocation19_spill] sm:$0xff]  ;;  %v2738_v19 = vld [vmem:[#allocation18_spill] sm:$0xff]  ;;  %v1706_v22 = vrot.slane %v687_v21, %v1567_v27 }
  0x12   : > { %v51_v26 = vrot.slane %v1428_v18, %v50_v25 }
  0x14   : > { %v59_v28 = vrot.slane %v51_v26, %v50_v25  ;;  %v52_v41 = vcombine.high %v51_v26, %v51_v26 }
  0x16   : > { %v70_v29 = vrot.slane %v59_v28, %v1567_v27  ;;  %v66_v44 = vrot.slane %v52_v41, %v50_v25  ;;  %v1718_v25 = vrot.slane %v687_v21, %v758_v24 }
  0x18   : > { %v1571_v30 = vadd.f32 %v70_v29, %v2750_v4  ;;  %v1574_v31 = vadd.f32 %v70_v29, %v2752_v2  ;;  %v1579_v32 = vadd.f32 %v70_v29, %v2749_v5  ;;  %v1582_v33 = vadd.f32 %v70_v29, %v2751_v3 }
  0x19   : > { %v1587_v34 = vadd.f32 %v70_v29, %v2747_v8  ;;  %v1590_v35 = vadd.f32 %v70_v29, %v2748_v6  ;;  %v1594_v36 = vadd.f32 %v70_v29, %v2745_v10  ;;  %v1598_v37 = vadd.f32 %v70_v29, %v2746_v9 }
  0x1a   : > { %113 = vmax.xlane.f32.xlu1 %v1571_v30  ;;  %109 = vmax.xlane.f32.xlu0 %v1574_v31  ;;  %v1602_v38 = vadd.f32 %v70_v29, %v2743_v12  ;;  %v1606_v39 = vadd.f32 %v70_v29, %v2744_v11  ;;  %v1610_v40 = vadd.f32 %v70_v29, %v2741_v14 }
  0x1b   : > { %v1614_v42 = vadd.f32 %v70_v29, %v2742_v13  ;;  %v1618_v43 = vadd.f32 %v70_v29, %v2739_v16  ;;  %v1622_v45 = vadd.f32 %v70_v29, %v2740_v15  ;;  %v1626_v46 = vadd.f32 %v70_v29, %v2737_v20 }
  0x1c   : > { %v74_v47 = vrot.slane %v66_v44, %v1567_v27  ;;  %v1631_v48 = vadd.f32 %v70_v29, %v2738_v19 }
  0x1e   : > { %115 = vmax.xlane.f32.xlu1 %v1579_v32  ;;  %111 = vmax.xlane.f32.xlu0 %v1582_v33  ;;  %v1635_v49 = vadd.f32 %v74_v47, %v2751_v3  ;;  %v1639_v50 = vadd.f32 %v74_v47, %v2752_v2  ;;  %v1643_v51 = vadd.f32 %v74_v47, %v2749_v5 }
  0x1f   : > { %v1647_v52 = vadd.f32 %v74_v47, %v2750_v4  ;;  %v1651_v53 = vadd.f32 %v74_v47, %v2747_v8  ;;  %v1655_v54 = vadd.f32 %v74_v47, %v2748_v6  ;;  %v1659_v55 = vadd.f32 %v74_v47, %v2745_v10 }
  0x20   : > { %v1663_v56 = vadd.f32 %v74_v47, %v2746_v9  ;;  %v1667_v57 = vadd.f32 %v74_v47, %v2743_v12  ;;  %v1671_v58 = vadd.f32 %v74_v47, %v2744_v11  ;;  %v1675_v59 = vadd.f32 %v74_v47, %v2741_v14 }
  0x21   : > { %v1679_v60 = vadd.f32 %v74_v47, %v2742_v13  ;;  %v1683_v61 = vadd.f32 %v74_v47, %v2739_v16  ;;  %v1687_v62 = vadd.f32 %v74_v47, %v2740_v15  ;;  %v1691_v63 = vadd.f32 %v74_v47, %v2737_v20 }
  0x22   : > { %119 = vmax.xlane.f32.xlu1 %v1587_v34  ;;  %117 = vmax.xlane.f32.xlu0 %v1590_v35  ;;  %v1695_v17 = vadd.f32 %v74_v47, %v2738_v19 }
  0x26   : > { %123 = vmax.xlane.f32.xlu1 %v1594_v36  ;;  %121 = vmax.xlane.f32.xlu0 %v1598_v37 }
  0x2a   : > { %127 = vmax.xlane.f32.xlu1 %v1602_v38  ;;  %125 = vmax.xlane.f32.xlu0 %v1606_v39 }
  0x2e   : > { %131 = vmax.xlane.f32.xlu1 %v1610_v40  ;;  %129 = vmax.xlane.f32.xlu0 %v1614_v42 }
  0x32   : > { %135 = vmax.xlane.f32.xlu1 %v1618_v43  ;;  %133 = vmax.xlane.f32.xlu0 %v1622_v45 }
  0x36   : > { %139 = vmax.xlane.f32.xlu1 %v1626_v46  ;;  %137 = vmax.xlane.f32.xlu0 %v1631_v48 }
  0x3a   : > { %143 = vmax.xlane.f32.xlu1 %v1635_v49  ;;  %141 = vmax.xlane.f32.xlu0 %v1639_v50 }
  0x3e   : > { %147 = vmax.xlane.f32.xlu1 %v1643_v51  ;;  %145 = vmax.xlane.f32.xlu0 %v1647_v52 }
  0x42   : > { %151 = vmax.xlane.f32.xlu1 %v1651_v53  ;;  %149 = vmax.xlane.f32.xlu0 %v1655_v54 }
  0x46   : > { %155 = vmax.xlane.f32.xlu1 %v1659_v55  ;;  %153 = vmax.xlane.f32.xlu0 %v1663_v56 }
  0x4a   : > { %159 = vmax.xlane.f32.xlu1 %v1667_v57  ;;  %157 = vmax.xlane.f32.xlu0 %v1671_v58 }
  0x4e   : > { %163 = vmax.xlane.f32.xlu1 %v1675_v59  ;;  %161 = vmax.xlane.f32.xlu0 %v1679_v60 }
  0x52   : > { %167 = vmax.xlane.f32.xlu1 %v1683_v61  ;;  %165 = vmax.xlane.f32.xlu0 %v1687_v62 }
  0x56   : > { %171 = vmax.xlane.f32.xlu1 %v1691_v63  ;;  %169 = vmax.xlane.f32.xlu0 %v1695_v17 }
  0x67   : > { %698 = vbcast.lane.b32.xlu1 %v1706_v22, 264 }
  0x6b   : > { %702 = vbcast.lane.b32.xlu1 %v1706_v22, 272 }
  0x6f   : > { %706 = vbcast.lane.b32.xlu1 %v1706_v22, 280 }
  0x73   : > { %714 = vbcast.lane.b32.xlu1 %v1706_v22, 296 }
  0x77   : > { %722 = vbcast.lane.b32.xlu1 %v1706_v22, 312 }
  0x7b   : > { %730 = vbcast.lane.b32.xlu1 %v1706_v22, 328 }
  0x7f   : > { %738 = vbcast.lane.b32.xlu1 %v1706_v22, 344 }
  0x83   : > { %746 = vbcast.lane.b32.xlu1 %v1706_v22, 360 }
  0x87   : > { %754 = vbcast.lane.b32.xlu1 %v1706_v22, 376 }
  0x8b   : > { %765 = vbcast.lane.b32.xlu1 %v1718_v25, 264 }
  0x8f   : > { %773 = vbcast.lane.b32.xlu1 %v1718_v25, 280 }
  0x93   : > { %781 = vbcast.lane.b32.xlu1 %v1718_v25, 296 }
  0x97   : > { %789 = vbcast.lane.b32.xlu1 %v1718_v25, 312 }
  0x9b   : > { %797 = vbcast.lane.b32.xlu1 %v1718_v25, 328 }
  0x9f   : > { %805 = vbcast.lane.b32.xlu1 %v1718_v25, 344 }
  0xa3   : > { %813 = vbcast.lane.b32.xlu1 %v1718_v25, 360 }
  0xa7   : > { %v1727_v26 = vpop.xlane.xlu1 %113  ;;  %v1729_v27 = vpop.xlane.xlu0 %109  ;;  %821 = vbcast.lane.b32.xlu1 %v1718_v25, 376 }
  0xa8   : > { %vm173_vm1 = vcmp.eq.f32.partialorder %v1574_v31, %v1729_v27  ;;  %vm175_vm2 = vcmp.eq.f32.partialorder %v1571_v30, %v1727_v26 }
  0xa9   : > { %v1737_v28 = vsel %vm173_vm1, %v2736_v7, 128  ;;  %v1745_v47 = vsel %vm175_vm2, %v2736_v7, 128 }
  0xaa   : > { %2756 = vst [vmem:[#allocation22_spill] sm:$0xff] %v1737_v28  ;;  %v238_v29 = vshra.s32 %v1737_v28, 16  ;;  %2757 = vst [vmem:[#allocation23_spill] sm:$0xff] %v1745_v47  ;;  %v266_v24 = vshra.s32 %v1745_v47, 16 }
  0xab   : > { %v1740_v41 = vpop.xlane.xlu1 %115  ;;  %v1742_v44 = vpop.xlane.xlu0 %111 }
  0xac   : > { %v1747_v21 = vcvt.s32.f32 %v238_v29  ;;  %vm174_vm3 = vcmp.eq.f32.partialorder %v1582_v33, %v1742_v44  ;;  %vm176_vm4 = vcmp.eq.f32.partialorder %v1579_v32, %v1740_v41  ;;  %v1769_v32 = vcvt.s32.f32 %v266_v24 }
  0xad   : > { %v1754_v30 = vsel %vm174_vm3, %v2736_v7, 128  ;;  %v1762_v29 = vsel %vm176_vm4, %v2736_v7, 128 }
  0xae   : > { %2758 = vst [vmem:[#allocation24_spill] sm:$0xff] %v1747_v21  ;;  %2759 = vst [vmem:[#allocation25_spill] sm:$0xff] %v1754_v30  ;;  %241 = vmin.xlane.f32.xlu0 %v1747_v21  ;;  %v252_v31 = vshra.s32 %v1754_v30, 16  ;;  %v280_v33 = vshra.s32 %v1762_v29, 16 }
  0xaf   : > { %v1759_v0 = vpop.xlane.xlu0 %117  ;;  %2760 = vst [vmem:[#allocation26_spill] sm:$0xff] %v1762_v29  ;;  %2762 = vst [vmem:[#allocation28_spill] sm:$0xff] %v1769_v32  ;;  %v1772_v3 = vpop.xlane.xlu1 %119 }
  0xb0   : > { %v1764_v2 = vcvt.s32.f32 %v252_v31  ;;  %vm177_vm5 = vcmp.eq.f32.partialorder %v1590_v35, %v1759_v0  ;;  %vm178_vm6 = vcmp.eq.f32.partialorder %v1587_v34, %v1772_v3  ;;  %v1782_v31 = vcvt.s32.f32 %v280_v33 }
  0xb1   : > { %v1775_v4 = vsel %vm177_vm5, %v2736_v7, 128  ;;  %v1786_v24 = vsel %vm178_vm6, %v2736_v7, 128 }
  0xb2   : > { %2761 = vst [vmem:[#allocation27_spill] sm:$0xff] %v1764_v2  ;;  %255 = vmin.xlane.f32.xlu0 %v1764_v2  ;;  %2763 = vst [vmem:[#allocation29_spill] sm:$0xff] %v1775_v4  ;;  %v294_v35 = vshra.s32 %v1775_v4, 16  ;;  %v308_v34 = vshra.s32 %v1786_v24, 16 }
  0xb3   : > { %v1779_v5 = vpop.xlane.xlu0 %121  ;;  %2764 = vst [vmem:[#allocation30_spill] sm:$0xff] %v1782_v31  ;;  %2765 = vst [vmem:[#allocation31_spill] sm:$0xff] %v1786_v24  ;;  %v1794_v8 = vpop.xlane.xlu1 %123 }
  0xb4   : > { %vm179_vm7 = vcmp.eq.f32.partialorder %v1598_v37, %v1779_v5  ;;  %v1791_v6 = vcvt.s32.f32 %v294_v35  ;;  %vm180_vm8 = vcmp.eq.f32.partialorder %v1594_v36, %v1794_v8  ;;  %v1804_v10 = vcvt.s32.f32 %v308_v34 }
  0xb5   : > { %v1797_v9 = vsel %vm179_vm7, %v2736_v7, 128  ;;  %v1808_v35 = vsel %vm180_vm8, %v2736_v7, 128 }
  0xb6   : > { %269 = vmin.xlane.f32.xlu0 %v1769_v32  ;;  %2766 = vst [vmem:[#allocation32_spill] sm:$0xff] %v1791_v6  ;;  %2767 = vst [vmem:[#allocation33_spill] sm:$0xff] %v1797_v9  ;;  %v322_v37 = vshra.s32 %v1797_v9, 16  ;;  %v336_v36 = vshra.s32 %v1808_v35, 16 }
  0xb7   : > { %v1801_v33 = vpop.xlane.xlu0 %125  ;;  %2768 = vst [vmem:[#allocation34_spill] sm:$0xff] %v1804_v10  ;;  %2769 = vst [vmem:[#allocation35_spill] sm:$0xff] %v1808_v35  ;;  %v1816_v12 = vpop.xlane.xlu1 %127 }
  0xb8   : > { %vm181_vm9 = vcmp.eq.f32.partialorder %v1606_v39, %v1801_v33  ;;  %v1813_v11 = vcvt.s32.f32 %v322_v37  ;;  %vm182_vm10 = vcmp.eq.f32.partialorder %v1602_v38, %v1816_v12  ;;  %v1826_v14 = vcvt.s32.f32 %v336_v36 }
  0xb9   : > { %v1819_v13 = vsel %vm181_vm9, %v2736_v7, 128  ;;  %v1830_v37 = vsel %vm182_vm10, %v2736_v7, 128 }
  0xba   : > { %283 = vmin.xlane.f32.xlu0 %v1782_v31  ;;  %2770 = vst [vmem:[#allocation36_spill] sm:$0xff] %v1813_v11  ;;  %2771 = vst [vmem:[#allocation37_spill] sm:$0xff] %v1819_v13  ;;  %v350_v39 = vshra.s32 %v1819_v13, 16  ;;  %v364_v38 = vshra.s32 %v1830_v37, 16 }
  0xbb   : > { %v1823_v34 = vpop.xlane.xlu0 %129  ;;  %2772 = vst [vmem:[#allocation38_spill] sm:$0xff] %v1826_v14  ;;  %2773 = vst [vmem:[#allocation39_spill] sm:$0xff] %v1830_v37  ;;  %v1838_v16 = vpop.xlane.xlu1 %131 }
  0xbc   : > { %vm183_vm11 = vcmp.eq.f32.partialorder %v1614_v42, %v1823_v34  ;;  %v1835_v15 = vcvt.s32.f32 %v350_v39  ;;  %vm184_vm12 = vcmp.eq.f32.partialorder %v1610_v40, %v1838_v16  ;;  %v1848_v20 = vcvt.s32.f32 %v364_v38 }
  0xbd   : > { %v1841_v19 = vsel %vm183_vm11, %v2736_v7, 128  ;;  %v1852_v39 = vsel %vm184_vm12, %v2736_v7, 128 }
  0xbe   : > { %297 = vmin.xlane.f32.xlu0 %v1791_v6  ;;  %2774 = vst [vmem:[#allocation40_spill] sm:$0xff] %v1835_v15  ;;  %2775 = vst [vmem:[#allocation41_spill] sm:$0xff] %v1841_v19  ;;  %v378_v42 = vshra.s32 %v1841_v19, 16  ;;  %v392_v40 = vshra.s32 %v1852_v39, 16 }
  0xbf   : > { %v1845_v36 = vpop.xlane.xlu0 %133  ;;  %2777 = vst [vmem:[#allocation43_spill] sm:$0xff] %v1848_v20  ;;  %2778 = vst [vmem:[#allocation44_spill] sm:$0xff] %v1852_v39  ;;  %v1860_v23 = vpop.xlane.xlu1 %135 }
  0xc0   : > { %2776 = vst [vmem:[#allocation42_spill] sm:$0xff] %v1845_v36  ;;  %vm185_vm13 = vcmp.eq.f32.partialorder %v1622_v45, %v1845_v36  ;;  %v1857_v18 = vcvt.s32.f32 %v378_v42  ;;  %2780 = vst [vmem:[#allocation46_spill] sm:$0xff] %v1860_v23  ;;  %vm186_vm14 = vcmp.eq.f32.partialorder %v1618_v43, %v1860_v23  ;;  %v1870_v19 = vcvt.s32.f32 %v392_v40 }
  0xc1   : > { %v1863_v37 = vsel %vm185_vm13, %v2736_v7, 128  ;;  %v1874_v42 = vsel %vm186_vm14, %v2736_v7, 128 }
  0xc2   : > { %311 = vmin.xlane.f32.xlu0 %v1804_v10  ;;  %2779 = vst [vmem:[#allocation45_spill] sm:$0xff] %v1857_v18  ;;  %2781 = vst [vmem:[#allocation47_spill] sm:$0xff] %v1863_v37  ;;  %v406_v45 = vshra.s32 %v1863_v37, 16  ;;  %v420_v43 = vshra.s32 %v1874_v42, 16 }
  0xc3   : > { %v1867_v38 = vpop.xlane.xlu0 %137  ;;  %2783 = vst [vmem:[#allocation49_spill] sm:$0xff] %v1870_v19  ;;  %2784 = vst [vmem:[#allocation50_spill] sm:$0xff] %v1874_v42 }
  0xc4   : > { %2782 = vst [vmem:[#allocation48_spill] sm:$0xff] %v1867_v38  ;;  %vm187_vm15 = vcmp.eq.f32.partialorder %v1631_v48, %v1867_v38  ;;  %v1879_v39 = vcvt.s32.f32 %v406_v45  ;;  %v1892_v37 = vcvt.s32.f32 %v420_v43 }
  0xc6   : > { %325 = vmin.xlane.f32.xlu0 %v1813_v11  ;;  %2785 = vst [vmem:[#allocation51_spill] sm:$0xff] %v1879_v39  ;;  %2787 = vst [vmem:[#allocation53_spill] sm:$0xff] %v1892_v37 }
  0xc7   : > { %v1889_v40 = vpop.xlane.xlu0 %141 }
  0xc8   : > { %vm189_vm1 = vcmp.eq.f32.partialorder %v1639_v50, %v1889_v40 }
  0xca   : > { %339 = vmin.xlane.f32.xlu0 %v1826_v14 }
  0xcb   : > { %v1911_v43 = vpop.xlane.xlu0 %145 }
  0xcc   : > { %vm191_vm3 = vcmp.eq.f32.partialorder %v1647_v52, %v1911_v43 }
  0xcd   : > { %v1929_v14 = vsel %vm191_vm3, %v2736_v7, 128 }
  0xce   : > { %353 = vmin.xlane.f32.xlu0 %v1835_v15  ;;  %v490_v52 = vshra.s32 %v1929_v14, 16 }
  0xd0   : > { %v1945_v11 = vcvt.s32.f32 %v490_v52 }
  0xd2   : > { %367 = vmin.xlane.f32.xlu0 %v1848_v20  ;;  %v1882_v20 = vpop.xlane.xlu1 %139 }
  0xd3   : > { %2786 = vst [vmem:[#allocation52_spill] sm:$0xff] %v1882_v20  ;;  %vm188_vm0 = vcmp.eq.f32.partialorder %v1626_v46, %v1882_v20 }
  0xd4   : > { %v1896_v45 = vsel %vm188_vm0, %v2736_v7, 128 }
  0xd5   : > { %v448_v46 = vshra.s32 %v1896_v45, 16 }
  0xd6   : > { %381 = vmin.xlane.f32.xlu0 %v1857_v18  ;;  %v1885_v18 = vsel %vm187_vm15, %v2736_v7, 128 }
  0xd7   : > { %v434_v48 = vshra.s32 %v1885_v18, 16  ;;  %v1914_v15 = vcvt.s32.f32 %v448_v46  ;;  %v1933_v46 = vpop.xlane.xlu0 %149 }
  0xd8   : > { %2788 = vst [vmem:[#allocation54_spill] sm:$0xff] %v1933_v46  ;;  %vm193_vm5 = vcmp.eq.f32.partialorder %v1655_v54, %v1933_v46 }
  0xd9   : > { %v1901_v42 = vcvt.s32.f32 %v434_v48  ;;  %v1951_v10 = vsel %vm193_vm5, %v2736_v7, 128 }
  0xda   : > { %395 = vmin.xlane.f32.xlu0 %v1870_v19  ;;  %v1904_v19 = vpop.xlane.xlu1 %143  ;;  %v518_v54 = vshra.s32 %v1951_v10, 16 }
  0xdb   : > { %vm190_vm2 = vcmp.eq.f32.partialorder %v1635_v49, %v1904_v19 }
  0xdc   : > { %v1918_v48 = vsel %vm190_vm2, %v2736_v7, 128  ;;  %v1967_v6 = vcvt.s32.f32 %v518_v54 }
  0xdd   : > { %v476_v49 = vshra.s32 %v1918_v48, 16 }
  0xde   : > { %409 = vmin.xlane.f32.xlu0 %v1879_v39  ;;  %v1907_v39 = vsel %vm189_vm1, %v2736_v7, 128  ;;  %v1926_v13 = vpop.xlane.xlu1 %147 }
  0xdf   : > { %v462_v50 = vshra.s32 %v1907_v39, 16  ;;  %vm192_vm4 = vcmp.eq.f32.partialorder %v1643_v51, %v1926_v13  ;;  %v1936_v35 = vcvt.s32.f32 %v476_v49  ;;  %v1955_v49 = vpop.xlane.xlu0 %153 }
  0xe0   : > { %2789 = vst [vmem:[#allocation55_spill] sm:$0xff] %v1955_v49  ;;  %vm195_vm7 = vcmp.eq.f32.partialorder %v1663_v56, %v1955_v49 }
  0xe1   : > { %v1973_v31 = vsel %vm195_vm7, %v2736_v7, 128 }
  0xe2   : > { %423 = vmin.xlane.f32.xlu0 %v1892_v37  ;;  %v1923_v37 = vcvt.s32.f32 %v462_v50  ;;  %v1940_v50 = vsel %vm192_vm4, %v2736_v7, 128  ;;  %v1948_v9 = vpop.xlane.xlu1 %151  ;;  %v546_v29 = vshra.s32 %v1973_v31, 16 }
  0xe3   : > { %v504_v51 = vshra.s32 %v1940_v50, 16  ;;  %vm194_vm6 = vcmp.eq.f32.partialorder %v1651_v53, %v1948_v9  ;;  %v1979_v56 = vpop.xlane.xlu0 %157 }
  0xe4   : > { %v1962_v52 = vsel %vm194_vm6, %v2736_v7, 128  ;;  %2791 = vst [vmem:[#allocation57_spill] sm:$0xff] %v1979_v56  ;;  %vm197_vm9 = vcmp.eq.f32.partialorder %v1671_v58, %v1979_v56 }
  0xe5   : > { %v1958_v24 = vcvt.s32.f32 %v504_v51  ;;  %v532_v53 = vshra.s32 %v1962_v52, 16  ;;  %v2666_v51 = vmov 0   ;;  %v1997_v47 = vsel %vm197_vm9, %v2736_v7, 128 }
  0xe6   : > { %437 = vmin.xlane.f32.xlu0 %v1901_v42  ;;  %v1970_v4 = vpop.xlane.xlu1 %155  ;;  %1417 = vset.pattern.permute.xlu1 %v2666_v51  ;;  %v574_v58 = vshra.s32 %v1997_v47, 16 }
  0xe7   : > { %2790 = vst [vmem:[#allocation56_spill] sm:$0xff] %v1970_v4  ;;  %1416 = vset.pattern.permute.xlu0 %v2666_v51  ;;  %vm196_vm8 = vcmp.eq.f32.partialorder %v1659_v55, %v1970_v4  ;;  %v1982_v54 = vcvt.s32.f32 %v532_v53  ;;  %v1991_v51 = vcvt.s32.f32 %v546_v29  ;;  %v2001_v53 = vpop.xlane.xlu0 %161 }
  0xe8   : > { %v1986_v32 = vsel %vm196_vm8, %v2736_v7, 128  ;;  %2793 = vst [vmem:[#allocation59_spill] sm:$0xff] %v2001_v53  ;;  %vm199_vm11 = vcmp.eq.f32.partialorder %v1679_v60, %v2001_v53  ;;  %v2013_v30 = vcvt.s32.f32 %v574_v58 }
  0xe9   : > { %v560_v55 = vshra.s32 %v1986_v32, 16  ;;  %v2019_v21 = vsel %vm199_vm11, %v2736_v7, 128 }
  0xea   : > { %451 = vmin.xlane.f32.xlu0 %v1914_v15  ;;  %v1994_v4 = vpop.xlane.xlu1 %159  ;;  %v602_v60 = vshra.s32 %v2019_v21, 16 }
  0xeb   : > { %2792 = vst [vmem:[#allocation58_spill] sm:$0xff] %v1994_v4  ;;  %vm198_vm10 = vcmp.eq.f32.partialorder %v1667_v57, %v1994_v4  ;;  %v2004_v2 = vcvt.s32.f32 %v560_v55  ;;  %v2023_v55 = vpop.xlane.xlu0 %165 }
  0xec   : > { %v2008_v29 = vsel %vm198_vm10, %v2736_v7, 128  ;;  %2795 = vst [vmem:[#allocation61_spill] sm:$0xff] %v2023_v55  ;;  %vm201_vm13 = vcmp.eq.f32.partialorder %v1687_v62, %v2023_v55  ;;  %v2035_v20 = vcvt.s32.f32 %v602_v60 }
  0xed   : > { %v588_v57 = vshra.s32 %v2008_v29, 16  ;;  %v2041_v38 = vsel %vm201_vm13, %v2736_v7, 128 }
  0xee   : > { %465 = vmin.xlane.f32.xlu0 %v1923_v37  ;;  %v2016_v4 = vpop.xlane.xlu1 %163  ;;  %v630_v62 = vshra.s32 %v2041_v38, 16 }
  0xef   : > { %2794 = vst [vmem:[#allocation60_spill] sm:$0xff] %v2016_v4  ;;  %vm200_vm12 = vcmp.eq.f32.partialorder %v1675_v59, %v2016_v4  ;;  %v2026_v28 = vcvt.s32.f32 %v588_v57  ;;  %v2045_v57 = vpop.xlane.xlu0 %169 }
  0xf0   : > { %v2030_v58 = vsel %vm200_vm12, %v2736_v7, 128  ;;  %2797 = vst [vmem:[#allocation63_spill] sm:$0xff] %v2045_v57  ;;  %vm203_vm15 = vcmp.eq.f32.partialorder %v1695_v17, %v2045_v57  ;;  %v2057_v55 = vcvt.s32.f32 %v630_v62 }
  0xf1   : > { %v616_v59 = vshra.s32 %v2030_v58, 16  ;;  %v2063_v36 = vsel %vm203_vm15, %v2736_v7, 128 }
  0xf2   : > { %479 = vmin.xlane.f32.xlu0 %v1936_v35  ;;  %v2038_v4 = vpop.xlane.xlu1 %167  ;;  %v658_v17 = vshra.s32 %v2063_v36, 16 }
  0xf3   : > { %2796 = vst [vmem:[#allocation62_spill] sm:$0xff] %v2038_v4  ;;  %vm202_vm14 = vcmp.eq.f32.partialorder %v1683_v61, %v2038_v4  ;;  %v2048_v23 = vcvt.s32.f32 %v616_v59 }
  0xf4   : > { %v2052_v60 = vsel %vm202_vm14, %v2736_v7, 128  ;;  %v2075_v62 = vcvt.s32.f32 %v658_v17 }
  0xf5   : > { %v644_v61 = vshra.s32 %v2052_v60, 16 }
  0xf6   : > { %493 = vmin.xlane.f32.xlu0 %v1945_v11  ;;  %v2060_v4 = vpop.xlane.xlu1 %171 }
  0xf7   : > { %2798 = vst [vmem:[#allocation64_spill] sm:$0xff] %v2060_v4  ;;  %vm204_vm0 = vcmp.eq.f32.partialorder %v1691_v63, %v2060_v4  ;;  %v2068_v59 = vcvt.s32.f32 %v644_v61 }
  0xf8   : > { %v2072_v57 = vsel %vm204_vm0, %v2736_v7, 128 }
  0xf9   : > { %v672_v53 = vshra.s32 %v2072_v57, 16 }
  0xfa   : > { %507 = vmin.xlane.f32.xlu0 %v1958_v24 }
  0xfb   : > { %v2079_v56 = vcvt.s32.f32 %v672_v53 }
  0xfe   : > { %521 = vmin.xlane.f32.xlu0 %v1967_v6 }
 0x102   : > { %535 = vmin.xlane.f32.xlu0 %v1982_v54 }
 0x106   : > { %549 = vmin.xlane.f32.xlu0 %v1991_v51 }
 0x10a   : > { %563 = vmin.xlane.f32.xlu0 %v2004_v2 }
 0x10e   : > { %577 = vmin.xlane.f32.xlu0 %v2013_v30 }
 0x112   : > { %591 = vmin.xlane.f32.xlu0 %v2026_v28 }
 0x116   : > { %605 = vmin.xlane.f32.xlu0 %v2035_v20 }
 0x11a   : > { %619 = vmin.xlane.f32.xlu0 %v2048_v23 }
 0x11e   : > { %633 = vmin.xlane.f32.xlu0 %v2057_v55 }
 0x122   : > { %647 = vmin.xlane.f32.xlu0 %v2068_v59 }
 0x126   : > { %661 = vmin.xlane.f32.xlu0 %v2075_v62 }
 0x12a   : > { %675 = vmin.xlane.f32.xlu0 %v2079_v56 }
 0x13b   : > { %v2082_v63 = vpop.xlane.xlu0 %241 }
 0x13c   : > { %2799 = vst [vmem:[#allocation65_spill] sm:$0xff] %v2082_v63 }
 0x13f   : > { %v2084_v61 = vpop.xlane.xlu0 %255 }
 0x140   : > { %2800 = vst [vmem:[#allocation66_spill] sm:$0xff] %v2084_v61  ;;  %694 = vbcast.lane.b32.xlu0 %v1706_v22, 256 }
 0x143   : > { %v2087_v4 = vpop.xlane.xlu0 %269 }
 0x144   : > { %2801 = vst [vmem:[#allocation67_spill] sm:$0xff] %v2087_v4  ;;  %710 = vbcast.lane.b32.xlu0 %v1706_v22, 288 }
 0x147   : > { %v2090_v17 = vpop.xlane.xlu0 %283 }
 0x148   : > { %2802 = vst [vmem:[#allocation68_spill] sm:$0xff] %v2090_v17  ;;  %718 = vbcast.lane.b32.xlu0 %v1706_v22, 304 }
 0x14b   : > { %v2093_v7 = vpop.xlane.xlu0 %297 }
 0x14c   : > { %2803 = vst [vmem:[#allocation69_spill] sm:$0xff] %v2093_v7  ;;  %726 = vbcast.lane.b32.xlu0 %v1706_v22, 320 }
 0x14f   : > { %v2096_v53 = vpop.xlane.xlu0 %311 }
 0x150   : > { %2804 = vst [vmem:[#allocation70_spill] sm:$0xff] %v2096_v53  ;;  %734 = vbcast.lane.b32.xlu0 %v1706_v22, 336 }
 0x153   : > { %v2099_v63 = vpop.xlane.xlu0 %325 }
 0x154   : > { %2805 = vst [vmem:[#allocation71_spill] sm:$0xff] %v2099_v63  ;;  %742 = vbcast.lane.b32.xlu0 %v1706_v22, 352 }
 0x157   : > { %v2102_v61 = vpop.xlane.xlu0 %339 }
 0x158   : > { %2806 = vst [vmem:[#allocation72_spill] sm:$0xff] %v2102_v61  ;;  %750 = vbcast.lane.b32.xlu0 %v1706_v22, 368  ;;  %v433_v22 = vand.u32 65535, %v1885_v18  ;;  %v461_v18 = vand.u32 65535, %v1907_v39 }
 0x15a   : > { %v435_v49 = vcvt.s32.f32 %v433_v22  ;;  %v2816_v22 = vmov 0  }
 0x15b   : > { %v2105_v17 = vpop.xlane.xlu0 %353 }
 0x15c   : > { %2807 = vst [vmem:[#allocation73_spill] sm:$0xff] %v2105_v17  ;;  %761 = vbcast.lane.b32.xlu0 %v1718_v25, 256 }
 0x15f   : > { %v2108_v7 = vpop.xlane.xlu0 %367 }
 0x160   : > { %2808 = vst [vmem:[#allocation74_spill] sm:$0xff] %v2108_v7  ;;  %769 = vbcast.lane.b32.xlu0 %v1718_v25, 272  ;;  %v447_v7 = vand.u32 65535, %v1896_v45 }
 0x162   : > { %v449_v45 = vcvt.s32.f32 %v447_v7 }
 0x163   : > { %v2111_v53 = vpop.xlane.xlu0 %381 }
 0x164   : > { %2809 = vst [vmem:[#allocation75_spill] sm:$0xff] %v2111_v53  ;;  %777 = vbcast.lane.b32.xlu0 %v1718_v25, 288  ;;  %v1079_v53 = vstv %s1432_s22  ;;  %s42_s22 = sadd.s32 1, %s1432_s22  }
 0x165   : > { %vm1080_vm2 = vcmp.lt.s32.totalorder %v1079_v53, %v2815_v1  ;;  %v463_v53 = vcvt.s32.f32 %v461_v18  ;;  %v503_v18 = vand.u32 65535, %v1940_v50  ;;  %v531_v50 = vand.u32 65535, %v1962_v52  ;;  %p39_p0 = scmp.ge.s32.totalorder %s42_s22, 8  }
 0x166   : > { %v559_v52 = vand.u32 65535, %v1986_v32  ;;  %v587_v32 = vand.u32 65535, %v2008_v29  ;;  %v615_v29 = vand.u32 65535, %v2030_v58  ;;  %v643_v58 = vand.u32 65535, %v2052_v60 }
 0x167   : > { %v2114_v63 = vpop.xlane.xlu0 %395 }
 0x168   : > { %2810 = vst [vmem:[#allocation76_spill] sm:$0xff] %v2114_v63  ;;  %785 = vbcast.lane.b32.xlu0 %v1718_v25, 304 }
 0x16b   : > { %v2117_v61 = vpop.xlane.xlu0 %409 }
 0x16c   : > { %2811 = vst [vmem:[#allocation77_spill] sm:$0xff] %v2117_v61  ;;  %793 = vbcast.lane.b32.xlu0 %v1718_v25, 320  ;;  %v2131_v61 = vpop.permute.xlu1 %698 }
 0x16f   : > { %v2121_v17 = vpop.xlane.xlu0 %423 }
 0x170   : > { %2812 = vst [vmem:[#allocation78_spill] sm:$0xff] %v2121_v17  ;;  %801 = vbcast.lane.b32.xlu0 %v1718_v25, 336  ;;  %v703_v46 = vpop.permute.xlu1 %702 }
 0x173   : > { %v2125_v4 = vpop.xlane.xlu0 %437 }
 0x174   : > { %2813 = vst [vmem:[#allocation79_spill] sm:$0xff] %v2125_v4  ;;  %vm439_vm1 = vcmp.eq.f32.partialorder %v1901_v42, %v2125_v4  ;;  %809 = vbcast.lane.b32.xlu0 %v1718_v25, 352  ;;  %v1081_v42 = vsel %vm1080_vm2, 1, %v2816_v22 }
 0x175   : > { %v2133_v63 = vsel %vm439_vm1, %v435_v49, inf  ;;  %v475_v49 = vand.u32 65535, %v1918_v48 }
 0x176   : > { %2814 = vst [vmem:[#allocation80_spill] sm:$0xff] %v2133_v63 }
 0x177   : > { %v2137_v17 = vpop.xlane.xlu0 %451 }
 0x178   : > { %vm453_vm3 = vcmp.eq.f32.partialorder %v1914_v15, %v2137_v17  ;;  %817 = vbcast.lane.b32.xlu0 %v1718_v25, 368  ;;  %v857_v15 = vadd.f32 %v703_v46, %v1727_v26  ;;  %v489_v25 = vand.u32 65535, %v1929_v14  ;;  %v517_v14 = vand.u32 65535, %v1951_v10 }
 0x179   : > { %v2143_v4 = vsel %vm453_vm3, %v449_v45, inf  ;;  %v477_v45 = vcvt.s32.f32 %v475_v49  ;;  %v545_v10 = vand.u32 65535, %v1973_v31  ;;  %v573_v31 = vand.u32 65535, %v1997_v47 }
 0x17a   : > { %v601_v47 = vand.u32 65535, %v2019_v21  ;;  %v629_v21 = vand.u32 65535, %v2041_v38  ;;  %v657_v38 = vand.u32 65535, %v2063_v36 }
 0x17b   : > { %v2146_v63 = vpop.xlane.xlu0 %465 }
 0x17c   : > { %vm467_vm4 = vcmp.eq.f32.partialorder %v1923_v37, %v2146_v63  ;;  %1083 = vperm.xlu0 %1416, %v1081_v42   ;;  %v491_v37 = vcvt.s32.f32 %v489_v25  ;;  %v505_v42 = vcvt.s32.f32 %v503_v18  ;;  %v533_v25 = vcvt.s32.f32 %v531_v50 }
 0x17d   : > { %v2150_v7 = vsel %vm467_vm4, %v463_v53, inf  ;;  %v519_v53 = vcvt.s32.f32 %v517_v14  ;;  %v547_v18 = vcvt.s32.f32 %v545_v10  ;;  %v561_v14 = vcvt.s32.f32 %v559_v52 }
 0x17e   : > { %v575_v50 = vcvt.s32.f32 %v573_v31  ;;  %v589_v10 = vcvt.s32.f32 %v587_v32  ;;  %v603_v52 = vcvt.s32.f32 %v601_v47 }
 0x17f   : > { %v2154_v39 = vpop.xlane.xlu0 %479 }
 0x180   : > { %vm481_vm5 = vcmp.eq.f32.partialorder %v1936_v35, %v2154_v39  ;;  %1125 = vperm.xlu0 %1416, %v857_v15  }
 0x181   : > { %v2158_v48 = vsel %vm481_vm5, %v477_v45, inf }
 0x183   : > { %v2161_v22 = vpop.xlane.xlu0 %493 }
 0x184   : > { %vm495_vm6 = vcmp.eq.f32.partialorder %v1945_v11, %v2161_v22 }
 0x185   : > { %v2165_v26 = vsel %vm495_vm6, %v491_v37, inf }
 0x187   : > { %v2168_v46 = vpop.xlane.xlu0 %507 }
 0x188   : > { %2817 = vst [vmem:[#allocation81_spill] sm:$0xff] %v2168_v46  ;;  %vm509_vm7 = vcmp.eq.f32.partialorder %v1958_v24, %v2168_v46 }
 0x189   : > { %v2172_v35 = vsel %vm509_vm7, %v505_v42, inf }
 0x18b   : > { %v2175_v49 = vpop.xlane.xlu0 %521 }
 0x18c   : > { %2818 = vst [vmem:[#allocation82_spill] sm:$0xff] %v2175_v49  ;;  %vm523_vm8 = vcmp.eq.f32.partialorder %v1967_v6, %v2175_v49 }
 0x18d   : > { %v2179_v11 = vsel %vm523_vm8, %v519_v53, inf }
 0x18f   : > { %v2182_v15 = vpop.xlane.xlu0 %535 }
 0x190   : > { %2819 = vst [vmem:[#allocation83_spill] sm:$0xff] %v2182_v15  ;;  %vm537_vm9 = vcmp.eq.f32.partialorder %v1982_v54, %v2182_v15 }
 0x191   : > { %v2186_v24 = vsel %vm537_vm9, %v533_v25, inf }
 0x193   : > { %v2189_v45 = vpop.xlane.xlu0 %549 }
 0x194   : > { %2820 = vst [vmem:[#allocation84_spill] sm:$0xff] %v2189_v45  ;;  %vm551_vm10 = vcmp.eq.f32.partialorder %v1991_v51, %v2189_v45 }
 0x195   : > { %v2193_v6 = vsel %vm551_vm10, %v547_v18, inf  ;;  %v707_v18 = vpop.permute.xlu1 %706 }
 0x197   : > { %v2196_v37 = vpop.xlane.xlu0 %563 }
 0x198   : > { %2821 = vst [vmem:[#allocation85_spill] sm:$0xff] %v2196_v37  ;;  %vm565_vm11 = vcmp.eq.f32.partialorder %v2004_v2, %v2196_v37 }
 0x199   : > { %v2200_v54 = vsel %vm565_vm11, %v561_v14, inf  ;;  %v617_v14 = vcvt.s32.f32 %v615_v29  ;;  %v645_v29 = vcvt.s32.f32 %v643_v58 }
 0x19b   : > { %v2203_v42 = vpop.xlane.xlu0 %577 }
 0x19c   : > { %2822 = vst [vmem:[#allocation86_spill] sm:$0xff] %v2203_v42  ;;  %vm579_vm12 = vcmp.eq.f32.partialorder %v2013_v30, %v2203_v42 }
 0x19d   : > { %v2207_v51 = vsel %vm579_vm12, %v575_v50, inf  ;;  %v631_v50 = vcvt.s32.f32 %v629_v21 }
 0x19f   : > { %v2210_v53 = vpop.xlane.xlu0 %591 }
 0x1a0   : > { %2823 = vst [vmem:[#allocation87_spill] sm:$0xff] %v2210_v53  ;;  %vm593_vm13 = vcmp.eq.f32.partialorder %v2026_v28, %v2210_v53 }
 0x1a1   : > { %v2214_v2 = vsel %vm593_vm13, %v589_v10, inf }
 0x1a3   : > { %v2217_v25 = vpop.xlane.xlu0 %605 }
 0x1a4   : > { %2824 = vst [vmem:[#allocation88_spill] sm:$0xff] %v2217_v25  ;;  %vm607_vm14 = vcmp.eq.f32.partialorder %v2035_v20, %v2217_v25  ;;  %v715_v20 = vpop.permute.xlu1 %714 }
 0x1a5   : > { %v2221_v30 = vsel %vm607_vm14, %v603_v52, inf  ;;  %v671_v52 = vand.u32 65535, %v2072_v57 }
 0x1a7   : > { %v2224_v31 = vpop.xlane.xlu0 %619 }
 0x1a8   : > { %2825 = vst [vmem:[#allocation89_spill] sm:$0xff] %v2224_v31  ;;  %vm621_vm15 = vcmp.eq.f32.partialorder %v2048_v23, %v2224_v31  ;;  %v723_v60 = vpop.permute.xlu1 %722  ;;  %v2882_v31 = vld [vmem:[#allocation21_spill] sm:$0xff] }
 0x1a9   : > { %v2228_v28 = vsel %vm621_vm15, %v617_v14, inf  ;;  %v659_v14 = vcvt.s32.f32 %v657_v38 }
 0x1ab   : > { %v2231_v32 = vpop.xlane.xlu0 %633 }
 0x1ac   : > { %2826 = vst [vmem:[#allocation90_spill] sm:$0xff] %v2231_v32  ;;  %vm635_vm0 = vcmp.eq.f32.partialorder %v2057_v55, %v2231_v32 }
 0x1ad   : > { %v2235_v47 = vsel %vm635_vm0, %v631_v50, inf  ;;  %v673_v50 = vcvt.s32.f32 %v671_v52 }
 0x1af   : > { %v2238_v10 = vpop.xlane.xlu0 %647 }
 0x1b0   : > { %2827 = vst [vmem:[#allocation91_spill] sm:$0xff] %v2238_v10  ;;  %vm649_vm1 = vcmp.eq.f32.partialorder %v2068_v59, %v2238_v10  ;;  %v731_v59 = vpop.permute.xlu1 %730 }
 0x1b1   : > { %v2242_v23 = vsel %vm649_vm1, %v645_v29, inf }
 0x1b3   : > { %v2245_v21 = vpop.xlane.xlu0 %661 }
 0x1b4   : > { %2828 = vst [vmem:[#allocation92_spill] sm:$0xff] %v2245_v21  ;;  %vm663_vm2 = vcmp.eq.f32.partialorder %v2075_v62, %v2245_v21  ;;  %v739_v1 = vpop.permute.xlu1 %738  ;;  %v856_v62 = vadd.f32 %v2131_v61, %v1742_v44  ;;  %v858_v21 = vadd.f32 %v707_v18, %v1740_v41 }
 0x1b5   : > { %v2249_v55 = vsel %vm663_vm2, %v659_v14, inf  ;;  %vm896_vm2 = vcmask 130112  }
 0x1b7   : > { %v2251_v36 = vpop.xlane.xlu0 %675 }
 0x1b8   : > { %2829 = vst [vmem:[#allocation93_spill] sm:$0xff] %v2251_v36  ;;  %vm677_vm3 = vcmp.eq.f32.partialorder %v2079_v56, %v2251_v36 }
 0x1b9   : > { %v2255_v58 = vsel %vm677_vm3, %v673_v50, inf  ;;  %v747_v50 = vpop.permute.xlu1 %746  ;;  %vm903_vm3 = vcmask 195712  }
 0x1bb   : > { %v695_v29 = vpop.permute.xlu0 %694 }
 0x1bc   : > { %v855_v57 = vadd.f32 %v695_v29, %v1729_v27  ;;  %v860_v27 = vadd.f32 %v715_v20, %v1772_v3  ;;  %v866_v3 = vadd.f32 %v739_v1, %v1838_v16  ;;  %v2830_v16 = vld [vmem:[#allocation54_spill] sm:$0xff] }
 0x1bd   : > { %v755_v44 = vpop.permute.xlu1 %754 }
 0x1be   : > { %1119 = vperm.xlu1 %1417, %v855_v57  }
 0x1bf   : > { %v711_v38 = vpop.permute.xlu0 %710 }
 0x1c0   : > { %v859_v14 = vadd.f32 %v711_v38, %v1759_v0  ;;  %v862_v0 = vadd.f32 %v723_v60, %v1794_v8 }
 0x1c1   : > { %v766_v18 = vpop.permute.xlu1 %765 }
 0x1c2   : > { %1122 = vperm.xlu1 %1417, %v856_v62   ;;  %1131 = vperm.xlu0 %1416, %v859_v14   ;;  %v2831_v14 = vld [vmem:[#allocation55_spill] sm:$0xff] }
 0x1c3   : > { %v719_v52 = vpop.permute.xlu0 %718 }
 0x1c4   : > { %v861_v56 = vadd.f32 %v719_v52, %v1779_v5  ;;  %v864_v5 = vadd.f32 %v731_v59, %v1816_v12 }
 0x1c6   : > { %1128 = vperm.xlu1 %1417, %v858_v21   ;;  %1137 = vperm.xlu0 %1416, %v861_v56   ;;  %v2832_v56 = vld [vmem:[#allocation57_spill] sm:$0xff] }
 0x1c7   : > { %v727_v36 = vpop.permute.xlu0 %726 }
 0x1c8   : > { %v863_v29 = vadd.f32 %v727_v36, %v1801_v33  ;;  %v774_v33 = vpop.permute.xlu1 %773  ;;  %v872_v36 = vadd.f32 %v766_v18, %v1904_v19 }
 0x1ca   : > { %1134 = vperm.xlu1 %1417, %v860_v27   ;;  %1143 = vperm.xlu0 %1416, %v863_v29  }
 0x1cb   : > { %v735_v61 = vpop.permute.xlu0 %734 }
 0x1cc   : > { %v865_v57 = vadd.f32 %v735_v61, %v1823_v34  ;;  %v874_v34 = vadd.f32 %v774_v33, %v1926_v13  ;;  %v782_v12 = vpop.permute.xlu1 %781  ;;  %v2834_v61 = vld [vmem:[#allocation42_spill] sm:$0xff] }
 0x1cd   : > { %v876_v1 = vadd.f32 %v782_v12, %v1948_v9  ;;  %v2835_v9 = vld [vmem:[#allocation46_spill] sm:$0xff] }
 0x1ce   : > { %1140 = vperm.xlu1 %1417, %v862_v0   ;;  %1149 = vperm.xlu0 %1416, %v865_v57   ;;  %v868_v57 = vadd.f32 %v747_v50, %v2835_v9  ;;  %v2851_v9 = vld [vmem:[#allocation69_spill] sm:$0xff] }
 0x1cf   : > { %v743_v41 = vpop.permute.xlu0 %742 }
 0x1d0   : > { %v867_v0 = vadd.f32 %v743_v41, %v2834_v61  ;;  %v2842_v41 = vld [vmem:[#allocation66_spill] sm:$0xff] }
 0x1d2   : > { %1146 = vperm.xlu1 %1417, %v864_v5   ;;  %v2836_v5 = vld [vmem:[#allocation48_spill] sm:$0xff] }
 0x1d3   : > { %v751_v21 = vpop.permute.xlu0 %750 }
 0x1d4   : > { %v869_v18 = vadd.f32 %v751_v21, %v2836_v5 }
 0x1d6   : > { %1152 = vperm.xlu1 %1417, %v866_v3   ;;  %v2837_v3 = vld [vmem:[#allocation52_spill] sm:$0xff] }
 0x1d7   : > { %v762_v20 = vpop.permute.xlu0 %761  ;;  %v870_v33 = vadd.f32 %v755_v44, %v2837_v3  ;;  %v2845_v44 = vld [vmem:[#allocation67_spill] sm:$0xff] }
 0x1d8   : > { %v871_v38 = vadd.f32 %v762_v20, %v1889_v40  ;;  %v2838_v20 = vld [vmem:[#allocation22_spill] sm:$0xff] }
 0x1da   : > { %1170 = vperm.xlu1 %1417, %v872_v36   ;;  %1167 = vperm.xlu0 %1416, %v871_v38   ;;  %v237_v36 = vand.u32 65535, %v2838_v20  ;;  %v2839_v38 = vld [vmem:[#allocation65_spill] sm:$0xff]  ;;  %v2854_v20 = vld [vmem:[#allocation70_spill] sm:$0xff] }
 0x1db   : > { %v770_v8 = vpop.permute.xlu0 %769 }
 0x1dc   : > { %v873_v60 = vadd.f32 %v770_v8, %v1911_v43  ;;  %v2833_v43 = vld [vmem:[#allocation59_spill] sm:$0xff]  ;;  %v2840_v8 = vld [vmem:[#allocation24_spill] sm:$0xff] }
 0x1dd   : > { %vm243_vm4 = vcmp.eq.f32.partialorder %v2840_v8, %v2839_v38  ;;  %v2856_v8 = vld [vmem:[#allocation33_spill] sm:$0xff] }
 0x1de   : > { %1176 = vperm.xlu1 %1417, %v874_v34   ;;  %1173 = vperm.xlu0 %1416, %v873_v60   ;;  %v239_v34 = vcvt.s32.f32 %v237_v36  ;;  %v2841_v60 = vld [vmem:[#allocation25_spill] sm:$0xff]  ;;  %v2855_v36 = vld [vmem:[#allocation34_spill] sm:$0xff] }
 0x1df   : > { %v778_v59 = vpop.permute.xlu0 %777  ;;  %v251_v12 = vand.u32 65535, %v2841_v60  ;;  %vm313_vm9 = vcmp.eq.f32.partialorder %v2855_v36, %v2854_v20  ;;  %v2868_v36 = vld [vmem:[#allocation41_spill] sm:$0xff] }
 0x1e0   : > { %v875_v62 = vadd.f32 %v778_v59, %v2830_v16  ;;  %v244_v59 = vsel %vm243_vm4, %v239_v34, inf  ;;  %v2844_v16 = vld [vmem:[#allocation23_spill] sm:$0xff]  ;;  %v321_v34 = vand.u32 65535, %v2856_v8  ;;  %v377_v8 = vand.u32 65535, %v2868_v36  ;;  %v2877_v36 = vld [vmem:[#allocation50_spill] sm:$0xff] }
 0x1e1   : > { %v253_v50 = vcvt.s32.f32 %v251_v12  ;;  %v265_v21 = vand.u32 65535, %v2844_v16  ;;  %vm910_vm4 = vcmask 261312  }
 0x1e2   : > { %1182 = vperm.xlu1 %1417, %v876_v1   ;;  %1179 = vperm.xlu0 %1416, %v875_v62   ;;  %v2843_v1 = vld [vmem:[#allocation27_spill] sm:$0xff] }
 0x1e3   : > { %v786_v19 = vpop.permute.xlu0 %785  ;;  %vm257_vm5 = vcmp.eq.f32.partialorder %v2843_v1, %v2842_v41  ;;  %v2858_v1 = vld [vmem:[#allocation36_spill] sm:$0xff] }
 0x1e4   : > { %v877_v40 = vadd.f32 %v786_v19, %v2831_v14  ;;  %v258_v62 = vsel %vm257_vm5, %v253_v50, inf  ;;  %v2846_v19 = vld [vmem:[#allocation28_spill] sm:$0xff]  ;;  %v267_v14 = vcvt.s32.f32 %v265_v21  ;;  %v2859_v50 = vld [vmem:[#allocation35_spill] sm:$0xff]  ;;  %v323_v21 = vcvt.s32.f32 %v321_v34 }
 0x1e5   : > { %vm271_vm6 = vcmp.eq.f32.partialorder %v2846_v19, %v2845_v44  ;;  %v335_v16 = vand.u32 65535, %v2859_v50  ;;  %v2860_v19 = vld [vmem:[#allocation72_spill] sm:$0xff]  ;;  %v2870_v50 = vld [vmem:[#allocation45_spill] sm:$0xff]  ;;  %vm917_vm5 = vcmask 326912  }
 0x1e6   : > { %1185 = vperm.xlu0 %1416, %v877_v40   ;;  %v2847_v40 = vld [vmem:[#allocation26_spill] sm:$0xff] }
 0x1e7   : > { %v794_v52 = vpop.permute.xlu0 %793 }
 0x1e8   : > { %v879_v27 = vadd.f32 %v794_v52, %v2832_v56  ;;  %v279_v52 = vand.u32 65535, %v2847_v40  ;;  %v272_v56 = vsel %vm271_vm6, %v267_v14, inf  ;;  %v2861_v14 = vld [vmem:[#allocation38_spill] sm:$0xff]  ;;  %v2862_v40 = vld [vmem:[#allocation37_spill] sm:$0xff]  ;;  %vm924_vm6 = vcmask 392512  }
 0x1e9   : > { %vm341_vm11 = vcmp.eq.f32.partialorder %v2861_v14, %v2860_v19 }
 0x1ea   : > { %1191 = vperm.xlu0 %1416, %v879_v27   ;;  %v2848_v27 = vld [vmem:[#allocation68_spill] sm:$0xff] }
 0x1eb   : > { %v802_v13 = vpop.permute.xlu0 %801 }
 0x1ec   : > { %v881_v29 = vadd.f32 %v802_v13, %v2833_v43  ;;  %v2849_v13 = vld [vmem:[#allocation30_spill] sm:$0xff]  ;;  %v281_v43 = vcvt.s32.f32 %v279_v52  ;;  %v349_v52 = vand.u32 65535, %v2862_v40 }
 0x1ed   : > { %vm285_vm7 = vcmp.eq.f32.partialorder %v2849_v13, %v2848_v27  ;;  %v2307_v13 = vpop.permute.xlu1 %789 }
 0x1ee   : > { %1197 = vperm.xlu0 %1416, %v881_v29   ;;  %v2850_v29 = vld [vmem:[#allocation29_spill] sm:$0xff] }
 0x1ef   : > { %v293_v61 = vand.u32 65535, %v2850_v29  ;;  %v2863_v29 = vld [vmem:[#allocation73_spill] sm:$0xff]  ;;  %v2322_v40 = vpop.permute.xlu0 %809 }
 0x1f1   : > { %v295_v5 = vcvt.s32.f32 %v293_v61  ;;  %v2864_v61 = vld [vmem:[#allocation40_spill] sm:$0xff]  ;;  %v2315_v34 = vpop.permute.xlu1 %797 }
 0x1f2   : > { %1155 = vperm.xlu0 %1416, %v867_v0   ;;  %v286_v0 = vsel %vm285_vm7, %v281_v43, inf  ;;  %vm355_vm12 = vcmp.eq.f32.partialorder %v2864_v61, %v2863_v29  ;;  %v2874_v61 = vld [vmem:[#allocation47_spill] sm:$0xff]  ;;  %vm931_vm7 = vcmask 458112  }
 0x1f5   : > { %v2320_v14 = vpop.permute.xlu1 %805 }
 0x1f6   : > { %1158 = vperm.xlu0 %1416, %v868_v57   ;;  %v2852_v57 = vld [vmem:[#allocation32_spill] sm:$0xff] }
 0x1f7   : > { %vm299_vm8 = vcmp.eq.f32.partialorder %v2852_v57, %v2851_v9 }
 0x1fa   : > { %1161 = vperm.xlu0 %1416, %v869_v18   ;;  %v2853_v18 = vld [vmem:[#allocation31_spill] sm:$0xff] }
 0x1fb   : > { %v307_v3 = vand.u32 65535, %v2853_v18 }
 0x1fd   : > { %v309_v60 = vcvt.s32.f32 %v307_v3  ;;  %v2866_v3 = vld [vmem:[#allocation74_spill] sm:$0xff] }
 0x1fe   : > { %1164 = vperm.xlu0 %1416, %v870_v33   ;;  %v300_v33 = vsel %vm299_vm8, %v295_v5, inf  ;;  %v351_v5 = vcvt.s32.f32 %v349_v52  ;;  %vm938_vm8 = vcmask 523712  }
 0x1ff   : > { %v314_v12 = vsel %vm313_vm9, %v309_v60, inf  ;;  %vm945_vm9 = vcmask 589312  }
 0x200   : > { %v356_v18 = vsel %vm355_vm12, %v351_v5, inf  ;;  %vm966_vm12 = vcmask 786112  }
 0x206   : > { %245 = vmin.xlane.f32.xlu1 %v244_v59  ;;  %v2857_v59 = vld [vmem:[#allocation71_spill] sm:$0xff] }
 0x207   : > { %vm327_vm10 = vcmp.eq.f32.partialorder %v2858_v1, %v2857_v59  ;;  %v2869_v1 = vld [vmem:[#allocation75_spill] sm:$0xff] }
 0x208   : > { %vm383_vm14 = vcmp.eq.f32.partialorder %v2870_v50, %v2869_v1 }
 0x20a   : > { %259 = vmin.xlane.f32.xlu1 %v258_v62  ;;  %v328_v62 = vsel %vm327_vm10, %v323_v21, inf  ;;  %vm952_vm10 = vcmask 654912  }
 0x20e   : > { %273 = vmin.xlane.f32.xlu1 %v272_v56  ;;  %v337_v56 = vcvt.s32.f32 %v335_v16  ;;  %v2871_v16 = vld [vmem:[#allocation44_spill] sm:$0xff] }
 0x20f   : > { %v391_v21 = vand.u32 65535, %v2871_v16 }
 0x210   : > { %v342_v43 = vsel %vm341_vm11, %v337_v56, inf  ;;  %v2872_v56 = vld [vmem:[#allocation76_spill] sm:$0xff]  ;;  %vm959_vm11 = vcmask 720512  }
 0x212   : > { %287 = vmin.xlane.f32.xlu1 %v286_v0  ;;  %v2865_v0 = vld [vmem:[#allocation39_spill] sm:$0xff] }
 0x213   : > { %v363_v57 = vand.u32 65535, %v2865_v0  ;;  %v405_v0 = vand.u32 65535, %v2874_v61 }
 0x215   : > { %v365_v60 = vcvt.s32.f32 %v363_v57  ;;  %v393_v57 = vcvt.s32.f32 %v391_v21  ;;  %v407_v50 = vcvt.s32.f32 %v405_v0 }
 0x216   : > { %301 = vmin.xlane.f32.xlu1 %v300_v33  ;;  %v2867_v33 = vld [vmem:[#allocation43_spill] sm:$0xff] }
 0x217   : > { %vm369_vm13 = vcmp.eq.f32.partialorder %v2867_v33, %v2866_v3  ;;  %v2876_v33 = vld [vmem:[#allocation51_spill] sm:$0xff] }
 0x21a   : > { %315 = vmin.xlane.f32.xlu1 %v314_v12  ;;  %v370_v12 = vsel %vm369_vm13, %v365_v60, inf  ;;  %v419_v60 = vand.u32 65535, %v2877_v36  ;;  %vm973_vm13 = vcmask 851712  }
 0x21c   : > { %v421_v21 = vcvt.s32.f32 %v419_v60 }
 0x21e   : > { %329 = vmin.xlane.f32.xlu1 %v328_v62  ;;  %v379_v62 = vcvt.s32.f32 %v377_v8  ;;  %v2330_v8 = vpop.permute.xlu1 %813 }
 0x220   : > { %v384_v52 = vsel %vm383_vm14, %v379_v62, inf  ;;  %v2878_v62 = vld [vmem:[#allocation78_spill] sm:$0xff]  ;;  %vm980_vm14 = vcmask 917312  }
 0x222   : > { %343 = vmin.xlane.f32.xlu1 %v342_v43  ;;  %v2873_v43 = vld [vmem:[#allocation49_spill] sm:$0xff]  ;;  %v2338_v61 = vpop.permute.xlu1 %821 }
 0x223   : > { %vm397_vm15 = vcmp.eq.f32.partialorder %v2873_v43, %v2872_v56 }
 0x224   : > { %v398_v5 = vsel %vm397_vm15, %v393_v57, inf  ;;  %vm987_vm15 = vcmask 982912  }
 0x226   : > { %357 = vmin.xlane.f32.xlu1 %v356_v18  ;;  %v2875_v18 = vld [vmem:[#allocation77_spill] sm:$0xff] }
 0x227   : > { %vm411_vm0 = vcmp.eq.f32.partialorder %v2876_v33, %v2875_v18 }
 0x228   : > { %v412_v16 = vsel %vm411_vm0, %v407_v50, inf  ;;  %v2883_v50 = vld [vmem:[#allocation80_spill] sm:$0xff]  ;;  %vm994_vm0 = vcmask 1048512  }
 0x22a   : > { %371 = vmin.xlane.f32.xlu1 %v370_v12  ;;  %v2332_v12 = vpop.permute.xlu0 %817 }
 0x22e   : > { %385 = vmin.xlane.f32.xlu1 %v384_v52  ;;  %v2879_v52 = vld [vmem:[#allocation53_spill] sm:$0xff]  ;;  %v2336_v43 = vpop.permute.xlu0 %1083 }
 0x22f   : > { %vm425_vm1 = vcmp.eq.f32.partialorder %v2879_v52, %v2878_v62  ;;  %2880 = vst [vmem:[#allocation54_spill] sm:$0xff] %v2336_v43 }
 0x230   : > { %v426_v57 = vsel %vm425_vm1, %v421_v21, inf  ;;  %vm1075_vm1 = vcmask 1041409  }
 0x232   : > { %399 = vmin.xlane.f32.xlu1 %v398_v5  ;;  %v2881_v5 = vld [vmem:[#allocation8_spill] sm:$0xff]  ;;  %v1126_v10 = vpop.permute.xlu0 %1125 }
 0x233   : > { %v891_v33 = vadd.s32 4294967288, %v2881_v5  ;;  %v898_v36 = vadd.s32 4294967280, %v2881_v5  ;;  %v2344_v0 = vsub.s32 %v2881_v5, %v2882_v31  ;;  %v905_v60 = vadd.s32 4294967272, %v2881_v5 }
 0x234   : > { %v940_v49 = vadd.s32 4294967232, %v2881_v5 }
 0x235   : > { %v2352_v52 = vsub.s32 %v898_v36, %v2882_v31 }
 0x236   : > { %413 = vmin.xlane.f32.xlu1 %v412_v16  ;;  %v2348_v16 = vsub.s32 %v891_v33, %v2882_v31  ;;  %v919_v33 = vadd.s32 4294967256, %v2881_v5 }
 0x237   : > { %v1226_v36 = vrot.slane %v1126_v10, %v2352_v52 }
 0x23a   : > { %427 = vmin.xlane.f32.xlu1 %v426_v57  ;;  %v912_v57 = vadd.s32 4294967264, %v2881_v5 }
 0x23c   : > { %v2365_v37 = vsub.s32 %v912_v57, %v2882_v31 }
 0x23d   : > { %v1120_v32 = vpop.permute.xlu1 %1119 }
 0x23e   : > { %441 = vmin.xlane.f32.xlu1 %v2883_v50  ;;  %v1217_v25 = vrot.slane %v1120_v32, %v2344_v0  ;;  %v2359_v50 = vsub.s32 %v905_v60, %v2882_v31  ;;  %v926_v32 = vadd.s32 4294967248, %v2881_v5  ;;  %v2371_v60 = vsub.s32 %v919_v33, %v2882_v31 }
 0x240   : > { %v2378_v15 = vsub.s32 %v926_v32, %v2882_v31 }
 0x241   : > { %v1123_v21 = vpop.permute.xlu1 %1122  ;;  %v1132_v43 = vpop.permute.xlu0 %1131 }
 0x242   : > { %v1221_v53 = vrot.slane %v1123_v21, %v2348_v16  ;;  %455 = vmin.xlane.f32.xlu1 %v2143_v4  ;;  %v1236_v57 = vrot.slane %v1132_v43, %v2365_v37 }
 0x244   : > { %v1222_v42 = vsel %vm896_vm2, %v1221_v53, %v1217_v25  ;;  %v933_v53 = vadd.s32 4294967240, %v2881_v5 }
 0x245   : > { %v1129_v45 = vpop.permute.xlu1 %1128  ;;  %v1138_v4 = vpop.permute.xlu0 %1137  ;;  %v1227_v25 = vsel %vm903_vm3, %v1226_v36, %v1222_v42  ;;  %v947_v42 = vadd.s32 4294967224, %v2881_v5 }
 0x246   : > { %v1231_v21 = vrot.slane %v1129_v45, %v2359_v50  ;;  %469 = vmin.xlane.f32.xlu1 %v2150_v7  ;;  %v2384_v33 = vsub.s32 %v933_v53, %v2882_v31  ;;  %v1246_v32 = vrot.slane %v1138_v4, %v2378_v15 }
 0x247   : > { %v2397_v46 = vsub.s32 %v947_v42, %v2882_v31 }
 0x248   : > { %v1232_v10 = vsel %vm910_vm4, %v1231_v21, %v1227_v25  ;;  %v2391_v25 = vsub.s32 %v940_v49, %v2882_v31 }
 0x249   : > { %v1135_v45 = vpop.permute.xlu1 %1134  ;;  %v1237_v36 = vsel %vm917_vm5, %v1236_v57, %v1232_v10  ;;  %v1144_v21 = vpop.permute.xlu0 %1143  ;;  %v961_v10 = vadd.s32 4294967208, %v2881_v5 }
 0x24a   : > { %v1241_v7 = vrot.slane %v1135_v45, %v2371_v60  ;;  %483 = vmin.xlane.f32.xlu1 %v2158_v48  ;;  %v954_v48 = vadd.s32 4294967216, %v2881_v5  ;;  %v1256_v49 = vrot.slane %v1144_v21, %v2391_v25 }
 0x24b   : > { %v2409_v42 = vsub.s32 %v961_v10, %v2882_v31 }
 0x24c   : > { %v1242_v43 = vsel %vm924_vm6, %v1241_v7, %v1237_v36  ;;  %v2404_v7 = vsub.s32 %v954_v48, %v2882_v31 }
 0x24d   : > { %v1141_v45 = vpop.permute.xlu1 %1140  ;;  %v1247_v57 = vsel %vm931_vm7, %v1246_v32, %v1242_v43 }
 0x24e   : > { %v1251_v53 = vrot.slane %v1141_v45, %v2384_v33  ;;  %497 = vmin.xlane.f32.xlu1 %v2165_v26  ;;  %v1150_v45 = vpop.permute.xlu0 %1149 }
 0x24f   : > { %v1266_v21 = vrot.slane %v1150_v45, %v2404_v7 }
 0x250   : > { %v1252_v4 = vsel %vm938_vm8, %v1251_v53, %v1247_v57 }
 0x251   : > { %v1147_v36 = vpop.permute.xlu1 %1146  ;;  %v1257_v43 = vsel %vm945_vm9, %v1256_v49, %v1252_v4 }
 0x252   : > { %v1261_v26 = vrot.slane %v1147_v36, %v2397_v46  ;;  %511 = vmin.xlane.f32.xlu1 %v2172_v35 }
 0x254   : > { %v1262_v32 = vsel %vm952_vm10, %v1261_v26, %v1257_v43 }
 0x255   : > { %v1153_v48 = vpop.permute.xlu1 %1152  ;;  %v1267_v57 = vsel %vm959_vm11, %v1266_v21, %v1262_v32 }
 0x256   : > { %v1271_v53 = vrot.slane %v1153_v48, %v2409_v42  ;;  %525 = vmin.xlane.f32.xlu1 %v2179_v11 }
 0x258   : > { %v2418_v35 = vsel %vm966_vm12, %v1271_v53, %v1267_v57 }
 0x259   : > { %v1171_v10 = vpop.permute.xlu1 %1170  ;;  %v1168_v36 = vpop.permute.xlu0 %1167 }
 0x25a   : > { %539 = vmin.xlane.f32.xlu1 %v2186_v24  ;;  %v1300_v4 = vrot.slane %v1171_v10, %v2348_v16  ;;  %v1296_v49 = vrot.slane %v1168_v36, %v2344_v0 }
 0x25c   : > { %v1301_v11 = vsel %vm896_vm2, %v1300_v4, %v1296_v49  ;;  %v248_v4 = vcvt.f32.s32 %v2839_v38  ;;  %v2885_v49 = vld [vmem:[#allocation58_spill] sm:$0xff] }
 0x25d   : > { %v1177_v45 = vpop.permute.xlu1 %1176  ;;  %v1174_v26 = vpop.permute.xlu0 %1173 }
 0x25e   : > { %v1310_v43 = vrot.slane %v1177_v45, %v2359_v50  ;;  %v1305_v48 = vrot.slane %v1174_v26, %v2352_v52  ;;  %553 = vmin.xlane.f32.xlu1 %v2193_v6  ;;  %v2884_v6 = vld [vmem:[#allocation56_spill] sm:$0xff] }
 0x260   : > { %v1306_v32 = vsel %vm903_vm3, %v1305_v48, %v1301_v11  ;;  %v2886_v48 = vld [vmem:[#allocation60_spill] sm:$0xff] }
 0x261   : > { %v1183_v21 = vpop.permute.xlu1 %1182  ;;  %v1311_v53 = vsel %vm910_vm4, %v1310_v43, %v1306_v32  ;;  %v1180_v24 = vpop.permute.xlu0 %1179 }
 0x262   : > { %v1320_v57 = vrot.slane %v1183_v21, %v2371_v60  ;;  %v1315_v10 = vrot.slane %v1180_v24, %v2365_v37  ;;  %567 = vmin.xlane.f32.xlu1 %v2200_v54  ;;  %v878_v54 = vadd.f32 %v2307_v13, %v2884_v6  ;;  %v882_v13 = vadd.f32 %v2320_v14, %v2886_v48 }
 0x263   : > { %v304_v6 = vcvt.f32.s32 %v2851_v9  ;;  %v332_v48 = vcvt.f32.s32 %v2857_v59 }
 0x264   : > { %v1316_v36 = vsel %vm917_vm5, %v1315_v10, %v1311_v53 }
 0x265   : > { %v2434_v45 = vsel %vm924_vm6, %v1320_v57, %v1316_v36 }
 0x266   : > { %581 = vmin.xlane.f32.xlu1 %v2207_v51 }
 0x26a   : > { %595 = vmin.xlane.f32.xlu1 %v2214_v2  ;;  %v262_v2 = vcvt.f32.s32 %v2842_v41  ;;  %v290_v41 = vcvt.f32.s32 %v2848_v27  ;;  %v2888_v27 = vld [vmem:[#allocation62_spill] sm:$0xff] }
 0x26c   : > { %v263_v26 = vshll.u32 %v262_v2, 16  ;;  %v291_v14 = vshll.u32 %v290_v41, 16 }
 0x26e   : > { %609 = vmin.xlane.f32.xlu1 %v2221_v30 }
 0x272   : > { %623 = vmin.xlane.f32.xlu1 %v2228_v28  ;;  %v880_v28 = vadd.f32 %v2315_v34, %v2885_v49 }
 0x276   : > { %637 = vmin.xlane.f32.xlu1 %v2235_v47  ;;  %v249_v47 = vshll.u32 %v248_v4, 16 }
 0x27a   : > { %651 = vmin.xlane.f32.xlu1 %v2242_v23  ;;  %v276_v23 = vcvt.f32.s32 %v2845_v44  ;;  %v2887_v44 = vld [vmem:[#allocation61_spill] sm:$0xff] }
 0x27b   : > { %v883_v24 = vadd.f32 %v2322_v40, %v2887_v44  ;;  %v305_v40 = vshll.u32 %v304_v6, 16 }
 0x27c   : > { %v277_v11 = vshll.u32 %v276_v23, 16 }
 0x27e   : > { %665 = vmin.xlane.f32.xlu1 %v2249_v55 }
 0x282   : > { %679 = vmin.xlane.f32.xlu1 %v2255_v58 }
 0x293   : > { %1188 = vperm.xlu1 %1417, %v878_v54   ;;  %v246_v51 = vpop.xlane.xlu1 %245 }
 0x294   : > { %v247_v30 = vcvt.f32.s32 %v246_v51  ;;  %v884_v51 = vadd.f32 %v2330_v8, %v2888_v27 }
 0x296   : > { %v250_v58 = vadd.s32 %v249_v47, %v247_v30 }
 0x297   : > { %1194 = vperm.xlu1 %1417, %v880_v28   ;;  %v260_v55 = vpop.xlane.xlu1 %259  ;;  %v318_v28 = vcvt.f32.s32 %v2854_v20 }
 0x298   : > { %v261_v43 = vcvt.f32.s32 %v260_v55  ;;  %v890_v21 = vrot.slane %v250_v58, %v2344_v0  ;;  %v2889_v55 = vld [vmem:[#allocation63_spill] sm:$0xff] }
 0x299   : > { %v885_v9 = vadd.f32 %v2332_v12, %v2889_v55  ;;  %v319_v8 = vshll.u32 %v318_v28, 16  ;;  %v333_v12 = vshll.u32 %v332_v48, 16 }
 0x29a   : > { %v264_v38 = vadd.s32 %v263_v26, %v261_v43 }
 0x29b   : > { %1200 = vperm.xlu1 %1417, %v882_v13   ;;  %v274_v32 = vpop.xlane.xlu1 %273 }
 0x29c   : > { %v895_v34 = vrot.slane %v264_v38, %v2348_v16  ;;  %v275_v53 = vcvt.f32.s32 %v274_v32 }
 0x29e   : > { %v897_v57 = vsel %vm896_vm2, %v895_v34, %v890_v21  ;;  %v278_v10 = vadd.s32 %v277_v11, %v275_v53  ;;  %v2890_v11 = vld [vmem:[#allocation64_spill] sm:$0xff]  ;;  %v346_v34 = vcvt.f32.s32 %v2860_v19  ;;  %v374_v19 = vcvt.f32.s32 %v2866_v3 }
 0x29f   : > { %v288_v36 = vpop.xlane.xlu1 %287  ;;  %1203 = vperm.xlu1 %1417, %v883_v24   ;;  %v886_v20 = vadd.f32 %v2338_v61, %v2890_v11  ;;  %v402_v3 = vcvt.f32.s32 %v2872_v56 }
 0x2a0   : > { %v902_v54 = vrot.slane %v278_v10, %v2352_v52  ;;  %v289_v4 = vcvt.f32.s32 %v288_v36  ;;  %v347_v10 = vshll.u32 %v346_v34, 16  ;;  %v360_v36 = vcvt.f32.s32 %v2863_v29 }
 0x2a1   : > { %v375_v28 = vshll.u32 %v374_v19, 16  ;;  %v388_v29 = vcvt.f32.s32 %v2869_v1  ;;  %v403_v11 = vshll.u32 %v402_v3, 16  ;;  %v416_v1 = vcvt.f32.s32 %v2875_v18 }
 0x2a2   : > { %v904_v2 = vsel %vm903_vm3, %v902_v54, %v897_v57  ;;  %v292_v30 = vadd.s32 %v291_v14, %v289_v4  ;;  %v361_v27 = vshll.u32 %v360_v36, 16  ;;  %v975_v18 = vadd.s32 4294967192, %v2881_v5 }
 0x2a3   : > { %v302_v49 = vpop.xlane.xlu1 %301  ;;  %1206 = vperm.xlu1 %1417, %v884_v51   ;;  %v417_v56 = vshll.u32 %v416_v1, 16 }
 0x2a4   : > { %v909_v47 = vrot.slane %v292_v30, %v2359_v50  ;;  %v303_v23 = vcvt.f32.s32 %v302_v49 }
 0x2a6   : > { %v911_v26 = vsel %vm910_vm4, %v909_v47, %v904_v2  ;;  %v306_v58 = vadd.s32 %v305_v40, %v303_v23 }
 0x2a7   : > { %v316_v43 = vpop.xlane.xlu1 %315  ;;  %1209 = vperm.xlu1 %1417, %v885_v9  }
 0x2a8   : > { %v916_v13 = vrot.slane %v306_v58, %v2365_v37  ;;  %v317_v38 = vcvt.f32.s32 %v316_v43  ;;  %v389_v58 = vshll.u32 %v388_v29, 16 }
 0x2aa   : > { %v918_v32 = vsel %vm917_vm5, %v916_v13, %v911_v26  ;;  %v320_v41 = vadd.s32 %v319_v8, %v317_v38 }
 0x2ab   : > { %v330_v21 = vpop.xlane.xlu1 %329  ;;  %1212 = vperm.xlu1 %1417, %v886_v20  }
 0x2ac   : > { %v923_v53 = vrot.slane %v320_v41, %v2371_v60  ;;  %v331_v44 = vcvt.f32.s32 %v330_v21  ;;  %v968_v41 = vadd.s32 4294967200, %v2881_v5 }
 0x2ae   : > { %v925_v24 = vsel %vm924_vm6, %v923_v53, %v918_v32  ;;  %v334_v59 = vadd.s32 %v333_v12, %v331_v44  ;;  %v430_v53 = vcvt.f32.s32 %v2878_v62  ;;  %v2503_v62 = vsub.s32 %v975_v18, %v2882_v31 }
 0x2af   : > { %v344_v57 = vpop.xlane.xlu1 %343 }
 0x2b0   : > { %v930_v61 = vrot.slane %v334_v59, %v2378_v15  ;;  %v345_v14 = vcvt.f32.s32 %v344_v57  ;;  %v2496_v59 = vsub.s32 %v968_v41, %v2882_v31 }
 0x2b2   : > { %v932_v6 = vsel %vm931_vm7, %v930_v61, %v925_v24  ;;  %v348_v54 = vadd.s32 %v347_v10, %v345_v14  ;;  %v431_v61 = vshll.u32 %v430_v53, 16  ;;  %v2891_v14 = vld [vmem:[#allocation79_spill] sm:$0xff]  ;;  %v2892_v53 = vld [vmem:[#allocation81_spill] sm:$0xff] }
 0x2b3   : > { %v358_v4 = vpop.xlane.xlu1 %357 }
 0x2b4   : > { %v937_v51 = vrot.slane %v348_v54, %v2384_v33  ;;  %v359_v2 = vcvt.f32.s32 %v358_v4 }
 0x2b6   : > { %v939_v30 = vsel %vm938_vm8, %v937_v51, %v932_v6  ;;  %v362_v49 = vadd.s32 %v361_v27, %v359_v2  ;;  %v444_v6 = vcvt.f32.s32 %v2891_v14  ;;  %v982_v27 = vadd.s32 4294967184, %v2881_v5 }
 0x2b7   : > { %v372_v40 = vpop.xlane.xlu1 %371 }
 0x2b8   : > { %v944_v47 = vrot.slane %v362_v49, %v2391_v25  ;;  %v373_v23 = vcvt.f32.s32 %v372_v40  ;;  %v458_v49 = vcvt.f32.s32 %v2137_v17  ;;  %v2510_v29 = vsub.s32 %v982_v27, %v2882_v31 }
 0x2b9   : > { %v472_v17 = vcvt.f32.s32 %v2146_v63 }
 0x2ba   : > { %v946_v55 = vsel %vm945_vm9, %v944_v47, %v939_v30  ;;  %v376_v9 = vadd.s32 %v375_v28, %v373_v23  ;;  %v445_v30 = vshll.u32 %v444_v6, 16  ;;  %v989_v47 = vadd.s32 4294967176, %v2881_v5 }
 0x2bb   : > { %v386_v26 = vpop.xlane.xlu1 %385  ;;  %v486_v5 = vcvt.f32.s32 %v2154_v39  ;;  %v473_v1 = vshll.u32 %v472_v17, 16 }
 0x2bc   : > { %v951_v43 = vrot.slane %v376_v9, %v2397_v46  ;;  %v387_v8 = vcvt.f32.s32 %v386_v26  ;;  %v459_v26 = vshll.u32 %v458_v49, 16 }
 0x2bd   : > { %v487_v41 = vshll.u32 %v486_v5, 16 }
 0x2be   : > { %v953_v48 = vsel %vm952_vm10, %v951_v43, %v946_v55  ;;  %v390_v13 = vadd.s32 %v389_v58, %v387_v8  ;;  %v2517_v43 = vsub.s32 %v989_v47, %v2882_v31 }
 0x2bf   : > { %v400_v38 = vpop.xlane.xlu1 %399 }
 0x2c0   : > { %v958_v20 = vrot.slane %v390_v13, %v2404_v7  ;;  %v401_v32 = vcvt.f32.s32 %v400_v38 }
 0x2c2   : > { %v960_v21 = vsel %vm959_vm11, %v958_v20, %v953_v48  ;;  %v404_v12 = vadd.s32 %v403_v11, %v401_v32  ;;  %v500_v32 = vcvt.f32.s32 %v2161_v22  ;;  %v2893_v22 = vld [vmem:[#allocation82_spill] sm:$0xff] }
 0x2c3   : > { %v414_v34 = vpop.xlane.xlu1 %413  ;;  %v528_v14 = vcvt.f32.s32 %v2893_v22 }
 0x2c4   : > { %v965_v44 = vrot.slane %v404_v12, %v2409_v42  ;;  %v415_v24 = vcvt.f32.s32 %v414_v34  ;;  %v501_v34 = vshll.u32 %v500_v32, 16  ;;  %v2897_v32 = vld [vmem:[#allocation86_spill] sm:$0xff] }
 0x2c6   : > { %v967_v57 = vsel %vm966_vm12, %v965_v44, %v960_v21  ;;  %v418_v10 = vadd.s32 %v417_v56, %v415_v24  ;;  %v514_v44 = vcvt.f32.s32 %v2892_v53 }
 0x2c7   : > { %v428_v36 = vpop.xlane.xlu1 %427 }
 0x2c8   : > { %v972_v54 = vrot.slane %v418_v10, %v2496_v59  ;;  %v429_v4 = vcvt.f32.s32 %v428_v36 }
 0x2ca   : > { %v974_v19 = vsel %vm973_vm13, %v972_v54, %v967_v57  ;;  %v432_v51 = vadd.s32 %v431_v61, %v429_v4  ;;  %v515_v61 = vshll.u32 %v514_v44, 16 }
 0x2cb   : > { %v442_v2 = vpop.xlane.xlu1 %441 }
 0x2cc   : > { %v979_v40 = vrot.slane %v432_v51, %v2503_v62  ;;  %v443_v28 = vcvt.f32.s32 %v442_v2  ;;  %v529_v51 = vshll.u32 %v528_v14, 16  ;;  %v2894_v2 = vld [vmem:[#allocation83_spill] sm:$0xff] }
 0x2ce   : > { %v981_v23 = vsel %vm980_vm14, %v979_v40, %v974_v19  ;;  %v446_v55 = vadd.s32 %v445_v30, %v443_v28 }
 0x2cf   : > { %v456_v9 = vpop.xlane.xlu1 %455 }
 0x2d0   : > { %v986_v58 = vrot.slane %v446_v55, %v2510_v29  ;;  %v457_v3 = vcvt.f32.s32 %v456_v9 }
 0x2d2   : > { %v988_v8 = vsel %vm987_vm15, %v986_v58, %v981_v23  ;;  %v460_v48 = vadd.s32 %v459_v26, %v457_v3  ;;  %v2895_v23 = vld [vmem:[#allocation84_spill] sm:$0xff] }
 0x2d3   : > { %v470_v13 = vpop.xlane.xlu1 %469  ;;  %v556_v55 = vcvt.f32.s32 %v2895_v23 }
 0x2d4   : > { %v993_v38 = vrot.slane %v460_v48, %v2517_v43  ;;  %v471_v11 = vcvt.f32.s32 %v470_v13 }
 0x2d5   : > { %v557_v17 = vshll.u32 %v556_v55, 16 }
 0x2d6   : > { %v2523_v20 = vsel %vm994_vm0, %v993_v38, %v988_v8  ;;  %v474_v31 = vadd.s32 %v473_v1, %v471_v11  ;;  %v2896_v8 = vld [vmem:[#allocation85_spill] sm:$0xff] }
 0x2d7   : > { %v484_v63 = vpop.xlane.xlu1 %483  ;;  %v570_v48 = vcvt.f32.s32 %v2896_v8 }
 0x2d8   : > { %v485_v21 = vcvt.f32.s32 %v484_v63  ;;  %v999_v39 = vrot.slane %v474_v31, %v2344_v0  ;;  %v542_v0 = vcvt.f32.s32 %v2894_v2  ;;  %v584_v63 = vcvt.f32.s32 %v2897_v32 }
 0x2d9   : > { %v571_v1 = vshll.u32 %v570_v48, 16 }
 0x2da   : > { %v488_v12 = vadd.s32 %v487_v41, %v485_v21  ;;  %v543_v47 = vshll.u32 %v542_v0, 16 }
 0x2db   : > { %v498_v56 = vpop.xlane.xlu1 %497 }
 0x2dc   : > { %v1003_v24 = vrot.slane %v488_v12, %v2348_v16  ;;  %v499_v18 = vcvt.f32.s32 %v498_v56  ;;  %v2898_v56 = vld [vmem:[#allocation87_spill] sm:$0xff] }
 0x2dd   : > { %v598_v53 = vcvt.f32.s32 %v2898_v56 }
 0x2de   : > { %v1004_v57 = vsel %vm896_vm2, %v1003_v24, %v999_v39  ;;  %v502_v10 = vadd.s32 %v501_v34, %v499_v18  ;;  %v585_v34 = vshll.u32 %v584_v63, 16 }
 0x2df   : > { %v512_v36 = vpop.xlane.xlu1 %511 }
 0x2e0   : > { %v1008_v6 = vrot.slane %v502_v10, %v2352_v52  ;;  %v513_v54 = vcvt.f32.s32 %v512_v36  ;;  %v2899_v10 = vld [vmem:[#allocation88_spill] sm:$0xff] }
 0x2e1   : > { %v612_v36 = vcvt.f32.s32 %v2899_v10 }
 0x2e2   : > { %v1009_v4 = vsel %vm903_vm3, %v1008_v6, %v1004_v57  ;;  %v516_v27 = vadd.s32 %v515_v61, %v513_v54  ;;  %v599_v57 = vshll.u32 %v598_v53, 16 }
 0x2e3   : > { %v526_v19 = vpop.xlane.xlu1 %525 }
 0x2e4   : > { %v1013_v16 = vrot.slane %v516_v27, %v2359_v50  ;;  %v527_v30 = vcvt.f32.s32 %v526_v19  ;;  %v2900_v27 = vld [vmem:[#allocation89_spill] sm:$0xff] }
 0x2e5   : > { %v626_v19 = vcvt.f32.s32 %v2900_v27 }
 0x2e6   : > { %v1014_v49 = vsel %vm910_vm4, %v1013_v16, %v1009_v4  ;;  %v530_v40 = vadd.s32 %v529_v51, %v527_v30  ;;  %v613_v4 = vshll.u32 %v612_v36, 16 }
 0x2e7   : > { %v540_v28 = vpop.xlane.xlu1 %539 }
 0x2e8   : > { %v1018_v52 = vrot.slane %v530_v40, %v2365_v37  ;;  %v541_v9 = vcvt.f32.s32 %v540_v28  ;;  %v2901_v40 = vld [vmem:[#allocation90_spill] sm:$0xff] }
 0x2e9   : > { %v640_v28 = vcvt.f32.s32 %v2901_v40 }
 0x2ea   : > { %v1019_v26 = vsel %vm917_vm5, %v1018_v52, %v1014_v49  ;;  %v544_v58 = vadd.s32 %v543_v47, %v541_v9  ;;  %v627_v49 = vshll.u32 %v626_v19, 16  ;;  %v1186_v9 = vpop.permute.xlu0 %1185 }
 0x2eb   : > { %v554_v3 = vpop.xlane.xlu1 %553 }
 0x2ec   : > { %v1023_v50 = vrot.slane %v544_v58, %v2371_v60  ;;  %v555_v13 = vcvt.f32.s32 %v554_v3  ;;  %v641_v58 = vshll.u32 %v640_v28, 16  ;;  %v2902_v3 = vld [vmem:[#allocation91_spill] sm:$0xff] }
 0x2ee   : > { %v1024_v5 = vsel %vm924_vm6, %v1023_v50, %v1019_v26  ;;  %v558_v38 = vadd.s32 %v557_v17, %v555_v13  ;;  %v654_v17 = vcvt.f32.s32 %v2902_v3 }
 0x2ef   : > { %v568_v11 = vpop.xlane.xlu1 %567 }
 0x2f0   : > { %v1028_v37 = vrot.slane %v558_v38, %v2378_v15  ;;  %v569_v41 = vcvt.f32.s32 %v568_v11  ;;  %v655_v38 = vshll.u32 %v654_v17, 16  ;;  %v2903_v11 = vld [vmem:[#allocation92_spill] sm:$0xff] }
 0x2f2   : > { %v1029_v31 = vsel %vm931_vm7, %v1028_v37, %v1024_v5  ;;  %v572_v21 = vadd.s32 %v571_v1, %v569_v41  ;;  %v668_v1 = vcvt.f32.s32 %v2903_v11  ;;  %v1192_v37 = vpop.permute.xlu0 %1191 }
 0x2f3   : > { %v582_v12 = vpop.xlane.xlu1 %581 }
 0x2f4   : > { %v1033_v60 = vrot.slane %v572_v21, %v2384_v33  ;;  %v583_v44 = vcvt.f32.s32 %v582_v12  ;;  %v669_v12 = vshll.u32 %v668_v1, 16 }
 0x2f6   : > { %v1034_v39 = vsel %vm938_vm8, %v1033_v60, %v1029_v31  ;;  %v586_v24 = vadd.s32 %v585_v34, %v583_v44  ;;  %v2904_v34 = vld [vmem:[#allocation93_spill] sm:$0xff] }
 0x2f7   : > { %v596_v18 = vpop.xlane.xlu1 %595  ;;  %v682_v56 = vcvt.f32.s32 %v2904_v34 }
 0x2f8   : > { %v1038_v61 = vrot.slane %v586_v24, %v2391_v25  ;;  %v597_v22 = vcvt.f32.s32 %v596_v18  ;;  %v1198_v24 = vpop.permute.xlu0 %1197 }
 0x2fa   : > { %v1039_v14 = vsel %vm945_vm9, %v1038_v61, %v1034_v39  ;;  %v600_v6 = vadd.s32 %v599_v57, %v597_v22  ;;  %v683_v57 = vshll.u32 %v682_v56, 16 }
 0x2fb   : > { %v610_v54 = vpop.xlane.xlu1 %609 }
 0x2fc   : > { %v1043_v51 = vrot.slane %v600_v6, %v2397_v46  ;;  %v611_v2 = vcvt.f32.s32 %v610_v54  ;;  %v1156_v54 = vpop.permute.xlu0 %1155 }
 0x2fe   : > { %v1044_v0 = vsel %vm952_vm10, %v1043_v51, %v1039_v14  ;;  %v614_v16 = vadd.s32 %v613_v4, %v611_v2 }
 0x2ff   : > { %v624_v30 = vpop.xlane.xlu1 %623 }
 0x300   : > { %v1048_v47 = vrot.slane %v614_v16, %v2404_v7  ;;  %v625_v23 = vcvt.f32.s32 %v624_v30  ;;  %v1159_v51 = vpop.permute.xlu0 %1158 }
 0x301   : > { %v1281_v3 = vrot.slane %v1159_v51, %v2503_v62 }
 0x302   : > { %v1049_v55 = vsel %vm959_vm11, %v1048_v47, %v1044_v0  ;;  %v628_v52 = vadd.s32 %v627_v49, %v625_v23  ;;  %v1325_v0 = vrot.slane %v1186_v9, %v2378_v15  ;;  %v1335_v23 = vrot.slane %v1192_v37, %v2391_v25 }
 0x303   : > { %v638_v26 = vpop.xlane.xlu1 %637  ;;  %v1276_v9 = vrot.slane %v1156_v54, %v2496_v59 }
 0x304   : > { %v1053_v8 = vrot.slane %v628_v52, %v2409_v42  ;;  %v639_v48 = vcvt.f32.s32 %v638_v26  ;;  %v1326_v49 = vsel %vm931_vm7, %v1325_v0, %v2434_v45  ;;  %v1162_v40 = vpop.permute.xlu0 %1161 }
 0x305   : > { %v1286_v25 = vrot.slane %v1162_v40, %v2510_v29 }
 0x306   : > { %v1054_v50 = vsel %vm966_vm12, %v1053_v8, %v1049_v55  ;;  %v642_v13 = vadd.s32 %v641_v58, %v639_v48  ;;  %v1277_v48 = vsel %vm973_vm13, %v1276_v9, %v2418_v35 }
 0x307   : > { %v652_v5 = vpop.xlane.xlu1 %651 }
 0x308   : > { %v1058_v32 = vrot.slane %v642_v13, %v2496_v59  ;;  %v653_v63 = vcvt.f32.s32 %v652_v5  ;;  %v1165_v26 = vpop.permute.xlu0 %1164  ;;  %v1282_v13 = vsel %vm980_vm14, %v1281_v3, %v1277_v48 }
 0x30a   : > { %v1059_v41 = vsel %vm973_vm13, %v1058_v32, %v1054_v50  ;;  %v656_v31 = vadd.s32 %v655_v38, %v653_v63  ;;  %v1287_v38 = vsel %vm987_vm15, %v1286_v25, %v1282_v13  ;;  %v2905_v32 = vld [vmem:[#allocation54_spill] sm:$0xff]  ;;  %v2906_v63 = vld [vmem:[#allocation20_spill] sm:$0xff] }
 0x30b   : > { %v666_v21 = vpop.xlane.xlu1 %665  ;;  %vm1085_vm2 = vcmp.eq.s32.totalorder %v2905_v32, 1 }
 0x30c   : > { %v1063_v53 = vrot.slane %v656_v31, %v2503_v62  ;;  %v667_v60 = vcvt.f32.s32 %v666_v21 }
 0x30e   : > { %v1064_v44 = vsel %vm980_vm14, %v1063_v53, %v1059_v41  ;;  %v670_v39 = vadd.s32 %v669_v12, %v667_v60 }
 0x30f   : > { %v680_v18 = vpop.xlane.xlu1 %679 }
 0x310   : > { %v1068_v10 = vrot.slane %v670_v39, %v2510_v29  ;;  %v681_v36 = vcvt.f32.s32 %v680_v18 }
 0x312   : > { %v1069_v61 = vsel %vm987_vm15, %v1068_v10, %v1064_v44  ;;  %v684_v22 = vadd.s32 %v683_v57, %v681_v36 }
 0x313   : > { %v1189_v14 = vpop.permute.xlu1 %1188 }
 0x314   : > { %v1073_v6 = vrot.slane %v684_v22, %v2517_v43  ;;  %v1330_v16 = vrot.slane %v1189_v14, %v2384_v33  ;;  %v1345_v33 = vrot.slane %v1198_v24, %v2404_v7 }
 0x316   : > { %v1074_v4 = vsel %vm994_vm0, %v1073_v6, %v1069_v61  ;;  %v1331_v28 = vsel %vm938_vm8, %v1330_v16, %v1326_v49 }
 0x317   : > { %v1195_v27 = vpop.permute.xlu1 %1194  ;;  %v1076_v19 = vsel %vm1075_vm1, %v1074_v4, %v2523_v20  ;;  %v1336_v20 = vsel %vm945_vm9, %v1335_v23, %v1331_v28 }
 0x318   : > { %1078 = vst [vmem:[%s1077_s27] sm:$0x3] %v1076_v19  ;;  %v1340_v47 = vrot.slane %v1195_v27, %v2397_v46 }
 0x31a   : > { %v1341_v52 = vsel %vm952_vm10, %v1340_v47, %v1336_v20 }
 0x31b   : > { %v1201_v2 = vpop.permute.xlu1 %1200  ;;  %v1346_v17 = vsel %vm959_vm11, %v1345_v33, %v1341_v52 }
 0x31c   : > { %v1350_v15 = vrot.slane %v1201_v2, %v2409_v42  ;;  %v1291_v42 = vrot.slane %v1165_v26, %v2517_v43 }
 0x31e   : > { %v1351_v7 = vsel %vm966_vm12, %v1350_v15, %v1346_v17  ;;  %v1292_v11 = vsel %vm994_vm0, %v1291_v42, %v1287_v38 }
 0x31f   : > { %v1204_v30 = vpop.permute.xlu1 %1203 }
 0x320   : > { %v1355_v45 = vrot.slane %v1204_v30, %v2496_v59 }
 0x322   : > { %v1356_v59 = vsel %vm973_vm13, %v1355_v45, %v1351_v7 }
 0x323   : > { %v1207_v55 = vpop.permute.xlu1 %1206 }
 0x324   : > { %v1360_v46 = vrot.slane %v1207_v55, %v2503_v62 }
 0x326   : > { %v1361_v62 = vsel %vm980_vm14, %v1360_v46, %v1356_v59 }
 0x327   : > { %v1210_v58 = vpop.permute.xlu1 %1209 }
 0x328   : > { %v1365_v8 = vrot.slane %v1210_v58, %v2510_v29 }
 0x32a   : > { %v1366_v29 = vsel %vm987_vm15, %v1365_v8, %v1361_v62 }
 0x32b   : > { %v1213_v50 = vpop.permute.xlu1 %1212  ;;  %41 = sbr.rel (!%p39_p0) target bundleno = 11 (0xb), region = 49 }
 0x32c   : > { %v1370_v5 = vrot.slane %v1213_v50, %v2517_v43 }
 0x32e   : > { %v1371_v1 = vsel %vm994_vm0, %v1370_v5, %v1366_v29 }
 0x32f   : > { %v1372_v35 = vsel %vm1075_vm1, %v1371_v1, %v1292_v11 }
 0x330   : > { %v1374_v37 = vsel %vm1085_vm2, %v1372_v35, %v2906_v63  }
 0x331   : > { %v2907_v18 = vmov %v1374_v37  ;;  %1375 = vst [vmem:[%s2622_s4] sm:$0x3] (%p39_p0), %v1374_v37 }

// kernel: bilstm_crf_forward.2
= control target key start
LH: loop header
LB: loop body
LE: loop exit
PB: predicated region body
PF: predicated region fallthrough
CT: control target
= control target key end

     0   :  { %v4175_v3 = vmov 1983009808   ;;  %v69_v5 = vlaneseq  ;;  %vm98_vm0 = vcmask 130048   ;;  %vm649_vm1 = vcmask 517120   ;;  %s4584_s1 = inlined_call_operand.vmem [shape: s32[2,1], index: 1, kind: input, shape index: {}]   ;;  %s4585_s2 = inlined_call_operand.vmem [shape: f32[16,64], index: 2, kind: input, shape index: {}]   ;;  %s4586_s8 = inlined_call_operand.vmem [shape: f32[16,128], index: 8, kind: input, shape index: {}]   ;;  %s4587_s9 = inlined_call_operand.vmem [shape: f32[16,128], index: 9, kind: input, shape index: {}]   ;;  %s4588_s10 = inlined_call_operand.vmem [shape: f32[1,128], index: 10, kind: input, shape index: {}]   ;;  %s4589_s11 = inlined_call_operand.vmem [shape: f32[8,2,128], index: 11, kind: output, shape index: {}]   ;;  %s4590_s5 = inlined_call_operand.vmem [shape: f32[16,64], index: 5, kind: input, shape index: {}]   ;;  %s4591_s0 = inlined_call_operand.vmem [shape: f32[8,2,16], index: 0, kind: input, shape index: {}]   ;;  %s4592_s3 = inlined_call_operand.vmem [shape: f32[16,64], index: 3, kind: input, shape index: {}]   ;;  %s4593_s6 = inlined_call_operand.vmem [shape: f32[16,64], index: 6, kind: input, shape index: {}]   ;;  %s4594_s4 = inlined_call_operand.vmem [shape: f32[1,64], index: 4, kind: input, shape index: {}]   ;;  %s4595_s7 = inlined_call_operand.vmem [shape: f32[1,64], index: 7, kind: input, shape index: {}]  }
   0x1   :  { %v4255_v0 = vld [vmem:[%s4584_s1] sm:$0x3]  ;;  %v48_v2 = vld [vmem:[%s4585_s2 + $0x8] sm:$0xff]  ;;  %v67_v4 = vunpack.c.l.s4 %v4175_v3  ;;  %v40_v13 = vld [vmem:[%s4591_s0 + $0x2] sm:$0x3] }
   0x2   :  { %v47_v1 = vld [vmem:[%s4585_s2] sm:$0xff]  ;;  %v107_v7 = vand.u32 4294901760, %v48_v2  ;;  %v659_v9 = vld [vmem:[%s4590_s5 + $0x8] sm:$0xff]  ;;  %v70_v27 = vshrl.u32 %v69_v5, 7 }
   0x3   :  { %v104_v6 = vand.u32 4294901760, %v47_v1  ;;  %v658_v8 = vld [vmem:[%s4590_s5] sm:$0xff]  ;;  %v671_v12 = vand.u32 4294901760, %v659_v9  ;;  %v68_v15 = vunpack.c.0.s8 %v67_v4  ;;  %v43_v18 = vld [vmem:[%s4591_s0 + $0x8] sm:$0x3] }
   0x4   :  { %v39_v10 = vld [vmem:[%s4591_s0] sm:$0x3]  ;;  %v668_v11 = vand.u32 4294901760, %v658_v8  ;;  %v41_v14 = vld [vmem:[%s4591_s0 + $0x4] sm:$0x3]  ;;  %v4291_v22 = vsub.f32 %v48_v2, %v107_v7 }
   0x5   :  { %v4278_v16 = vpack.c.bf16 %v107_v7, %v104_v6  ;;  %v42_v17 = vld [vmem:[%s4591_s0 + $0x6] sm:$0x3]  ;;  %v44_v19 = vld [vmem:[%s4591_s0 + $0xa] sm:$0x3]  ;;  %v64_v20 = vcombine.low %v39_v10, %v40_v13  ;;  %v4289_v21 = vsub.f32 %v47_v1, %v104_v6  ;;  %v45_v24 = vld [vmem:[%s4591_s0 + $0xc] sm:$0x3]  ;;  %v4306_v33 = vsub.s32 %v68_v15, %v70_v27 }
   0x6   :  { %v4293_v23 = vpack.c.bf16 %v671_v12, %v668_v11  ;;  %v46_v25 = vld [vmem:[%s4591_s0 + $0xe] sm:$0x3]  ;;  %v65_v26 = vcombine.low %v41_v14, %v42_v17  ;;  %v81_v28 = vcombine.low %v43_v18, %v44_v19  ;;  %v200_v31 = vand.u32 4294901760, %v4291_v22  ;;  %v4330_v6 = vld [vmem:[%s4592_s3] sm:$0xff] }
   0x7   :  { %3865 = vmatprep.subr.bf16.mxu0 %v4278_v16  ;;  %v82_v29 = vcombine.low %v45_v24, %v46_v25  ;;  %v193_v30 = vand.u32 4294901760, %v4289_v21  ;;  %v756_v32 = vsub.f32 %v658_v8, %v668_v11  ;;  %v763_v34 = vsub.f32 %v659_v9, %v671_v12  ;;  %v4335_v7 = vld [vmem:[%s4592_s3 + $0x8] sm:$0xff]  ;;  %v4340_v8 = vld [vmem:[%s4593_s6] sm:$0xff]  ;;  %s4381_s3 = smov 0  }
   0x8   :  { %3889 = vmatprep.subr.bf16.mxu1 %v4293_v23  ;;  %3867 = vmatpush3.bf16.msra.mxu0 %v4278_v16  ;;  %v201_v36 = vsub.f32 %v4291_v22, %v200_v31  ;;  %v72_v38 = vrot.slane %v64_v20, %v4306_v33  ;;  %v79_v39 = vrot.slane %v65_v26, %v4306_v33  ;;  %v4345_v9 = vld [vmem:[%s4593_s6 + $0x8] sm:$0xff]  ;;  %v3469_v10 = vld [vmem:[%s4594_s4] ss:$0 sm:$0xff] }
   0x9   :  { %3891 = vmatpush3.bf16.msra.mxu1 %v4293_v23  ;;  %v194_v35 = vsub.f32 %v4289_v21, %v193_v30  ;;  %v757_v37 = vand.u32 4294901760, %v756_v32  ;;  %v89_v40 = vrot.slane %v81_v28, %v4306_v33  ;;  %v96_v41 = vrot.slane %v82_v29, %v4306_v33  ;;  %v3470_v11 = vld [vmem:[%s4595_s7] ss:$0 sm:$0xff] }
   0xa   :  { %v202_v43 = vand.u32 4294901760, %v201_v36  ;;  %v764_v45 = vand.u32 4294901760, %v763_v34  ;;  %v80_v46 = vcombine.low %v72_v38, %v79_v39  ;;  %v3872_v2 = vpack.c.bf16 %v4291_v22, %v4289_v21 }
   0xb   :  { %v195_v42 = vand.u32 4294901760, %v194_v35  ;;  %v758_v44 = vsub.f32 %v756_v32, %v757_v37  ;;  %v97_v47 = vcombine.low %v89_v40, %v96_v41  ;;  %v3896_v3 = vpack.c.bf16 %v763_v34, %v756_v32 }
   0xc   :  { %v765_v50 = vsub.f32 %v763_v34, %v764_v45  ;;  %v99_v51 = vsel %vm98_vm0, %v80_v46, 0  ;;  %v3880_v4 = vpack.c.bf16 %v200_v31, %v193_v30  ;;  %v3904_v5 = vpack.c.bf16 %v764_v45, %v757_v37 }
   0xd   :  { %v3868_v48 = vpack.c.bf16 %v202_v43, %v195_v42  ;;  %v759_v49 = vand.u32 4294901760, %v758_v44  ;;  %v101_v52 = vsel %vm98_vm0, %v97_v47, 0  ;;  %v170_v53 = vand.u32 4294901760, %v99_v51 }
   0xe   :  { %v180_v54 = vand.u32 4294901760, %v101_v52  ;;  %v766_v55 = vand.u32 4294901760, %v765_v50  ;;  %v4377_v41 = vmov 0.0   ;;  %v4379_v42 = vmov 0.0  }
   0xf   :  { %3869 = vmatprep.subr.bf16.mxu0 %v3868_v48  ;;  %v171_v56 = vsub.f32 %v99_v51, %v170_v53 }
  0x10   :  { %v3892_v57 = vpack.c.bf16 %v766_v55, %v759_v49  ;;  %v181_v58 = vsub.f32 %v101_v52, %v180_v54 }
  0x11   :  { %v172_v59 = vand.u32 4294901760, %v171_v56 }
  0x12   :  { %3893 = vmatprep.subr.bf16.mxu1 %v3892_v57  ;;  %v182_v60 = vand.u32 4294901760, %v181_v58 }
  0x13   :  { %v173_v61 = vsub.f32 %v171_v56, %v172_v59 }
  0x14   :  { %v183_v62 = vsub.f32 %v181_v58, %v182_v60 }
  0x15   :  { %v174_v63 = vand.u32 4294901760, %v173_v61 }
  0x16   :  { %v184_v1 = vand.u32 4294901760, %v183_v62 }
  0x17   :  { %3616 = vmatprep.mubr.f32.mxu0 %v174_v63  ;;  %3658 = vmatprep.mubr.f32.mxu1 %v174_v63 }
  0x18   :  { %3617 = vmatmul.mubr.f32.vlgmr.msra.gmra.mrb[0].mxu0 %v184_v1  ;;  %3659 = vmatmul.mubr.f32.vlgmr.msra.gmra.mrb[0].mxu1 %v184_v1 }
  0x19   :  { %3871 = vmatpush3.bf16.msra.mxu0 %v3868_v48  ;;  %3895 = vmatpush3.bf16.msra.mxu1 %v3892_v57 }
  0x1a   :  { %3623 = vmatprep.mubr.f32.mxu0 %v170_v53  ;;  %3873 = vmatprep.subr.bf16.mxu0 %v3872_v2 }
  0x1b   :  { %3665 = vmatprep.mubr.f32.mxu1 %v170_v53  ;;  %3897 = vmatprep.subr.bf16.mxu1 %v3896_v3 }
  0x20   :  { %3624 = vmatmul.mubr.f32.vlgmr.msra.gmra.mrb[0].mxu0 %v180_v54  ;;  %3666 = vmatmul.mubr.f32.vlgmr.msra.gmra.mrb[0].mxu1 %v180_v54 }
  0x21   :  { %3875 = vmatpush3.bf16.msra.mxu0 %v3872_v2  ;;  %3899 = vmatpush3.bf16.msra.mxu1 %v3896_v3 }
  0x22   :  { %3630 = vmatprep.mubr.f32.mxu0 %v171_v56  ;;  %3877 = vmatprep.subr.bf16.mxu0 %v4278_v16 }
  0x23   :  { %3672 = vmatprep.mubr.f32.mxu1 %v171_v56  ;;  %3901 = vmatprep.subr.bf16.mxu1 %v4293_v23 }
  0x28   :  { %3631 = vmatmul.mubr.f32.vlgmr.msra.gmra.mrb[0].mxu0 %v181_v58  ;;  %3673 = vmatmul.mubr.f32.vlgmr.msra.gmra.mrb[0].mxu1 %v181_v58 }
  0x29   :  { %3879 = vmatpush3.bf16.msra.mxu0 %v4278_v16  ;;  %3903 = vmatpush3.bf16.msra.mxu1 %v4293_v23 }
  0x2a   :  { %3637 = vmatprep.mubr.f32.mxu0 %v172_v59  ;;  %3881 = vmatprep.subr.bf16.mxu0 %v3880_v4 }
  0x2b   :  { %3679 = vmatprep.mubr.f32.mxu1 %v172_v59  ;;  %3905 = vmatprep.subr.bf16.mxu1 %v3904_v5 }
  0x30   :  { %3638 = vmatmul.mubr.f32.vlgmr.msra.gmra.mrb[0].mxu0 %v182_v60  ;;  %3680 = vmatmul.mubr.f32.vlgmr.msra.gmra.mrb[0].mxu1 %v182_v60 }
  0x31   :  { %3883 = vmatpush3.bf16.msra.mxu0 %v3880_v4  ;;  %3907 = vmatpush3.bf16.msra.mxu1 %v3904_v5 }
  0x32   :  { %3644 = vmatprep.mubr.f32.mxu0 %v170_v53  ;;  %3885 = vmatprep.subr.bf16.mxu0 %v4278_v16 }
  0x33   :  { %3686 = vmatprep.mubr.f32.mxu1 %v170_v53  ;;  %3909 = vmatprep.subr.bf16.mxu1 %v4293_v23 }
  0x38   :  { %3645 = vmatmul.mubr.f32.vlgmr.msra.gmra.mrb[0].mxu0 %v180_v54  ;;  %3687 = vmatmul.mubr.f32.vlgmr.msra.gmra.mrb[0].mxu1 %v180_v54 }
  0x39   :  { %3887 = vmatpush3.bf16.msra.mxu0 %v4278_v16  ;;  %3911 = vmatpush3.bf16.msra.mxu1 %v4293_v23 }
  0x3a   :  { %3651 = vmatprep.mubr.f32.mxu0 %v170_v53  ;;  %3693 = vmatprep.mubr.f32.mxu1 %v170_v53 }
  0x40   :  { %3652 = vmatmul.mubr.f32.vlgmr.msra.gmra.mrb[0].mxu0 %v180_v54  ;;  %3694 = vmatmul.mubr.f32.vlgmr.msra.gmra.mrb[0].mxu1 %v180_v54 }
 0x113   :  { %v3653_v12 = vpop.f32.mrb[0].mxu0  ;;  %v3695_v13 = vpop.f32.mrb[0].mxu1 }
 0x114   :  { %v3996_v14 = vadd.f32 %v3653_v12, %v3469_v10  ;;  %v3998_v15 = vadd.f32 %v3695_v13, %v3470_v11  ;;  %v595_v16 = vpop.f32.mrb[1].mxu0  ;;  %v1159_v17 = vpop.f32.mrb[1].mxu1 }
 0x115   :  { %v3997_v18 = vadd.f32 %v3469_v10, %v595_v16  ;;  %v3999_v19 = vadd.f32 %v3470_v11, %v1159_v17 }
 0x116   :  { %v624_v20 = vcombine.high %v3996_v14, %v3996_v14  ;;  %v631_v21 = vrot.slane %v3996_v14, %v4306_v33  ;;  %v1188_v22 = vcombine.high %v3998_v15, %v3998_v15  ;;  %v1195_v23 = vrot.slane %v3998_v15, %v4306_v33 }
 0x117   :  { %v607_v24 = vcombine.high %v3997_v18, %v3997_v18  ;;  %v614_v25 = vrot.slane %v3997_v18, %v4306_v33  ;;  %v1171_v26 = vcombine.high %v3999_v19, %v3999_v19  ;;  %v1178_v27 = vrot.slane %v3999_v19, %v4306_v33 }
 0x118   :  { %v638_v28 = vrot.slane %v624_v20, %v4306_v33  ;;  %v639_v29 = vcombine.high %v631_v21, %v631_v21  ;;  %654 = vst.msk [vmem:[#allocation2 + $0x8] sm:$0x3] %vm649_vm1, %v631_v21  ;;  %v1202_v30 = vrot.slane %v1188_v22, %v4306_v33  ;;  %v1203_v31 = vcombine.high %v1195_v23, %v1195_v23 }
 0x119   :  { %1217 = vst.msk [vmem:[#allocation3 + $0x8] sm:$0x3] %vm649_vm1, %v1195_v23  ;;  %v621_v32 = vrot.slane %v607_v24, %v4306_v33  ;;  %v622_v34 = vcombine.high %v614_v25, %v614_v25  ;;  %650 = vst.msk [vmem:[#allocation2] sm:$0x3] %vm649_vm1, %v614_v25  ;;  %v1185_v35 = vrot.slane %v1171_v26, %v4306_v33 }
 0x11a   :  { %v1186_v36 = vcombine.high %v1178_v27, %v1178_v27  ;;  %1213 = vst.msk [vmem:[#allocation3] sm:$0x3] %vm649_vm1, %v1178_v27  ;;  %v640_v37 = vcombine.high %v638_v28, %v638_v28  ;;  %655 = vst.msk [vmem:[#allocation2 + $0xa] sm:$0x3] %vm649_vm1, %v639_v29  ;;  %v1204_v38 = vcombine.high %v1202_v30, %v1202_v30 }
 0x11b   :  { %656 = vst.msk [vmem:[#allocation2 + $0xc] sm:$0x3] %vm649_vm1, %v638_v28  ;;  %1218 = vst.msk [vmem:[#allocation3 + $0xa] sm:$0x3] %vm649_vm1, %v1203_v31  ;;  %v623_v39 = vcombine.high %v621_v32, %v621_v32  ;;  %v1187_v40 = vcombine.high %v1185_v35, %v1185_v35 }
 0x11c   :  { %1219 = vst.msk [vmem:[#allocation3 + $0xc] sm:$0x3] %vm649_vm1, %v1202_v30  ;;  %651 = vst.msk [vmem:[#allocation2 + $0x2] sm:$0x3] %vm649_vm1, %v622_v34 }
 0x11d   :  { %652 = vst.msk [vmem:[#allocation2 + $0x4] sm:$0x3] %vm649_vm1, %v621_v32  ;;  %1214 = vst.msk [vmem:[#allocation3 + $0x2] sm:$0x3] %vm649_vm1, %v1186_v36 }
 0x11e   :  { %1215 = vst.msk [vmem:[#allocation3 + $0x4] sm:$0x3] %vm649_vm1, %v1185_v35  ;;  %657 = vst.msk [vmem:[#allocation2 + $0xe] sm:$0x3] %vm649_vm1, %v640_v37 }
 0x11f   :  { %1220 = vst.msk [vmem:[#allocation3 + $0xe] sm:$0x3] %vm649_vm1, %v1204_v38  ;;  %653 = vst.msk [vmem:[#allocation2 + $0x6] sm:$0x3] %vm649_vm1, %v623_v39 }
 0x120   :  { %1216 = vst.msk [vmem:[#allocation3 + $0x6] sm:$0x3] %vm649_vm1, %v1187_v40 }
 0x121 LB: > { %v1242_v43 = vand.u32 4294901760, %v4330_v6  ;;  %v1245_v44 = vand.u32 4294901760, %v4335_v7  ;;  %v4176_v45 = vmov 0.0|0.0   ;;  %s4177_s4 = smov 80   ;;  %vm4178_vm2 = vmmov 0   ;;  %s3471_s6 = sshll.u32 %s4161_s3, 1  ;;  %s4161_s3 = sphi %s4381_s3, %s1230_s3   ;;  %v4157_v42 = vphi %v4379_v42, %v1724_v42   ;;  %v4153_v41 = vphi %v4377_v41, %v1718_v41  }
 0x122   : > { %3915 = vmatprep.subr.bf16.mxu1 %v4176_v45  ;;  %3912 = vmatprep.subr.bf16.mxu0 %v4176_v45  ;;  %v4179_v48 = vmov 0.0   ;;  %s1234_s7 = scalar_lea.vmem [#allocation2], %s3471_s6  ;;  %s4180_s30 = smov 96   ;;  %v4181_v30 = vmov 0   ;;  %v1725_v31 = vstv %s4161_s3  ;;  %vm1738_vm5 = vcmask 123904  }
 0x123   : > { %1237 = vrot.lane.b32.xlu0 %v4157_v42, %s4177_s4  ;;  %v1320_v46 = vsub.f32 %v4330_v6, %v1242_v43  ;;  %v1327_v47 = vsub.f32 %v4335_v7, %v1245_v44  ;;  %3707 = vmatprep.mubr.msk.f32.mxu1 %vm4178_vm2, %v4179_v48  ;;  %v3913_v49 = vpack.c.bf16 %v1245_v44, %v1242_v43  ;;  %s4182_s12 = smov 16   ;;  %s4183_s13 = smov 32  }
 0x124   : > { %3700 = vmatprep.mubr.msk.f32.mxu0 %vm4178_vm2, %v4179_v48  ;;  %4107 = vset.pattern.permute.xlu1 %v4181_v30  ;;  %vm1726_vm3 = vcmp.gt.s32.totalorder %v4255_v0, %v1725_v31  ;;  %s1737_s5 = scalar_lea.vmem [#allocation4], %s3471_s6  ;;  %s1230_s3 = sadd.s32 1, %s4161_s3  }
 0x125   : > { %v1321_v50 = vand.u32 4294901760, %v1320_v46  ;;  %v1328_v51 = vand.u32 4294901760, %v1327_v47  ;;  %3914 = vmatpush3.bf16.msra.mxu0 %v3913_v49  ;;  %v3919_v52 = vpack.c.bf16 %v1327_v47, %v1320_v46  ;;  %4108 = vset.pattern.permute.xlu0 %v4181_v30  ;;  %v1727_v36 = vsel %vm1726_vm3, 1, %v4181_v30  ;;  %p1227_p0 = scmp.ge.s32.totalorder %s1230_s3, 8  }
 0x126   : > { %3918 = vmatprep.subr.bf16.mxu0 %v4176_v45  ;;  %v1235_v23 = vld [vmem:[%s1234_s7] sm:$0x3]  ;;  %s4423_s14 = smov (%p1227_p0), 0  }
 0x127   : > { %v1322_v53 = vsub.f32 %v1320_v46, %v1321_v50  ;;  %v1329_v54 = vsub.f32 %v1327_v47, %v1328_v51  ;;  %v3925_v55 = vpack.c.bf16 %v1328_v51, %v1321_v50  ;;  %v4421_v46 = vmov (%p1227_p0), 0.0  }
 0x129   : > { %v1323_v56 = vand.u32 4294901760, %v1322_v53  ;;  %v1330_v57 = vand.u32 4294901760, %v1329_v54 }
 0x12b   : > { %v3916_v58 = vpack.c.bf16 %v1330_v57, %v1323_v56 }
 0x12d   : > { %3917 = vmatpush3.bf16.msra.mxu1 %v3916_v58 }
 0x12e   : > { %3921 = vmatprep.subr.bf16.mxu1 %v4176_v45 }
 0x195   : > { %v1238_v59 = vpop.permute.xlu0 %1237 }
 0x196   : > { %v1239_v60 = vsel %vm98_vm0, %v1238_v59, 0 }
 0x197   : > { %v1308_v61 = vand.u32 4294901760, %v1239_v60 }
 0x199   : > { %v1309_v62 = vsub.f32 %v1239_v60, %v1308_v61  ;;  %3708 = vmatmul.mubr.f32.vlgmr.msra.gmra.mrb[0].mxu1 %v1308_v61 }
 0x19a   : > { %3923 = vmatpush3.bf16.msra.mxu1 %v3913_v49  ;;  %3721 = vmatprep.mubr.msk.f32.mxu1 %vm4178_vm2, %v4179_v48 }
 0x19b   : > { %v1310_v63 = vand.u32 4294901760, %v1309_v62  ;;  %3927 = vmatprep.subr.bf16.mxu1 %v4176_v45 }
 0x19d   : > { %3722 = vmatmul.mubr.f32.vlgmr.msra.gmra.mrb[2].mxu1 %v1310_v63  ;;  %v1311_v1 = vsub.f32 %v1309_v62, %v1310_v63 }
 0x19e   : > { %3929 = vmatpush3.bf16.msra.mxu1 %v3913_v49  ;;  %3735 = vmatprep.mubr.msk.f32.mxu1 %vm4178_vm2, %v4179_v48 }
 0x19f   : > { %v1312_v2 = vand.u32 4294901760, %v1311_v1 }
 0x1a1   : > { %3701 = vmatmul.mubr.f32.vlgmr.msra.gmra.mrb[0].mxu0 %v1312_v2  ;;  %3736 = vmatmul.mubr.f32.vlgmr.msra.gmra.mrb[4].mxu1 %v1308_v61 }
 0x1a2   : > { %3920 = vmatpush3.bf16.msra.mxu0 %v3919_v52  ;;  %3714 = vmatprep.mubr.msk.f32.mxu0 %vm4178_vm2, %v4179_v48 }
 0x1a3   : > { %3924 = vmatprep.subr.bf16.mxu0 %v4176_v45  ;;  %v4419_v45 = vmov (%p1227_p0), 0.0  }
 0x1a5   : > { %3715 = vmatmul.mubr.f32.vlgmr.msra.gmra.mrb[2].mxu0 %v1309_v62 }
 0x1a6   : > { %3926 = vmatpush3.bf16.msra.mxu0 %v3925_v55  ;;  %3728 = vmatprep.mubr.msk.f32.mxu0 %vm4178_vm2, %v4179_v48 }
 0x1a9   : > { %3729 = vmatmul.mubr.f32.vlgmr.msra.gmra.mrb[4].mxu0 %v1308_v61 }
 0x26c   : > { %v1395_v3 = vpop.f32.mrb[0].mxu1 }
 0x26d   : > { %v3709_v4 = vpop.f32.mrb[1].mxu1 }
 0x270   : > { %v1546_v5 = vpop.f32.mrb[2].mxu1 }
 0x271   : > { %v3723_v10 = vpop.f32.mrb[3].mxu1 }
 0x274   : > { %v1314_v11 = vpop.f32.mrb[0].mxu0  ;;  %v1696_v12 = vpop.f32.mrb[4].mxu1 }
 0x275   : > { %v1396_v13 = vadd.f32 %v1395_v3, %v1314_v11  ;;  %v3702_v14 = vpop.f32.mrb[1].mxu0  ;;  %v3737_v15 = vpop.f32.mrb[5].mxu1 }
 0x278   : > { %v1471_v16 = vpop.f32.mrb[2].mxu0 }
 0x279   : > { %v1472_v17 = vadd.f32 %v1471_v16, %v1396_v13  ;;  %v3716_v18 = vpop.f32.mrb[3].mxu0 }
 0x27b   : > { %v1547_v19 = vadd.f32 %v1546_v5, %v1472_v17 }
 0x27c   : > { %v1623_v20 = vpop.f32.mrb[4].mxu0 }
 0x27d   : > { %v1624_v21 = vadd.f32 %v1623_v20, %v1547_v19  ;;  %v3730_v22 = vpop.f32.mrb[5].mxu0 }
 0x27f   : > { %v1697_v24 = vadd.f32 %v1696_v12, %v1624_v21 }
 0x281   : > { %v1700_v25 = vadd.f32 %v1697_v24, %v1235_v23 }
 0x283   : > { %4109 = vtanh.f32 %v1700_v25  ;;  %v3472_v27 = vmul.f32 -1.442695, %v1700_v25 }
 0x285   : > { %4111 = vpow2.f32 %v3472_v27 }
 0x28d   : > { %v4110_v26 = vpop.eup %4109 }
 0x28e   : > { %1710 = vrot.lane.b32.xlu0 %v4110_v26, %s4180_s30 }
 0x28f   : > { %v4112_v28 = vpop.eup %4111 }
 0x290   : > { %v1704_v29 = vadd.f32 1.0, %v4112_v28 }
 0x292   : > { %4113 = vrcp.f32 %v1704_v29 }
 0x29c   : > { %v4114_v32 = vpop.eup %4113 }
 0x29d   : > { %v1708_v37 = vmul.f32 %v4153_v41, %v4114_v32 }
 0x300   : > { %v1711_v34 = vpop.permute.xlu0 %1710 }
 0x301   : > { %v1713_v35 = vmul.f32 %v4114_v32, %v1711_v34 }
 0x303   : > { %1715 = vrot.lane.b32.xlu1 %v1713_v35, %s4182_s12 }
 0x307   : > { %1729 = vperm.xlu1 %4107, %v1727_v36  }
 0x375   : > { %v1716_v38 = vpop.permute.xlu1 %1715 }
 0x376   : > { %v1718_v41 = vadd.f32 %v1716_v38, %v1708_v37  }
 0x378   : > { %4115 = vtanh.f32 %v1718_v41 }
 0x382   : > { %v4116_v39 = vpop.eup %4115 }
 0x383   : > { %1721 = vrot.lane.b32.xlu0 %v4116_v39, %s4183_s13 }
 0x386   : > { %v1730_v40 = vpop.permute.xlu1 %1729 }
 0x387   : > { %vm1731_vm4 = vcmp.eq.s32.totalorder %v1730_v40, 1 }
 0x3f5   : > { %v1722_v42 = vpop.permute.xlu0 %1721 }
 0x3f6   : > { %v1724_v42 = vmul.f32 %v4114_v32, %v1722_v42  }
 0x3f8   : > { %v1732_v43 = vsel %vm1731_vm4, %v1724_v42, 0.0 }
 0x3f9   : > { %1734 = vrot.lane.b32.xlu1 %v1732_v43, %s4177_s4 }
 0x466   :  { %1229 = sbr.rel (!%p1227_p0) target bundleno = 289 (0x121), region = 82 }
 0x46b   : > { %v1735_v44 = vpop.permute.xlu1 %1734 }
 0x46c   : > { %1739 = vst.msk [vmem:[%s1737_s5] sm:$0x3] %vm1738_vm5, %v1735_v44 }
 0x46d LB: > { %v1758_v47 = vand.u32 4294901760, %v4340_v8  ;;  %v1761_v6 = vand.u32 4294901760, %v4345_v9  ;;  %v4184_v7 = vmov 0.0|0.0   ;;  %s4185_s15 = smov 80   ;;  %vm4186_vm6 = vmmov 0   ;;  %s1748_s16 = ssub.s32 7, %s4173_s14  ;;  %s4173_s14 = sphi %s4423_s14, %s1745_s14   ;;  %v4169_v46 = vphi %v4421_v46, %v2248_v46   ;;  %v4165_v45 = vphi %v4419_v45, %v2249_v45  }
 0x46e   : > { %3933 = vmatprep.subr.bf16.mxu1 %v4184_v7  ;;  %3930 = vmatprep.subr.bf16.mxu0 %v4184_v7  ;;  %v4187_v49 = vmov 0.0   ;;  %s4448_s17 = sshll.u32 %s1748_s16, 1  ;;  %v4188_v27 = vmov 0   ;;  %s4189_s19 = smov 96   ;;  %v2241_v32 = vstv %s1748_s16 }
 0x46f   : > { %1753 = vrot.lane.b32.xlu0 %v4169_v46, %s4185_s15  ;;  %v1836_v41 = vsub.f32 %v4340_v8, %v1758_v47  ;;  %v1843_v48 = vsub.f32 %v4345_v9, %v1761_v6  ;;  %3749 = vmatprep.mubr.msk.f32.mxu1 %vm4186_vm6, %v4187_v49  ;;  %v3931_v50 = vpack.c.bf16 %v1761_v6, %v1758_v47  ;;  %s1750_s18 = scalar_lea.vmem [#allocation3], %s4448_s17  ;;  %s4190_s20 = smov 16  }
 0x470   : > { %3742 = vmatprep.mubr.msk.f32.mxu0 %vm4186_vm6, %v4187_v49  ;;  %v1751_v24 = vld [vmem:[%s1750_s18] sm:$0x3]  ;;  %4117 = vset.pattern.permute.xlu1 %v4188_v27  ;;  %vm2242_vm7 = vcmp.gt.s32.totalorder %v4255_v0, %v2241_v32  ;;  %s4191_s0 = smov 32   ;;  %s2255_s21 = scalar_lea.vmem [#allocation5], %s4448_s17 }
 0x471   : > { %v1837_v51 = vand.u32 4294901760, %v1836_v41  ;;  %v1844_v52 = vand.u32 4294901760, %v1843_v48  ;;  %3932 = vmatpush3.bf16.msra.mxu0 %v3931_v50  ;;  %v3937_v53 = vpack.c.bf16 %v1843_v48, %v1836_v41  ;;  %4118 = vset.pattern.permute.xlu0 %v4188_v27  ;;  %v2243_v37 = vsel %vm2242_vm7, 1, %v4188_v27  ;;  %s1745_s14 = sadd.s32 1, %s4173_s14  }
 0x472   : > { %3936 = vmatprep.subr.bf16.mxu0 %v4184_v7  ;;  %p1742_p1 = scmp.ge.s32.totalorder %s1745_s14, 8  }
 0x473   : > { %v1838_v54 = vsub.f32 %v1836_v41, %v1837_v51  ;;  %v1845_v55 = vsub.f32 %v1843_v48, %v1844_v52  ;;  %v3943_v56 = vpack.c.bf16 %v1844_v52, %v1837_v51  ;;  %v2276_v41 = vld [vmem:[%s4587_s9] sm:$0xff] (%p1742_p1)  ;;  %v2277_v48 = vld [vmem:[%s4587_s9 + $0x8] sm:$0xff] (%p1742_p1) }
 0x474   :  { %v2328_v51 = vand.u32 (%p1742_p1), 4294901760, %v2277_v48  ;;  %v2262_v27 = vld [vmem:[#allocation4 + $0x8] sm:$0x3] (%p1742_p1) }
 0x475   : > { %v1839_v57 = vand.u32 4294901760, %v1838_v54  ;;  %v1846_v58 = vand.u32 4294901760, %v1845_v55 }
 0x477   : > { %v3934_v59 = vpack.c.bf16 %v1846_v58, %v1839_v57  ;;  %v4481_v57 = vsub.f32 (%p1742_p1), %v2277_v48, %v2328_v51  ;;  %v2258_v58 = vld [vmem:[#allocation4] sm:$0x3] (%p1742_p1) }
 0x479   : > { %3935 = vmatpush3.bf16.msra.mxu1 %v3934_v59  ;;  %v2259_v59 = vld [vmem:[#allocation4 + $0x2] sm:$0x3] (%p1742_p1) }
 0x47a   : > { %3939 = vmatprep.subr.bf16.mxu1 %v4184_v7 }
 0x4e1   : > { %v1754_v60 = vpop.permute.xlu0 %1753 }
 0x4e2   : > { %v1755_v61 = vsel %vm98_vm0, %v1754_v60, 0 }
 0x4e3   : > { %v1824_v62 = vand.u32 4294901760, %v1755_v61 }
 0x4e5   : > { %v1825_v63 = vsub.f32 %v1755_v61, %v1824_v62  ;;  %3750 = vmatmul.mubr.f32.vlgmr.msra.gmra.mrb[0].mxu1 %v1824_v62 }
 0x4e6   : > { %3941 = vmatpush3.bf16.msra.mxu1 %v3931_v50  ;;  %3763 = vmatprep.mubr.msk.f32.mxu1 %vm4186_vm6, %v4187_v49 }
 0x4e7   : > { %v1826_v1 = vand.u32 4294901760, %v1825_v63  ;;  %3945 = vmatprep.subr.bf16.mxu1 %v4184_v7 }
 0x4e9   : > { %3764 = vmatmul.mubr.f32.vlgmr.msra.gmra.mrb[2].mxu1 %v1826_v1  ;;  %v1827_v2 = vsub.f32 %v1825_v63, %v1826_v1  ;;  %v2834_v1 = vcombine.low (%p1742_p1), %v2258_v58, %v2259_v59 }
 0x4ea   : > { %3947 = vmatpush3.bf16.msra.mxu1 %v3931_v50  ;;  %3777 = vmatprep.mubr.msk.f32.mxu1 %vm4186_vm6, %v4187_v49  ;;  %v2325_v50 = vand.u32 (%p1742_p1), 4294901760, %v2276_v41 }
 0x4eb   : > { %v1828_v3 = vand.u32 4294901760, %v1827_v2 }
 0x4ed   : > { %3743 = vmatmul.mubr.f32.vlgmr.msra.gmra.mrb[0].mxu0 %v1828_v3  ;;  %3778 = vmatmul.mubr.f32.vlgmr.msra.gmra.mrb[4].mxu1 %v1824_v62 }
 0x4ee   : > { %3938 = vmatpush3.bf16.msra.mxu0 %v3937_v53  ;;  %3756 = vmatprep.mubr.msk.f32.mxu0 %vm4186_vm6, %v4187_v49 }
 0x4ef   : > { %3942 = vmatprep.subr.bf16.mxu0 %v4184_v7 }
 0x4f1   : > { %3757 = vmatmul.mubr.f32.vlgmr.msra.gmra.mrb[2].mxu0 %v1825_v63  ;;  %v2261_v63 = vld [vmem:[#allocation4 + $0x6] sm:$0x3] (%p1742_p1) }
 0x4f2   : > { %3944 = vmatpush3.bf16.msra.mxu0 %v3943_v56  ;;  %3770 = vmatprep.mubr.msk.f32.mxu0 %vm4186_vm6, %v4187_v49  ;;  %v2266_v49 = vld [vmem:[%s4586_s8] sm:$0xff] (%p1742_p1)  ;;  %v4479_v56 = vsub.f32 (%p1742_p1), %v2276_v41, %v2325_v50 }
 0x4f3   :  { %v2873_v52 = vand.u32 (%p1742_p1), 4294901760, %v2266_v49 }
 0x4f5   : > { %3771 = vmatmul.mubr.f32.vlgmr.msra.gmra.mrb[4].mxu0 %v1824_v62  ;;  %v2260_v62 = vld [vmem:[#allocation4 + $0x4] sm:$0x3] (%p1742_p1)  ;;  %v4485_v2 = vsub.f32 (%p1742_p1), %v2266_v49, %v2873_v52 }
 0x5b8   : > { %v1911_v4 = vpop.f32.mrb[0].mxu1 }
 0x5b9   : > { %v3751_v5 = vpop.f32.mrb[1].mxu1 }
 0x5ba   :  { %v2414_v5 = vand.u32 (%p1742_p1), 4294901760, %v4479_v56 }
 0x5bc   : > { %v2062_v10 = vpop.f32.mrb[2].mxu1 }
 0x5bd   : > { %v3765_v11 = vpop.f32.mrb[3].mxu1 }
 0x5be   :  { %v2835_v11 = vcombine.low (%p1742_p1), %v2260_v62, %v2261_v63 }
 0x5c0   : > { %v1830_v12 = vpop.f32.mrb[0].mxu0  ;;  %v2212_v13 = vpop.f32.mrb[4].mxu1 }
 0x5c1   : > { %v1912_v14 = vadd.f32 %v1911_v4, %v1830_v12  ;;  %v3744_v15 = vpop.f32.mrb[1].mxu0  ;;  %v3779_v16 = vpop.f32.mrb[5].mxu1 }
 0x5c2   :  { %v2842_v15 = vrot.slane (%p1742_p1), %v2834_v1, %v4306_v33  ;;  %v2962_v16 = vand.u32 (%p1742_p1), 4294901760, %v4485_v2 }
 0x5c4   : > { %v1987_v17 = vpop.f32.mrb[2].mxu0 }
 0x5c5   : > { %v1988_v18 = vadd.f32 %v1987_v17, %v1912_v14  ;;  %v3758_v19 = vpop.f32.mrb[3].mxu0 }
 0x5c6   :  { %v2415_v19 = vsub.f32 (%p1742_p1), %v4479_v56, %v2414_v5 }
 0x5c7   : > { %v2063_v20 = vadd.f32 %v2062_v10, %v1988_v18  ;;  %v2421_v10 = vand.u32 (%p1742_p1), 4294901760, %v4481_v57 }
 0x5c8   : > { %v2139_v21 = vpop.f32.mrb[4].mxu0 }
 0x5c9   : > { %v2140_v22 = vadd.f32 %v2139_v21, %v2063_v20  ;;  %v3772_v23 = vpop.f32.mrb[5].mxu0  ;;  %v2422_v20 = vsub.f32 (%p1742_p1), %v4481_v57, %v2421_v10  ;;  %v2849_v21 = vrot.slane (%p1742_p1), %v2835_v11, %v4306_v33 }
 0x5cb   : > { %v2213_v25 = vadd.f32 %v2212_v13, %v2140_v22 }
 0x5cd   : > { %v2216_v26 = vadd.f32 %v2213_v25, %v1751_v24  ;;  %v2963_v24 = vsub.f32 (%p1742_p1), %v4485_v2, %v2962_v16 }
 0x5cf   : > { %4119 = vtanh.f32 %v2216_v26  ;;  %v3474_v29 = vmul.f32 -1.442695, %v2216_v26 }
 0x5d1   : > { %4121 = vpow2.f32 %v3474_v29  ;;  %v2416_v29 = vand.u32 (%p1742_p1), 4294901760, %v2415_v19  ;;  %v3964_v19 = vpack.c.bf16 (%p1742_p1), %v2421_v10, %v2414_v5  ;;  %v3475_v5 = vld [vmem:[%s4588_s10] ss:$0 sm:$0xff] (%p1742_p1) }
 0x5d9   : > { %v4120_v28 = vpop.eup %4119 }
 0x5da   : > { %2226 = vrot.lane.b32.xlu0 %v4120_v28, %s4189_s19  ;;  %v2263_v28 = vld [vmem:[#allocation4 + $0xa] sm:$0x3] (%p1742_p1) }
 0x5db   : > { %v4122_v30 = vpop.eup %4121 }
 0x5dc   : > { %v2220_v31 = vadd.f32 1.0, %v4122_v30  ;;  %v2423_v30 = vand.u32 (%p1742_p1), 4294901760, %v2422_v20 }
 0x5de   : > { %4123 = vrcp.f32 %v2220_v31  ;;  %v2850_v31 = vcombine.low (%p1742_p1), %v2842_v15, %v2849_v21 }
 0x5e8   : > { %v4124_v34 = vpop.eup %4123 }
 0x5e9   : > { %v2224_v38 = vmul.f32 %v4165_v45, %v4124_v34 }
 0x64c   : > { %v2227_v35 = vpop.permute.xlu0 %2226 }
 0x64d   : > { %v2229_v36 = vmul.f32 %v4124_v34, %v2227_v35  ;;  %v2265_v35 = vld [vmem:[#allocation4 + $0xe] sm:$0x3] (%p1742_p1) }
 0x64f   : > { %2231 = vrot.lane.b32.xlu1 %v2229_v36, %s4190_s20 }
 0x653   : > { %2245 = vperm.xlu1 %4117, %v2243_v37   ;;  %v2964_v37 = vand.u32 (%p1742_p1), 4294901760, %v2963_v24 }
 0x6c1   : > { %v2232_v39 = vpop.permute.xlu1 %2231 }
 0x6c2   : > { %v2234_v40 = vadd.f32 %v2232_v39, %v2224_v38 }
 0x6c4   : > { %4125 = vtanh.f32 %v2234_v40 }
 0x6ce   : > { %v4126_v42 = vpop.eup %4125 }
 0x6cf   : > { %2237 = vrot.lane.b32.xlu0 %v4126_v42, %s4191_s0  ;;  %v3952_v42 = vpack.c.bf16 (%p1742_p1), %v2423_v30, %v2416_v29 }
 0x6d2   : > { %v2246_v43 = vpop.permute.xlu1 %2245 }
 0x6d3   : > { %vm2247_vm8 = vcmp.eq.s32.totalorder %v2246_v43, 1  ;;  %v2868_v43 = vsel (%p1742_p1), %vm98_vm0, %v2850_v31, 0 }
 0x6d4   : > { %v2249_v45 = vsel %vm2247_vm8, %v2234_v40, %v4165_v45  }
 0x6d5   :  { %v4477_v45 = vpack.c.bf16 (%p1742_p1), %v2328_v51, %v2325_v50 }
 0x6d7   :  { %3949 = vmatprep.subr.bf16.mxu1 (%p1742_p1), %v4477_v45 }
 0x6d8   :  { %3951 = vmatpush3.bf16.msra.mxu1 (%p1742_p1), %v4477_v45 }
 0x6d9   :  { %3953 = vmatprep.subr.bf16.mxu1 (%p1742_p1), %v3952_v42 }
 0x741   : > { %v2238_v44 = vpop.permute.xlu0 %2237 }
 0x742   : > { %v2240_v47 = vmul.f32 %v4124_v34, %v2238_v44  ;;  %v2264_v34 = vld [vmem:[#allocation4 + $0xc] sm:$0x3] (%p1742_p1)  ;;  %v2851_v44 = vcombine.low (%p1742_p1), %v2262_v27, %v2263_v28 }
 0x743   :  { %v2852_v41 = vcombine.low (%p1742_p1), %v2264_v34, %v2265_v35 }
 0x744   : > { %v2248_v46 = vsel %vm2247_vm8, %v2240_v47, %v4169_v46   ;;  %v2250_v6 = vsel %vm2247_vm8, %v2240_v47, 0.0  ;;  %v4519_v47 = vand.u32 (%p1742_p1), 4294901760, %v2868_v43  ;;  %v2859_v49 = vrot.slane (%p1742_p1), %v2851_v44, %v4306_v33 }
 0x745   : > { %2252 = vrot.lane.b32.xlu1 %v2250_v6, %s4185_s15  ;;  %v2267_v46 = vld [vmem:[%s4586_s8 + $0x8] sm:$0xff] (%p1742_p1) }
 0x746   :  { %v2876_v0 = vand.u32 (%p1742_p1), 4294901760, %v2267_v46  ;;  %v2940_v50 = vsub.f32 (%p1742_p1), %v2868_v43, %v4519_v47 }
 0x748   :  { %v4483_v60 = vpack.c.bf16 (%p1742_p1), %v2876_v0, %v2873_v52  ;;  %v4496_v17 = vsub.f32 (%p1742_p1), %v2267_v46, %v2876_v0  ;;  %v2866_v52 = vrot.slane (%p1742_p1), %v2852_v41, %v4306_v33 }
 0x74a   :  { %3973 = vmatprep.subr.bf16.mxu0 (%p1742_p1), %v4483_v60  ;;  %v2969_v25 = vand.u32 (%p1742_p1), 4294901760, %v4496_v17 }
 0x74b   :  { %3975 = vmatpush3.bf16.msra.mxu0 (%p1742_p1), %v4483_v60 }
 0x74c   :  { %v2970_v38 = vsub.f32 (%p1742_p1), %v4496_v17, %v2969_v25  ;;  %v3988_v20 = vpack.c.bf16 (%p1742_p1), %v2969_v25, %v2962_v16 }
 0x74e   :  { %v2971_v6 = vand.u32 (%p1742_p1), 4294901760, %v2970_v38 }
 0x750   :  { %v3976_v51 = vpack.c.bf16 (%p1742_p1), %v2971_v6, %v2964_v37 }
 0x752   :  { %3977 = vmatprep.subr.bf16.mxu0 (%p1742_p1), %v3976_v51 }
 0x7b2   :  { %1744 = sbr.rel (!%p1742_p1) target bundleno = 1133 (0x46d), region = 93 }
 0x7b7   : > { %v2253_v7 = vpop.permute.xlu1 %2252 }
 0x7b8   : > { %2257 = vst.msk [vmem:[%s2255_s21] sm:$0x3] %vm1738_vm5, %v2253_v7 }
 0x7bf   :  { %v2268_v53 = vld [vmem:[#allocation5] sm:$0x3]  ;;  %v2269_v8 = vld [vmem:[#allocation5 + $0x2] sm:$0x3]  ;;  %v2270_v9 = vld [vmem:[#allocation5 + $0x4] sm:$0x3] }
 0x7c0   :  { %v2271_v54 = vld [vmem:[#allocation5 + $0x6] sm:$0x3]  ;;  %v2286_v55 = vcombine.low %v2268_v53, %v2269_v8  ;;  %v2272_v3 = vld [vmem:[#allocation5 + $0x8] sm:$0x3]  ;;  %v2273_v12 = vld [vmem:[#allocation5 + $0xa] sm:$0x3] }
 0x7c1   :  { %v2287_v61 = vcombine.low %v2270_v9, %v2271_v54  ;;  %v2274_v13 = vld [vmem:[#allocation5 + $0xc] sm:$0x3]  ;;  %v2275_v18 = vld [vmem:[#allocation5 + $0xe] sm:$0x3]  ;;  %v2303_v22 = vcombine.low %v2272_v3, %v2273_v12  ;;  %v2941_v8 = vand.u32 4294901760, %v2940_v50  ;;  %v2867_v9 = vcombine.low %v2859_v49, %v2866_v52 }
 0x7c2   :  { %v2294_v4 = vrot.slane %v2286_v55, %v4306_v33  ;;  %v2304_v26 = vcombine.low %v2274_v13, %v2275_v18  ;;  %v3956_v13 = vpack.c.bf16 %v4481_v57, %v4479_v56  ;;  %v3980_v18 = vpack.c.bf16 %v4496_v17, %v4485_v2 }
 0x7c3   :  { %v2301_v14 = vrot.slane %v2287_v61, %v4306_v33  ;;  %v2311_v32 = vrot.slane %v2303_v22, %v4306_v33  ;;  %v2942_v58 = vsub.f32 %v2940_v50, %v2941_v8  ;;  %v2870_v59 = vsel %vm98_vm0, %v2867_v9, 0 }
 0x7c4   :  { %v2318_v39 = vrot.slane %v2304_v26, %v4306_v33  ;;  %v2949_v63 = vand.u32 4294901760, %v2870_v59 }
 0x7c5   :  { %v2302_v23 = vcombine.low %v2294_v4, %v2301_v14  ;;  %v2943_v1 = vand.u32 4294901760, %v2942_v58 }
 0x7c6   :  { %v2319_v7 = vcombine.low %v2311_v32, %v2318_v39  ;;  %v2950_v4 = vsub.f32 %v2870_v59, %v2949_v63 }
 0x7c7   :  { %v2320_v36 = vsel %vm98_vm0, %v2302_v23, 0  ;;  %3826 = vmatprep.mubr.f32.mxu0 %v2943_v1 }
 0x7c8   :  { %v4516_v40 = vand.u32 4294901760, %v2320_v36  ;;  %v2322_v46 = vsel %vm98_vm0, %v2319_v7, 0  ;;  %v2951_v12 = vand.u32 4294901760, %v2950_v4 }
 0x7c9   :  { %v2401_v0 = vand.u32 4294901760, %v2322_v46 }
 0x7ca   :  { %v2392_v48 = vsub.f32 %v2320_v36, %v4516_v40  ;;  %v2952_v14 = vsub.f32 %v2950_v4, %v2951_v12 }
 0x7cb   :  { %v2402_v55 = vsub.f32 %v2322_v46, %v2401_v0 }
 0x7cc   :  { %v2393_v53 = vand.u32 4294901760, %v2392_v48  ;;  %v2953_v15 = vand.u32 4294901760, %v2952_v14 }
 0x7cd   :  { %v2403_v62 = vand.u32 4294901760, %v2402_v55 }
 0x7ce   :  { %v2394_v54 = vsub.f32 %v2392_v48, %v2393_v53  ;;  %3827 = vmatmul.mubr.f32.vlgmr.msra.gmra.mrb[0].mxu0 %v2953_v15 }
 0x7cf   :  { %v2404_v3 = vsub.f32 %v2402_v55, %v2403_v62  ;;  %3979 = vmatpush3.bf16.msra.mxu0 %v3976_v51  ;;  %3833 = vmatprep.mubr.f32.mxu0 %v4519_v47 }
 0x7d0   :  { %v2395_v61 = vand.u32 4294901760, %v2394_v54  ;;  %3981 = vmatprep.subr.bf16.mxu0 %v3980_v18 }
 0x7d1   :  { %v2405_v11 = vand.u32 4294901760, %v2404_v3 }
 0x7d2   :  { %3784 = vmatprep.mubr.f32.mxu1 %v2395_v61 }
 0x7d3   :  { %3785 = vmatmul.mubr.f32.vlgmr.msra.gmra.mrb[0].mxu1 %v2405_v11 }
 0x7d4   :  { %3955 = vmatpush3.bf16.msra.mxu1 %v3952_v42  ;;  %3791 = vmatprep.mubr.f32.mxu1 %v4516_v40 }
 0x7d5   :  { %3957 = vmatprep.subr.bf16.mxu1 %v3956_v13 }
 0x7d6   :  { %3834 = vmatmul.mubr.f32.vlgmr.msra.gmra.mrb[0].mxu0 %v2949_v63 }
 0x7d7   :  { %3983 = vmatpush3.bf16.msra.mxu0 %v3980_v18  ;;  %3840 = vmatprep.mubr.f32.mxu0 %v2940_v50 }
 0x7d8   :  { %3985 = vmatprep.subr.bf16.mxu0 %v4483_v60 }
 0x7db   :  { %3792 = vmatmul.mubr.f32.vlgmr.msra.gmra.mrb[0].mxu1 %v2401_v0 }
 0x7dc   :  { %3959 = vmatpush3.bf16.msra.mxu1 %v3956_v13  ;;  %3798 = vmatprep.mubr.f32.mxu1 %v2392_v48 }
 0x7dd   :  { %3961 = vmatprep.subr.bf16.mxu1 %v4477_v45 }
 0x7de   :  { %3841 = vmatmul.mubr.f32.vlgmr.msra.gmra.mrb[0].mxu0 %v2950_v4 }
 0x7df   :  { %3987 = vmatpush3.bf16.msra.mxu0 %v4483_v60  ;;  %3847 = vmatprep.mubr.f32.mxu0 %v2941_v8 }
 0x7e0   :  { %3989 = vmatprep.subr.bf16.mxu0 %v3988_v20 }
 0x7e3   :  { %3799 = vmatmul.mubr.f32.vlgmr.msra.gmra.mrb[0].mxu1 %v2402_v55 }
 0x7e4   :  { %3963 = vmatpush3.bf16.msra.mxu1 %v4477_v45  ;;  %3805 = vmatprep.mubr.f32.mxu1 %v2393_v53 }
 0x7e5   :  { %3965 = vmatprep.subr.bf16.mxu1 %v3964_v19 }
 0x7e6   :  { %3848 = vmatmul.mubr.f32.vlgmr.msra.gmra.mrb[0].mxu0 %v2951_v12 }
 0x7e7   :  { %3991 = vmatpush3.bf16.msra.mxu0 %v3988_v20  ;;  %3854 = vmatprep.mubr.f32.mxu0 %v4519_v47 }
 0x7e8   :  { %3993 = vmatprep.subr.bf16.mxu0 %v4483_v60 }
 0x7eb   :  { %3806 = vmatmul.mubr.f32.vlgmr.msra.gmra.mrb[0].mxu1 %v2403_v62 }
 0x7ec   :  { %3967 = vmatpush3.bf16.msra.mxu1 %v3964_v19  ;;  %3812 = vmatprep.mubr.f32.mxu1 %v4516_v40 }
 0x7ed   :  { %3969 = vmatprep.subr.bf16.mxu1 %v4477_v45 }
 0x7ee   :  { %3855 = vmatmul.mubr.f32.vlgmr.msra.gmra.mrb[0].mxu0 %v2949_v63 }
 0x7ef   :  { %3995 = vmatpush3.bf16.msra.mxu0 %v4483_v60  ;;  %3861 = vmatprep.mubr.f32.mxu0 %v4519_v47 }
 0x7f3   :  { %3813 = vmatmul.mubr.f32.vlgmr.msra.gmra.mrb[0].mxu1 %v2401_v0 }
 0x7f4   :  { %3971 = vmatpush3.bf16.msra.mxu1 %v4477_v45  ;;  %3819 = vmatprep.mubr.f32.mxu1 %v4516_v40 }
 0x7f6   :  { %3862 = vmatmul.mubr.f32.vlgmr.msra.gmra.mrb[0].mxu0 %v2949_v63 }
 0x7fb   :  { %3820 = vmatmul.mubr.f32.vlgmr.msra.gmra.mrb[0].mxu1 %v2401_v0 }
 0x8c9   :  { %v3863_v2 = vpop.f32.mrb[0].mxu0 }
 0x8ca   :  { %v3364_v16 = vpop.f32.mrb[1].mxu0 }
 0x8ce   :  { %v3821_v56 = vpop.f32.mrb[0].mxu1 }
 0x8cf   :  { %v2816_v57 = vpop.f32.mrb[1].mxu1  ;;  %v4020_v10 = vadd.f32 %v3863_v2, %v3821_v56 }
 0x8d0   :  { %v4021_v17 = vadd.f32 %v3364_v16, %v2816_v57 }
 0x8d1   :  { %v3382_v45 = vadd.f32 %v4020_v10, %v3475_v5 }
 0x8d2   :  { %v3381_v21 = vadd.f32 %v4021_v17, %v3475_v5 }
 0x8d3   :  { %v3402_v22 = vcombine.high %v3382_v45, %v3382_v45  ;;  %v3409_v23 = vrot.slane %v3382_v45, %v4306_v33  ;;  %3478 = vst.sshfl [vmem:[%s4589_s11 + $0x8] sm:$0x3 pattern:$0x76325410] %v3382_v45 }
 0x8d4   :  { %v3385_v60 = vcombine.high %v3381_v21, %v3381_v21  ;;  %v3392_v24 = vrot.slane %v3381_v21, %v4306_v33  ;;  %3476 = vst.sshfl [vmem:[%s4589_s11] sm:$0x3 pattern:$0x76325410] %v3381_v21 }
 0x8d5   :  { %v3416_v25 = vrot.slane %v3402_v22, %v4306_v33  ;;  %v3417_v26 = vcombine.high %v3409_v23, %v3409_v23  ;;  %3479 = vst.sshfl [vmem:[%s4589_s11 + $0xc] sm:$0x3 pattern:$0x76325410] %v3402_v22 }
 0x8d6   :  { %v3399_v27 = vrot.slane %v3385_v60, %v4306_v33  ;;  %v3400_v28 = vcombine.high %v3392_v24, %v3392_v24  ;;  %3477 = vst.sshfl [vmem:[%s4589_s11 + $0x4] sm:$0x3 pattern:$0x76325410] %v3385_v60 }
 0x8d7   :  { %v3418_v29 = vcombine.high %v3416_v25, %v3416_v25  ;;  %3432 = vst [vmem:[%s4589_s11 + $0xa] sm:$0x3] %v3417_v26 }
 0x8d8   :  { %v3401_v30 = vcombine.high %v3399_v27, %v3399_v27  ;;  %3428 = vst [vmem:[%s4589_s11 + $0x2] sm:$0x3] %v3400_v28 }
 0x8d9   :  { %3434 = vst [vmem:[%s4589_s11 + $0xe] sm:$0x3] %v3418_v29 }
 0x8da   :  { %3430 = vst [vmem:[%s4589_s11 + $0x6] sm:$0x3] %v3401_v30 }

</bundles_post_ra>
